<compile_context>
chip_gen: v5e
topology: v5e:2x2
jax: 0.10.0
libtpu: 0.0.40
codegen_flags: <defaults>
</compile_context>

<pallas_src>
import jax
import jax.numpy as jnp
from jax.experimental import pallas as pl
from jax.experimental.pallas import tpu as pltpu

NUM_CLASSES = 8          # len(classes)
MXU_DTYPE = jnp.bfloat16  # matmul-operand / activation dtype; accumulation stays f32


def _vmem_capacity_bytes():
    """Per-core VMEM capacity; conservative fallback if the query is unavailable."""
    try:
        return int(pltpu.get_tpu_info().vmem_capacity_bytes)
    except Exception:
        return 64 * 1024 * 1024  # v7x physical VMEM (smallest of the targets)


def _scoped_vmem_limit(cap):
    # Leave headroom below physical capacity; well above the 16/32 MiB defaults.
    return min(int(0.85 * cap), 96 * 1024 * 1024)


# ----------------------------------------------------------------------------
# Conv block: 3x3/s1/p1 conv (9 accumulated MXU dots, K=Cin) + bias + ReLU
#             + 2x2/2 max-pool, one image per grid step, lane-dense bf16 output
# ----------------------------------------------------------------------------
def _conv3x3_relu_pool_kernel(x_ref, w_ref, b_ref, o_ref):
    """x_ref: (1, H+2, W+2, Cin) bf16 zero-padded NHWC image
       w_ref: (9, Cin, Cout)     bf16 conv taps in (dy, dx) order
       b_ref: (1, Cout)          f32  bias
       o_ref: (1, H//2, (W//2)*Cout) bf16 pooled, lane-dense output
    """
    _, Hp, Wp, Cin = x_ref.shape
    H, W = Hp - 2, Wp - 2
    Cout = w_ref.shape[-1]
    Hq, Wq = H // 2, W // 2

    xh = x_ref[0]                                          # (H+2, W+2, Cin) bf16

    # 3x3 conv as 9 accumulated MXU dots (K = Cin); no im2col HBM round trip.
    acc = jnp.zeros((H * W, Cout), jnp.float32)
    for dy in range(3):
        for dx in range(3):
            tap = xh[dy:dy + H, dx:dx + W, :].reshape(H * W, Cin)
            acc = acc + jnp.dot(tap, w_ref[3 * dy + dx],
                                preferred_element_type=jnp.float32)

    acc = jnp.maximum(acc + b_ref[...], 0.0)               # bias + ReLU (f32, VPU)

    # Fused 2x2/2 max-pool, entirely in registers (no scratch, no strided ref loads).
    z = acc.reshape(Hq, 2, W, Cout)
    rows = jnp.maximum(z[:, 0], z[:, 1])                   # (Hq, W, Cout)
    cols = rows.reshape(Hq, Wq, 2, Cout)
    pooled = jnp.maximum(cols[:, :, 0], cols[:, :, 1])     # (Hq, Wq, Cout)

    # Lane-dense bf16 store (last dim Wq*Cout): unmasked vst, half the writeback bytes.
    o_ref[0] = pooled.reshape(Hq, Wq * Cout).astype(o_ref.dtype)


def conv3x3_relu_pool(x_nhwc, w, b):
    """x_nhwc: (N, H, W, Cin) -> (N, H//2, W//2, Cout) bf16."""
    N, H, W, Cin = x_nhwc.shape
    assert H % 2 == 0 and W % 2 == 0, "MaxPool2d(2,2) requires even H and W"
    KH, KW, wcin, Cout = w.shape
    assert (KH, KW, wcin) == (3, 3, Cin)
    Hq, Wq = H // 2, W // 2

    # Zero-pad spatially (conv padding=1) and pad Cin up to a multiple of 8 with zeros
    # (keeps the tiny-K contraction sublane-aligned; zeros contribute nothing).
    pad_c = (-Cin) % 8
    Cin_p = Cin + pad_c
    xp = jnp.pad(x_nhwc, ((0, 0), (1, 1), (1, 1), (0, pad_c))).astype(MXU_DTYPE)
    w9 = jnp.pad(w.reshape(9, Cin, Cout),
                 ((0, 0), (0, pad_c), (0, 0))).astype(MXU_DTYPE)

    vmem_cap = _vmem_capacity_bytes()

    out = pl.pallas_call(
        _conv3x3_relu_pool_kernel,
        out_shape=jax.ShapeDtypeStruct((N, Hq, Wq * Cout), MXU_DTYPE),
        grid=(N,),
        in_specs=[
            pl.BlockSpec((1, H + 2, W + 2, Cin_p), lambda n: (n, 0, 0, 0)),
            pl.BlockSpec((9, Cin_p, Cout), lambda n: (0, 0, 0)),
            pl.BlockSpec((1, Cout), lambda n: (0, 0)),
        ],
        out_specs=pl.BlockSpec((1, Hq, Wq * Cout), lambda n: (n, 0, 0)),
        compiler_params=pltpu.CompilerParams(
            dimension_semantics=("parallel",),
            vmem_limit_bytes=_scoped_vmem_limit(vmem_cap),
        ),
    )(xp, w9, b)
    # TODO(synk): at large spatial sizes (nominal 224x224) add an M-row-strip grid axis
    # with a manual halo DMA (pl.ANY input + pltpu.make_async_copy of R+2 padded rows)
    # so per-step VMEM fits v7x's 64 MiB; unnecessary at the demo size.
    return out.reshape(N, Hq, Wq, Cout)


# ----------------------------------------------------------------------------
# MLP: K-tiled Linear(fc_in, 256) + ReLU + (Dropout=identity) + Linear(256, 8)
# ----------------------------------------------------------------------------
def _mlp_kernel(x_ref, w1_ref, b1_ref, w2_ref, b2_ref, o_ref, h_acc):
    k = pl.program_id(0)

    @pl.when(k == 0)
    def _init():
        h_acc[...] = jnp.zeros_like(h_acc)

    # Accumulate this K-slice of the first Linear in f32.
    h_acc[...] += jnp.dot(x_ref[...], w1_ref[...], preferred_element_type=jnp.float32)

    @pl.when(k == pl.num_programs(0) - 1)
    def _finalize():
        h = jnp.maximum(h_acc[...] + b1_ref[...], 0.0)      # bias + ReLU (f32)
        # TODO(synk): nn.Dropout(0.5) is the identity in eval/inference mode; training-
        # mode stochastic dropout (pltpu.prng_*) is intentionally not applied here.
        o_ref[...] = (jnp.dot(h, w2_ref[...], preferred_element_type=jnp.float32)
                      + b2_ref[...]).astype(o_ref.dtype)


def _pick_k_tile(K, n_rows, hidden, budget_bytes):
    """Largest divisor of K whose double-buffered bf16 (w1 tile + x tile) fits budget."""
    per_k = 2 * 2 * (hidden + n_rows)          # 2 buffers * 2 bytes * (w1 row + x col)
    limit = max(1, budget_bytes // per_k)
    if K <= limit:
        return K
    best, d = 1, 1
    while d * d <= K:
        if K % d == 0:
            for t in (d, K // d):
                if t <= limit and t > best:
                    best = t
        d += 1
    return best


def mlp(x, w1, b1, w2, b2):
    """x: (N, fc_in) -> logits (N, NUM_CLASSES) f32."""
    N, K = x.shape
    Hd = w1.shape[1]       # 256
    C = w2.shape[1]        # NUM_CLASSES
    assert w1.shape[0] == K

    vmem_cap = _vmem_capacity_bytes()
    # ~45% of VMEM for the two streamed operands leaves room for the resident f32
    # accumulator, w2/b1/b2 and the output, while keeping the grid-step count minimal
    # (the MLP is HBM-bound on the w_fc1 read; long DMAs hide under the matmul).
    tk = _pick_k_tile(K, N, Hd, int(0.45 * vmem_cap))

    xq = x.astype(MXU_DTYPE)
    w1q = w1.astype(MXU_DTYPE)

    return pl.pallas_call(
        _mlp_kernel,
        out_shape=jax.ShapeDtypeStruct((N, C), jnp.float32),
        grid=(K // tk,),
        in_specs=[
            pl.BlockSpec((N, tk), lambda k: (0, k)),
            # NOTE: if the w1 DMA is still exposed after enlarging tk, request a third
            # buffer on this one stream via pipeline_mode=pl.Buffered(3).
            pl.BlockSpec((tk, Hd), lambda k: (k, 0)),
            pl.BlockSpec((1, Hd), lambda k: (0, 0)),
            pl.BlockSpec((Hd, C), lambda k: (0, 0)),
            pl.BlockSpec((1, C), lambda k: (0, 0)),
        ],
        out_specs=pl.BlockSpec((N, C), lambda k: (0, 0)),
        scratch_shapes=[pltpu.VMEM((N, Hd), jnp.float32)],
        compiler_params=pltpu.CompilerParams(
            dimension_semantics=("arbitrary",),
            vmem_limit_bytes=_scoped_vmem_limit(vmem_cap),
        ),
    )(xq, w1q, b1, w2, b2)


# ----------------------------------------------------------------------------
# Forward pass + parameters
# ----------------------------------------------------------------------------
def simple_cnn_forward(x_nchw, params):
    """x_nchw: (N, 3, S, S) f32 -> logits (N, NUM_CLASSES) f32."""
    x = jnp.transpose(x_nchw, (0, 2, 3, 1))                      # NCHW -> NHWC (C minor)
    x = conv3x3_relu_pool(x, params["w_conv1"], params["b_conv1"])
    x = conv3x3_relu_pool(x, params["w_conv2"], params["b_conv2"])
    # Flatten directly in NHWC order; w_fc1's rows were permuted into this order once at
    # init time, so no NHWC->NCHW transpose of the activation is needed (matches the
    # nn.Flatten math exactly).
    x = x.reshape(x.shape[0], -1)
    return mlp(x, params["w_fc1"], params["b_fc1"], params["w_fc2"], params["b_fc2"])


def init_params(key, spatial):
    assert spatial % 4 == 0
    hw = spatial // 4
    fc_in = 64 * hw * hw   # equals 64*56*56 when spatial == 224, as in the PyTorch module
    ks = jax.random.split(key, 8)

    def nrm(k, shape, scale):
        return (scale * jax.random.normal(k, shape)).astype(jnp.float32)

    # w_fc1 is drawn with PyTorch's (C, H, W) flatten-order rows, then permuted ONCE at
    # init time into the NHWC flatten order used by the kernels.  (When porting real
    # PyTorch weights, apply the same one-time row permutation.)
    w_fc1_chw = nrm(ks[4], (64, hw, hw, 256), 0.02)              # rows: (c, h, w)
    w_fc1 = jnp.transpose(w_fc1_chw, (1, 2, 0, 3)).reshape(fc_in, 256)  # rows: (h, w, c)

    return {
        "w_conv1": nrm(ks[0], (3, 3, 3, 32), 0.10),   # (KH, KW, Cin, Cout)
        "b_conv1": nrm(ks[1], (1, 32), 0.10),
        "w_conv2": nrm(ks[2], (3, 3, 32, 64), 0.05),
        "b_conv2": nrm(ks[3], (1, 64), 0.05),
        "w_fc1":   w_fc1,                              # stored (in, out) for x @ W
        "b_fc1":   nrm(ks[5], (1, 256), 0.02),
        "w_fc2":   nrm(ks[6], (256, NUM_CLASSES), 0.05),
        "b_fc2":   nrm(ks[7], (1, NUM_CLASSES), 0.05),
    }


if __name__ == "__main__":
    key = jax.random.PRNGKey(0)
    k_x, k_p = jax.random.split(key)

    N, S = 2, 16  # small spatial size; architecture identical to the PyTorch module
    x = jax.random.normal(k_x, (N, 3, S, S), dtype=jnp.float32)
    params = init_params(k_p, S)

    fwd = jax.jit(simple_cnn_forward)
    out = jax.block_until_ready(fwd(x, params))
    assert out.shape == (N, NUM_CLASSES) and out.dtype == jnp.float32
    print("KERNEL_OK")
</pallas_src>

<mosaic_0001>
module attributes {stable_mosaic.version = 11 : i64} {
  func.func @_conv3x3_relu_pool_kernel(%arg0: i32, %arg1: memref<1x10x10x32xbf16, #tpu.memory_space<vmem>>, %arg2: memref<9x32x64xbf16, #tpu.memory_space<vmem>>, %arg3: memref<1x64xf32, #tpu.memory_space<vmem>>, %arg4: memref<1x4x256xbf16, #tpu.memory_space<vmem>>) attributes {dimension_semantics = [#tpu.dimension_semantics<parallel>], iteration_bounds = array<i64: 2>, scalar_prefetch = 0 : i64, scratch_operands = 0 : i64, tpu.core_type = #tpu.core_type<tc>, window_params = [{transform_indices = @transform_0, window_bounds = array<i64: 1, 10, 10, 32>}, {pipeline_mode = #tpu.pipeline_mode<synchronous>, transform_indices = @transform_1, window_bounds = array<i64: 9, 32, 64>}, {pipeline_mode = #tpu.pipeline_mode<synchronous>, transform_indices = @transform_2, window_bounds = array<i64: 1, 64>}, {transform_indices = @transform_3, window_bounds = array<i64: 1, 4, 256>}]} {
    %c0 = arith.constant 0 : index
    %c0_0 = arith.constant 0 : index
    %c0_1 = arith.constant 0 : index
    %c0_2 = arith.constant 0 : index
    %0 = vector.load %arg1[%c0, %c0_0, %c0_1, %c0_2] : memref<1x10x10x32xbf16, #tpu.memory_space<vmem>>, vector<1x10x10x32xbf16>
    %1 = vector.shape_cast %0 : vector<1x10x10x32xbf16> to vector<10x10x32xbf16>
    %cst = arith.constant 0.000000e+00 : f32
    %2 = vector.broadcast %cst : f32 to vector<64x64xf32>
    %3 = vector.extract_strided_slice %1 {offsets = [0, 0, 0], sizes = [8, 8, 32], strides = [1, 1, 1]} : vector<10x10x32xbf16> to vector<8x8x32xbf16>
    %4 = vector.shape_cast %3 : vector<8x8x32xbf16> to vector<64x32xbf16>
    %c0_3 = arith.constant 0 : index
    %c0_4 = arith.constant 0 : index
    %c0_5 = arith.constant 0 : index
    %5 = vector.load %arg2[%c0_3, %c0_4, %c0_5] : memref<9x32x64xbf16, #tpu.memory_space<vmem>>, vector<1x32x64xbf16>
    %6 = vector.shape_cast %5 : vector<1x32x64xbf16> to vector<32x64xbf16>
    %cst_6 = arith.constant dense<0.000000e+00> : vector<64x64xf32>
    %7 = tpu.matmul %4, %6, %cst_6 {dimension_numbers = #tpu.dot_dimension_numbers<[1], [0], [0], [1], [0, 0, 1, 1], [], []>} : vector<64x32xbf16>, vector<32x64xbf16>, vector<64x64xf32> -> vector<64x64xf32>
    %8 = arith.addf %2, %7 : vector<64x64xf32>
    %9 = vector.extract_strided_slice %1 {offsets = [0, 1, 0], sizes = [8, 8, 32], strides = [1, 1, 1]} : vector<10x10x32xbf16> to vector<8x8x32xbf16>
    %10 = vector.shape_cast %9 : vector<8x8x32xbf16> to vector<64x32xbf16>
    %c1 = arith.constant 1 : index
    %c0_7 = arith.constant 0 : index
    %c0_8 = arith.constant 0 : index
    %11 = vector.load %arg2[%c1, %c0_7, %c0_8] : memref<9x32x64xbf16, #tpu.memory_space<vmem>>, vector<1x32x64xbf16>
    %12 = vector.shape_cast %11 : vector<1x32x64xbf16> to vector<32x64xbf16>
    %cst_9 = arith.constant dense<0.000000e+00> : vector<64x64xf32>
    %13 = tpu.matmul %10, %12, %cst_9 {dimension_numbers = #tpu.dot_dimension_numbers<[1], [0], [0], [1], [0, 0, 1, 1], [], []>} : vector<64x32xbf16>, vector<32x64xbf16>, vector<64x64xf32> -> vector<64x64xf32>
    %14 = arith.addf %8, %13 : vector<64x64xf32>
    %15 = vector.extract_strided_slice %1 {offsets = [0, 2, 0], sizes = [8, 8, 32], strides = [1, 1, 1]} : vector<10x10x32xbf16> to vector<8x8x32xbf16>
    %16 = vector.shape_cast %15 : vector<8x8x32xbf16> to vector<64x32xbf16>
    %c2 = arith.constant 2 : index
    %c0_10 = arith.constant 0 : index
    %c0_11 = arith.constant 0 : index
    %17 = vector.load %arg2[%c2, %c0_10, %c0_11] : memref<9x32x64xbf16, #tpu.memory_space<vmem>>, vector<1x32x64xbf16>
    %18 = vector.shape_cast %17 : vector<1x32x64xbf16> to vector<32x64xbf16>
    %cst_12 = arith.constant dense<0.000000e+00> : vector<64x64xf32>
    %19 = tpu.matmul %16, %18, %cst_12 {dimension_numbers = #tpu.dot_dimension_numbers<[1], [0], [0], [1], [0, 0, 1, 1], [], []>} : vector<64x32xbf16>, vector<32x64xbf16>, vector<64x64xf32> -> vector<64x64xf32>
    %20 = arith.addf %14, %19 : vector<64x64xf32>
    %21 = vector.extract_strided_slice %1 {offsets = [1, 0, 0], sizes = [8, 8, 32], strides = [1, 1, 1]} : vector<10x10x32xbf16> to vector<8x8x32xbf16>
    %22 = vector.shape_cast %21 : vector<8x8x32xbf16> to vector<64x32xbf16>
    %c3 = arith.constant 3 : index
    %c0_13 = arith.constant 0 : index
    %c0_14 = arith.constant 0 : index
    %23 = vector.load %arg2[%c3, %c0_13, %c0_14] : memref<9x32x64xbf16, #tpu.memory_space<vmem>>, vector<1x32x64xbf16>
    %24 = vector.shape_cast %23 : vector<1x32x64xbf16> to vector<32x64xbf16>
    %cst_15 = arith.constant dense<0.000000e+00> : vector<64x64xf32>
    %25 = tpu.matmul %22, %24, %cst_15 {dimension_numbers = #tpu.dot_dimension_numbers<[1], [0], [0], [1], [0, 0, 1, 1], [], []>} : vector<64x32xbf16>, vector<32x64xbf16>, vector<64x64xf32> -> vector<64x64xf32>
    %26 = arith.addf %20, %25 : vector<64x64xf32>
    %27 = vector.extract_strided_slice %1 {offsets = [1, 1, 0], sizes = [8, 8, 32], strides = [1, 1, 1]} : vector<10x10x32xbf16> to vector<8x8x32xbf16>
    %28 = vector.shape_cast %27 : vector<8x8x32xbf16> to vector<64x32xbf16>
    %c4 = arith.constant 4 : index
    %c0_16 = arith.constant 0 : index
    %c0_17 = arith.constant 0 : index
    %29 = vector.load %arg2[%c4, %c0_16, %c0_17] : memref<9x32x64xbf16, #tpu.memory_space<vmem>>, vector<1x32x64xbf16>
    %30 = vector.shape_cast %29 : vector<1x32x64xbf16> to vector<32x64xbf16>
    %cst_18 = arith.constant dense<0.000000e+00> : vector<64x64xf32>
    %31 = tpu.matmul %28, %30, %cst_18 {dimension_numbers = #tpu.dot_dimension_numbers<[1], [0], [0], [1], [0, 0, 1, 1], [], []>} : vector<64x32xbf16>, vector<32x64xbf16>, vector<64x64xf32> -> vector<64x64xf32>
    %32 = arith.addf %26, %31 : vector<64x64xf32>
    %33 = vector.extract_strided_slice %1 {offsets = [1, 2, 0], sizes = [8, 8, 32], strides = [1, 1, 1]} : vector<10x10x32xbf16> to vector<8x8x32xbf16>
    %34 = vector.shape_cast %33 : vector<8x8x32xbf16> to vector<64x32xbf16>
    %c5 = arith.constant 5 : index
    %c0_19 = arith.constant 0 : index
    %c0_20 = arith.constant 0 : index
    %35 = vector.load %arg2[%c5, %c0_19, %c0_20] : memref<9x32x64xbf16, #tpu.memory_space<vmem>>, vector<1x32x64xbf16>
    %36 = vector.shape_cast %35 : vector<1x32x64xbf16> to vector<32x64xbf16>
    %cst_21 = arith.constant dense<0.000000e+00> : vector<64x64xf32>
    %37 = tpu.matmul %34, %36, %cst_21 {dimension_numbers = #tpu.dot_dimension_numbers<[1], [0], [0], [1], [0, 0, 1, 1], [], []>} : vector<64x32xbf16>, vector<32x64xbf16>, vector<64x64xf32> -> vector<64x64xf32>
    %38 = arith.addf %32, %37 : vector<64x64xf32>
    %39 = vector.extract_strided_slice %1 {offsets = [2, 0, 0], sizes = [8, 8, 32], strides = [1, 1, 1]} : vector<10x10x32xbf16> to vector<8x8x32xbf16>
    %40 = vector.shape_cast %39 : vector<8x8x32xbf16> to vector<64x32xbf16>
    %c6 = arith.constant 6 : index
    %c0_22 = arith.constant 0 : index
    %c0_23 = arith.constant 0 : index
    %41 = vector.load %arg2[%c6, %c0_22, %c0_23] : memref<9x32x64xbf16, #tpu.memory_space<vmem>>, vector<1x32x64xbf16>
    %42 = vector.shape_cast %41 : vector<1x32x64xbf16> to vector<32x64xbf16>
    %cst_24 = arith.constant dense<0.000000e+00> : vector<64x64xf32>
    %43 = tpu.matmul %40, %42, %cst_24 {dimension_numbers = #tpu.dot_dimension_numbers<[1], [0], [0], [1], [0, 0, 1, 1], [], []>} : vector<64x32xbf16>, vector<32x64xbf16>, vector<64x64xf32> -> vector<64x64xf32>
    %44 = arith.addf %38, %43 : vector<64x64xf32>
    %45 = vector.extract_strided_slice %1 {offsets = [2, 1, 0], sizes = [8, 8, 32], strides = [1, 1, 1]} : vector<10x10x32xbf16> to vector<8x8x32xbf16>
    %46 = vector.shape_cast %45 : vector<8x8x32xbf16> to vector<64x32xbf16>
    %c7 = arith.constant 7 : index
    %c0_25 = arith.constant 0 : index
    %c0_26 = arith.constant 0 : index
    %47 = vector.load %arg2[%c7, %c0_25, %c0_26] : memref<9x32x64xbf16, #tpu.memory_space<vmem>>, vector<1x32x64xbf16>
    %48 = vector.shape_cast %47 : vector<1x32x64xbf16> to vector<32x64xbf16>
    %cst_27 = arith.constant dense<0.000000e+00> : vector<64x64xf32>
    %49 = tpu.matmul %46, %48, %cst_27 {dimension_numbers = #tpu.dot_dimension_numbers<[1], [0], [0], [1], [0, 0, 1, 1], [], []>} : vector<64x32xbf16>, vector<32x64xbf16>, vector<64x64xf32> -> vector<64x64xf32>
    %50 = arith.addf %44, %49 : vector<64x64xf32>
    %51 = vector.extract_strided_slice %1 {offsets = [2, 2, 0], sizes = [8, 8, 32], strides = [1, 1, 1]} : vector<10x10x32xbf16> to vector<8x8x32xbf16>
    %52 = vector.shape_cast %51 : vector<8x8x32xbf16> to vector<64x32xbf16>
    %c8 = arith.constant 8 : index
    %c0_28 = arith.constant 0 : index
    %c0_29 = arith.constant 0 : index
    %53 = vector.load %arg2[%c8, %c0_28, %c0_29] : memref<9x32x64xbf16, #tpu.memory_space<vmem>>, vector<1x32x64xbf16>
    %54 = vector.shape_cast %53 : vector<1x32x64xbf16> to vector<32x64xbf16>
    %cst_30 = arith.constant dense<0.000000e+00> : vector<64x64xf32>
    %55 = tpu.matmul %52, %54, %cst_30 {dimension_numbers = #tpu.dot_dimension_numbers<[1], [0], [0], [1], [0, 0, 1, 1], [], []>} : vector<64x32xbf16>, vector<32x64xbf16>, vector<64x64xf32> -> vector<64x64xf32>
    %56 = arith.addf %50, %55 : vector<64x64xf32>
    %c0_31 = arith.constant 0 : index
    %c0_32 = arith.constant 0 : index
    %57 = vector.load %arg3[%c0_31, %c0_32] : memref<1x64xf32, #tpu.memory_space<vmem>>, vector<1x64xf32>
    %58 = vector.broadcast %57 : vector<1x64xf32> to vector<64x64xf32>
    %59 = arith.addf %56, %58 : vector<64x64xf32>
    %cst_33 = arith.constant 0.000000e+00 : f32
    %60 = vector.broadcast %cst_33 : f32 to vector<64x64xf32>
    %61 = arith.maximumf %59, %60 : vector<64x64xf32>
    %62 = vector.shape_cast %61 : vector<64x64xf32> to vector<4x2x8x64xf32>
    %63 = vector.extract_strided_slice %62 {offsets = [0, 0, 0, 0], sizes = [4, 1, 8, 64], strides = [1, 1, 1, 1]} : vector<4x2x8x64xf32> to vector<4x1x8x64xf32>
    %64 = vector.shape_cast %63 : vector<4x1x8x64xf32> to vector<4x8x64xf32>
    %65 = vector.extract_strided_slice %62 {offsets = [0, 1, 0, 0], sizes = [4, 1, 8, 64], strides = [1, 1, 1, 1]} : vector<4x2x8x64xf32> to vector<4x1x8x64xf32>
    %66 = vector.shape_cast %65 : vector<4x1x8x64xf32> to vector<4x8x64xf32>
    %67 = arith.maximumf %64, %66 : vector<4x8x64xf32>
    %68 = vector.shape_cast %67 : vector<4x8x64xf32> to vector<4x4x2x64xf32>
    %69 = vector.extract_strided_slice %68 {offsets = [0, 0, 0, 0], sizes = [4, 4, 1, 64], strides = [1, 1, 1, 1]} : vector<4x4x2x64xf32> to vector<4x4x1x64xf32>
    %70 = vector.shape_cast %69 : vector<4x4x1x64xf32> to vector<4x4x64xf32>
    %71 = vector.extract_strided_slice %68 {offsets = [0, 0, 1, 0], sizes = [4, 4, 1, 64], strides = [1, 1, 1, 1]} : vector<4x4x2x64xf32> to vector<4x4x1x64xf32>
    %72 = vector.shape_cast %71 : vector<4x4x1x64xf32> to vector<4x4x64xf32>
    %73 = arith.maximumf %70, %72 : vector<4x4x64xf32>
    %74 = vector.shape_cast %73 : vector<4x4x64xf32> to vector<4x256xf32>
    %75 = arith.truncf %74 : vector<4x256xf32> to vector<4x256xbf16>
    %c0_34 = arith.constant 0 : index
    %c0_35 = arith.constant 0 : index
    %c0_36 = arith.constant 0 : index
    %76 = vector.load %arg4[%c0_34, %c0_35, %c0_36] : memref<1x4x256xbf16, #tpu.memory_space<vmem>>, vector<1x4x256xbf16>
    %77 = vector.shape_cast %76 : vector<1x4x256xbf16> to vector<4x256xbf16>
    %78 = vector.shape_cast %75 : vector<4x256xbf16> to vector<1x4x256xbf16>
    tpu.vector_store %arg4[%c0_34, %c0_35, %c0_36], %78 {strides = array<i32>} : memref<1x4x256xbf16, #tpu.memory_space<vmem>>, vector<1x4x256xbf16>,
    return
  }
  func.func @transform_0(%arg0: i32) -> (i32, i32, i32, i32) {
    %c0_i32 = arith.constant 0 : i32
    %c0_i32_0 = arith.constant 0 : i32
    %c0_i32_1 = arith.constant 0 : i32
    %c0_i32_2 = arith.constant 0 : i32
    return %arg0, %c0_i32, %c0_i32_0, %c0_i32_1 : i32, i32, i32, i32
  }
  func.func @transform_1(%arg0: i32) -> (i32, i32, i32) {
    %c0_i32 = arith.constant 0 : i32
    %c0_i32_0 = arith.constant 0 : i32
    %c0_i32_1 = arith.constant 0 : i32
    %c0_i32_2 = arith.constant 0 : i32
    return %c0_i32, %c0_i32_0, %c0_i32_1 : i32, i32, i32
  }
  func.func @transform_2(%arg0: i32) -> (i32, i32) {
    %c0_i32 = arith.constant 0 : i32
    %c0_i32_0 = arith.constant 0 : i32
    %c0_i32_1 = arith.constant 0 : i32
    return %c0_i32, %c0_i32_0 : i32, i32
  }
  func.func @transform_3(%arg0: i32) -> (i32, i32, i32) {
    %c0_i32 = arith.constant 0 : i32
    %c0_i32_0 = arith.constant 0 : i32
    %c0_i32_1 = arith.constant 0 : i32
    return %arg0, %c0_i32, %c0_i32_0 : i32, i32, i32
  }
}

module attributes {stable_mosaic.version = 11 : i64} {
  func.func @_conv3x3_relu_pool_kernel(%arg0: i32, %arg1: memref<1x18x18x8xbf16, #tpu.memory_space<vmem>>, %arg2: memref<9x8x32xbf16, #tpu.memory_space<vmem>>, %arg3: memref<1x32xf32, #tpu.memory_space<vmem>>, %arg4: memref<1x8x256xbf16, #tpu.memory_space<vmem>>) attributes {dimension_semantics = [#tpu.dimension_semantics<parallel>], iteration_bounds = array<i64: 2>, scalar_prefetch = 0 : i64, scratch_operands = 0 : i64, tpu.core_type = #tpu.core_type<tc>, window_params = [{transform_indices = @transform_0, window_bounds = array<i64: 1, 18, 18, 8>}, {pipeline_mode = #tpu.pipeline_mode<synchronous>, transform_indices = @transform_1, window_bounds = array<i64: 9, 8, 32>}, {pipeline_mode = #tpu.pipeline_mode<synchronous>, transform_indices = @transform_2, window_bounds = array<i64: 1, 32>}, {transform_indices = @transform_3, window_bounds = array<i64: 1, 8, 256>}]} {
    %c0 = arith.constant 0 : index
    %c0_0 = arith.constant 0 : index
    %c0_1 = arith.constant 0 : index
    %c0_2 = arith.constant 0 : index
    %0 = vector.load %arg1[%c0, %c0_0, %c0_1, %c0_2] : memref<1x18x18x8xbf16, #tpu.memory_space<vmem>>, vector<1x18x18x8xbf16>
    %1 = vector.shape_cast %0 : vector<1x18x18x8xbf16> to vector<18x18x8xbf16>
    %cst = arith.constant 0.000000e+00 : f32
    %2 = vector.broadcast %cst : f32 to vector<256x32xf32>
    %3 = vector.extract_strided_slice %1 {offsets = [0, 0, 0], sizes = [16, 16, 8], strides = [1, 1, 1]} : vector<18x18x8xbf16> to vector<16x16x8xbf16>
    %4 = vector.shape_cast %3 : vector<16x16x8xbf16> to vector<256x8xbf16>
    %c0_3 = arith.constant 0 : index
    %c0_4 = arith.constant 0 : index
    %c0_5 = arith.constant 0 : index
    %5 = vector.load %arg2[%c0_3, %c0_4, %c0_5] : memref<9x8x32xbf16, #tpu.memory_space<vmem>>, vector<1x8x32xbf16>
    %6 = vector.shape_cast %5 : vector<1x8x32xbf16> to vector<8x32xbf16>
    %cst_6 = arith.constant dense<0.000000e+00> : vector<256x32xf32>
    %7 = tpu.matmul %4, %6, %cst_6 {dimension_numbers = #tpu.dot_dimension_numbers<[1], [0], [0], [1], [0, 0, 1, 1], [], []>} : vector<256x8xbf16>, vector<8x32xbf16>, vector<256x32xf32> -> vector<256x32xf32>
    %8 = arith.addf %2, %7 : vector<256x32xf32>
    %9 = vector.extract_strided_slice %1 {offsets = [0, 1, 0], sizes = [16, 16, 8], strides = [1, 1, 1]} : vector<18x18x8xbf16> to vector<16x16x8xbf16>
    %10 = vector.shape_cast %9 : vector<16x16x8xbf16> to vector<256x8xbf16>
    %c1 = arith.constant 1 : index
    %c0_7 = arith.constant 0 : index
    %c0_8 = arith.constant 0 : index
    %11 = vector.load %arg2[%c1, %c0_7, %c0_8] : memref<9x8x32xbf16, #tpu.memory_space<vmem>>, vector<1x8x32xbf16>
    %12 = vector.shape_cast %11 : vector<1x8x32xbf16> to vector<8x32xbf16>
    %cst_9 = arith.constant dense<0.000000e+00> : vector<256x32xf32>
    %13 = tpu.matmul %10, %12, %cst_9 {dimension_numbers = #tpu.dot_dimension_numbers<[1], [0], [0], [1], [0, 0, 1, 1], [], []>} : vector<256x8xbf16>, vector<8x32xbf16>, vector<256x32xf32> -> vector<256x32xf32>
    %14 = arith.addf %8, %13 : vector<256x32xf32>
    %15 = vector.extract_strided_slice %1 {offsets = [0, 2, 0], sizes = [16, 16, 8], strides = [1, 1, 1]} : vector<18x18x8xbf16> to vector<16x16x8xbf16>
    %16 = vector.shape_cast %15 : vector<16x16x8xbf16> to vector<256x8xbf16>
    %c2 = arith.constant 2 : index
    %c0_10 = arith.constant 0 : index
    %c0_11 = arith.constant 0 : index
    %17 = vector.load %arg2[%c2, %c0_10, %c0_11] : memref<9x8x32xbf16, #tpu.memory_space<vmem>>, vector<1x8x32xbf16>
    %18 = vector.shape_cast %17 : vector<1x8x32xbf16> to vector<8x32xbf16>
    %cst_12 = arith.constant dense<0.000000e+00> : vector<256x32xf32>
    %19 = tpu.matmul %16, %18, %cst_12 {dimension_numbers = #tpu.dot_dimension_numbers<[1], [0], [0], [1], [0, 0, 1, 1], [], []>} : vector<256x8xbf16>, vector<8x32xbf16>, vector<256x32xf32> -> vector<256x32xf32>
    %20 = arith.addf %14, %19 : vector<256x32xf32>
    %21 = vector.extract_strided_slice %1 {offsets = [1, 0, 0], sizes = [16, 16, 8], strides = [1, 1, 1]} : vector<18x18x8xbf16> to vector<16x16x8xbf16>
    %22 = vector.shape_cast %21 : vector<16x16x8xbf16> to vector<256x8xbf16>
    %c3 = arith.constant 3 : index
    %c0_13 = arith.constant 0 : index
    %c0_14 = arith.constant 0 : index
    %23 = vector.load %arg2[%c3, %c0_13, %c0_14] : memref<9x8x32xbf16, #tpu.memory_space<vmem>>, vector<1x8x32xbf16>
    %24 = vector.shape_cast %23 : vector<1x8x32xbf16> to vector<8x32xbf16>
    %cst_15 = arith.constant dense<0.000000e+00> : vector<256x32xf32>
    %25 = tpu.matmul %22, %24, %cst_15 {dimension_numbers = #tpu.dot_dimension_numbers<[1], [0], [0], [1], [0, 0, 1, 1], [], []>} : vector<256x8xbf16>, vector<8x32xbf16>, vector<256x32xf32> -> vector<256x32xf32>
    %26 = arith.addf %20, %25 : vector<256x32xf32>
    %27 = vector.extract_strided_slice %1 {offsets = [1, 1, 0], sizes = [16, 16, 8], strides = [1, 1, 1]} : vector<18x18x8xbf16> to vector<16x16x8xbf16>
    %28 = vector.shape_cast %27 : vector<16x16x8xbf16> to vector<256x8xbf16>
    %c4 = arith.constant 4 : index
    %c0_16 = arith.constant 0 : index
    %c0_17 = arith.constant 0 : index
    %29 = vector.load %arg2[%c4, %c0_16, %c0_17] : memref<9x8x32xbf16, #tpu.memory_space<vmem>>, vector<1x8x32xbf16>
    %30 = vector.shape_cast %29 : vector<1x8x32xbf16> to vector<8x32xbf16>
    %cst_18 = arith.constant dense<0.000000e+00> : vector<256x32xf32>
    %31 = tpu.matmul %28, %30, %cst_18 {dimension_numbers = #tpu.dot_dimension_numbers<[1], [0], [0], [1], [0, 0, 1, 1], [], []>} : vector<256x8xbf16>, vector<8x32xbf16>, vector<256x32xf32> -> vector<256x32xf32>
    %32 = arith.addf %26, %31 : vector<256x32xf32>
    %33 = vector.extract_strided_slice %1 {offsets = [1, 2, 0], sizes = [16, 16, 8], strides = [1, 1, 1]} : vector<18x18x8xbf16> to vector<16x16x8xbf16>
    %34 = vector.shape_cast %33 : vector<16x16x8xbf16> to vector<256x8xbf16>
    %c5 = arith.constant 5 : index
    %c0_19 = arith.constant 0 : index
    %c0_20 = arith.constant 0 : index
    %35 = vector.load %arg2[%c5, %c0_19, %c0_20] : memref<9x8x32xbf16, #tpu.memory_space<vmem>>, vector<1x8x32xbf16>
    %36 = vector.shape_cast %35 : vector<1x8x32xbf16> to vector<8x32xbf16>
    %cst_21 = arith.constant dense<0.000000e+00> : vector<256x32xf32>
    %37 = tpu.matmul %34, %36, %cst_21 {dimension_numbers = #tpu.dot_dimension_numbers<[1], [0], [0], [1], [0, 0, 1, 1], [], []>} : vector<256x8xbf16>, vector<8x32xbf16>, vector<256x32xf32> -> vector<256x32xf32>
    %38 = arith.addf %32, %37 : vector<256x32xf32>
    %39 = vector.extract_strided_slice %1 {offsets = [2, 0, 0], sizes = [16, 16, 8], strides = [1, 1, 1]} : vector<18x18x8xbf16> to vector<16x16x8xbf16>
    %40 = vector.shape_cast %39 : vector<16x16x8xbf16> to vector<256x8xbf16>
    %c6 = arith.constant 6 : index
    %c0_22 = arith.constant 0 : index
    %c0_23 = arith.constant 0 : index
    %41 = vector.load %arg2[%c6, %c0_22, %c0_23] : memref<9x8x32xbf16, #tpu.memory_space<vmem>>, vector<1x8x32xbf16>
    %42 = vector.shape_cast %41 : vector<1x8x32xbf16> to vector<8x32xbf16>
    %cst_24 = arith.constant dense<0.000000e+00> : vector<256x32xf32>
    %43 = tpu.matmul %40, %42, %cst_24 {dimension_numbers = #tpu.dot_dimension_numbers<[1], [0], [0], [1], [0, 0, 1, 1], [], []>} : vector<256x8xbf16>, vector<8x32xbf16>, vector<256x32xf32> -> vector<256x32xf32>
    %44 = arith.addf %38, %43 : vector<256x32xf32>
    %45 = vector.extract_strided_slice %1 {offsets = [2, 1, 0], sizes = [16, 16, 8], strides = [1, 1, 1]} : vector<18x18x8xbf16> to vector<16x16x8xbf16>
    %46 = vector.shape_cast %45 : vector<16x16x8xbf16> to vector<256x8xbf16>
    %c7 = arith.constant 7 : index
    %c0_25 = arith.constant 0 : index
    %c0_26 = arith.constant 0 : index
    %47 = vector.load %arg2[%c7, %c0_25, %c0_26] : memref<9x8x32xbf16, #tpu.memory_space<vmem>>, vector<1x8x32xbf16>
    %48 = vector.shape_cast %47 : vector<1x8x32xbf16> to vector<8x32xbf16>
    %cst_27 = arith.constant dense<0.000000e+00> : vector<256x32xf32>
    %49 = tpu.matmul %46, %48, %cst_27 {dimension_numbers = #tpu.dot_dimension_numbers<[1], [0], [0], [1], [0, 0, 1, 1], [], []>} : vector<256x8xbf16>, vector<8x32xbf16>, vector<256x32xf32> -> vector<256x32xf32>
    %50 = arith.addf %44, %49 : vector<256x32xf32>
    %51 = vector.extract_strided_slice %1 {offsets = [2, 2, 0], sizes = [16, 16, 8], strides = [1, 1, 1]} : vector<18x18x8xbf16> to vector<16x16x8xbf16>
    %52 = vector.shape_cast %51 : vector<16x16x8xbf16> to vector<256x8xbf16>
    %c8 = arith.constant 8 : index
    %c0_28 = arith.constant 0 : index
    %c0_29 = arith.constant 0 : index
    %53 = vector.load %arg2[%c8, %c0_28, %c0_29] : memref<9x8x32xbf16, #tpu.memory_space<vmem>>, vector<1x8x32xbf16>
    %54 = vector.shape_cast %53 : vector<1x8x32xbf16> to vector<8x32xbf16>
    %cst_30 = arith.constant dense<0.000000e+00> : vector<256x32xf32>
    %55 = tpu.matmul %52, %54, %cst_30 {dimension_numbers = #tpu.dot_dimension_numbers<[1], [0], [0], [1], [0, 0, 1, 1], [], []>} : vector<256x8xbf16>, vector<8x32xbf16>, vector<256x32xf32> -> vector<256x32xf32>
    %56 = arith.addf %50, %55 : vector<256x32xf32>
    %c0_31 = arith.constant 0 : index
    %c0_32 = arith.constant 0 : index
    %57 = vector.load %arg3[%c0_31, %c0_32] : memref<1x32xf32, #tpu.memory_space<vmem>>, vector<1x32xf32>
    %58 = vector.broadcast %57 : vector<1x32xf32> to vector<256x32xf32>
    %59 = arith.addf %56, %58 : vector<256x32xf32>
    %cst_33 = arith.constant 0.000000e+00 : f32
    %60 = vector.broadcast %cst_33 : f32 to vector<256x32xf32>
    %61 = arith.maximumf %59, %60 : vector<256x32xf32>
    %62 = vector.shape_cast %61 : vector<256x32xf32> to vector<8x2x16x32xf32>
    %63 = vector.extract_strided_slice %62 {offsets = [0, 0, 0, 0], sizes = [8, 1, 16, 32], strides = [1, 1, 1, 1]} : vector<8x2x16x32xf32> to vector<8x1x16x32xf32>
    %64 = vector.shape_cast %63 : vector<8x1x16x32xf32> to vector<8x16x32xf32>
    %65 = vector.extract_strided_slice %62 {offsets = [0, 1, 0, 0], sizes = [8, 1, 16, 32], strides = [1, 1, 1, 1]} : vector<8x2x16x32xf32> to vector<8x1x16x32xf32>
    %66 = vector.shape_cast %65 : vector<8x1x16x32xf32> to vector<8x16x32xf32>
    %67 = arith.maximumf %64, %66 : vector<8x16x32xf32>
    %68 = vector.shape_cast %67 : vector<8x16x32xf32> to vector<8x8x2x32xf32>
    %69 = vector.extract_strided_slice %68 {offsets = [0, 0, 0, 0], sizes = [8, 8, 1, 32], strides = [1, 1, 1, 1]} : vector<8x8x2x32xf32> to vector<8x8x1x32xf32>
    %70 = vector.shape_cast %69 : vector<8x8x1x32xf32> to vector<8x8x32xf32>
    %71 = vector.extract_strided_slice %68 {offsets = [0, 0, 1, 0], sizes = [8, 8, 1, 32], strides = [1, 1, 1, 1]} : vector<8x8x2x32xf32> to vector<8x8x1x32xf32>
    %72 = vector.shape_cast %71 : vector<8x8x1x32xf32> to vector<8x8x32xf32>
    %73 = arith.maximumf %70, %72 : vector<8x8x32xf32>
    %74 = vector.shape_cast %73 : vector<8x8x32xf32> to vector<8x256xf32>
    %75 = arith.truncf %74 : vector<8x256xf32> to vector<8x256xbf16>
    %c0_34 = arith.constant 0 : index
    %c0_35 = arith.constant 0 : index
    %c0_36 = arith.constant 0 : index
    %76 = vector.load %arg4[%c0_34, %c0_35, %c0_36] : memref<1x8x256xbf16, #tpu.memory_space<vmem>>, vector<1x8x256xbf16>
    %77 = vector.shape_cast %76 : vector<1x8x256xbf16> to vector<8x256xbf16>
    %78 = vector.shape_cast %75 : vector<8x256xbf16> to vector<1x8x256xbf16>
    tpu.vector_store %arg4[%c0_34, %c0_35, %c0_36], %78 {strides = array<i32>} : memref<1x8x256xbf16, #tpu.memory_space<vmem>>, vector<1x8x256xbf16>,
    return
  }
  func.func @transform_0(%arg0: i32) -> (i32, i32, i32, i32) {
    %c0_i32 = arith.constant 0 : i32
    %c0_i32_0 = arith.constant 0 : i32
    %c0_i32_1 = arith.constant 0 : i32
    %c0_i32_2 = arith.constant 0 : i32
    return %arg0, %c0_i32, %c0_i32_0, %c0_i32_1 : i32, i32, i32, i32
  }
  func.func @transform_1(%arg0: i32) -> (i32, i32, i32) {
    %c0_i32 = arith.constant 0 : i32
    %c0_i32_0 = arith.constant 0 : i32
    %c0_i32_1 = arith.constant 0 : i32
    %c0_i32_2 = arith.constant 0 : i32
    return %c0_i32, %c0_i32_0, %c0_i32_1 : i32, i32, i32
  }
  func.func @transform_2(%arg0: i32) -> (i32, i32) {
    %c0_i32 = arith.constant 0 : i32
    %c0_i32_0 = arith.constant 0 : i32
    %c0_i32_1 = arith.constant 0 : i32
    return %c0_i32, %c0_i32_0 : i32, i32
  }
  func.func @transform_3(%arg0: i32) -> (i32, i32, i32) {
    %c0_i32 = arith.constant 0 : i32
    %c0_i32_0 = arith.constant 0 : i32
    %c0_i32_1 = arith.constant 0 : i32
    return %arg0, %c0_i32, %c0_i32_0 : i32, i32, i32
  }
}

module attributes {stable_mosaic.version = 11 : i64} {
  func.func @_mlp_kernel(%arg0: i32, %arg1: memref<2x1024xbf16, #tpu.memory_space<vmem>>, %arg2: memref<1024x256xbf16, #tpu.memory_space<vmem>>, %arg3: memref<1x256xf32, #tpu.memory_space<vmem>>, %arg4: memref<256x8xf32, #tpu.memory_space<vmem>>, %arg5: memref<1x8xf32, #tpu.memory_space<vmem>>, %arg6: memref<2x8xf32, #tpu.memory_space<vmem>>, %arg7: memref<2x256xf32, #tpu.memory_space<vmem>>) attributes {dimension_semantics = [#tpu.dimension_semantics<arbitrary>], iteration_bounds = array<i64: 1>, scalar_prefetch = 0 : i64, scratch_operands = 1 : i64, tpu.core_type = #tpu.core_type<tc>, window_params = [{transform_indices = @transform_0, window_bounds = array<i64: 2, 1024>}, {transform_indices = @transform_1, window_bounds = array<i64: 1024, 256>}, {pipeline_mode = #tpu.pipeline_mode<synchronous>, transform_indices = @transform_2, window_bounds = array<i64: 1, 256>}, {pipeline_mode = #tpu.pipeline_mode<synchronous>, transform_indices = @transform_3, window_bounds = array<i64: 256, 8>}, {pipeline_mode = #tpu.pipeline_mode<synchronous>, transform_indices = @transform_4, window_bounds = array<i64: 1, 8>}, {pipeline_mode = #tpu.pipeline_mode<synchronous>, transform_indices = @transform_5, window_bounds = array<i64: 2, 8>}]} {
    %c0_i32 = arith.constant 0 : i32
    %0 = arith.cmpi eq, %arg0, %c0_i32 : i32
    %1 = arith.extui %0 : i1 to i32
    %c0_i32_0 = arith.constant 0 : i32
    %2 = arith.cmpi ne, %1, %c0_i32_0 : i32
    scf.if %2 {
      %cst_10 = arith.constant 0.000000e+00 : f32
      %12 = vector.broadcast %cst_10 : f32 to vector<2x256xf32>
      %c0_11 = arith.constant 0 : index
      %c0_12 = arith.constant 0 : index
      %13 = vector.load %arg7[%c0_11, %c0_12] : memref<2x256xf32, #tpu.memory_space<vmem>>, vector<2x256xf32>
      tpu.vector_store %arg7[%c0_11, %c0_12], %12 {strides = array<i32>} : memref<2x256xf32, #tpu.memory_space<vmem>>, vector<2x256xf32>,
    } else {
    }
    %c0 = arith.constant 0 : index
    %c0_1 = arith.constant 0 : index
    %3 = vector.load %arg7[%c0, %c0_1] : memref<2x256xf32, #tpu.memory_space<vmem>>, vector<2x256xf32>
    %c0_2 = arith.constant 0 : index
    %c0_3 = arith.constant 0 : index
    %4 = vector.load %arg1[%c0_2, %c0_3] : memref<2x1024xbf16, #tpu.memory_space<vmem>>, vector<2x1024xbf16>
    %c0_4 = arith.constant 0 : index
    %c0_5 = arith.constant 0 : index
    %5 = vector.load %arg2[%c0_4, %c0_5] : memref<1024x256xbf16, #tpu.memory_space<vmem>>, vector<1024x256xbf16>
    %cst = arith.constant dense<0.000000e+00> : vector<2x256xf32>
    %6 = tpu.matmul %4, %5, %cst {dimension_numbers = #tpu.dot_dimension_numbers<[1], [0], [0], [1], [0, 0, 1, 1], [], []>} : vector<2x1024xbf16>, vector<1024x256xbf16>, vector<2x256xf32> -> vector<2x256xf32>
    %7 = arith.addf %3, %6 : vector<2x256xf32>
    %c0_6 = arith.constant 0 : index
    %c0_7 = arith.constant 0 : index
    %8 = vector.load %arg7[%c0_6, %c0_7] : memref<2x256xf32, #tpu.memory_space<vmem>>, vector<2x256xf32>
    tpu.vector_store %arg7[%c0_6, %c0_7], %7 {strides = array<i32>} : memref<2x256xf32, #tpu.memory_space<vmem>>, vector<2x256xf32>,
    %c0_i32_8 = arith.constant 0 : i32
    %9 = arith.cmpi eq, %arg0, %c0_i32_8 : i32
    %10 = arith.extui %9 : i1 to i32
    %c0_i32_9 = arith.constant 0 : i32
    %11 = arith.cmpi ne, %10, %c0_i32_9 : i32
    scf.if %11 {
      %c0_10 = arith.constant 0 : index
      %c0_11 = arith.constant 0 : index
      %12 = vector.load %arg7[%c0_10, %c0_11] : memref<2x256xf32, #tpu.memory_space<vmem>>, vector<2x256xf32>
      %c0_12 = arith.constant 0 : index
      %c0_13 = arith.constant 0 : index
      %13 = vector.load %arg3[%c0_12, %c0_13] : memref<1x256xf32, #tpu.memory_space<vmem>>, vector<1x256xf32>
      %14 = vector.broadcast %13 : vector<1x256xf32> to vector<2x256xf32>
      %15 = arith.addf %12, %14 : vector<2x256xf32>
      %cst_14 = arith.constant 0.000000e+00 : f32
      %16 = vector.broadcast %cst_14 : f32 to vector<2x256xf32>
      %17 = arith.maximumf %15, %16 : vector<2x256xf32>
      %c0_15 = arith.constant 0 : index
      %c0_16 = arith.constant 0 : index
      %18 = vector.load %arg4[%c0_15, %c0_16] : memref<256x8xf32, #tpu.memory_space<vmem>>, vector<256x8xf32>
      %cst_17 = arith.constant dense<0.000000e+00> : vector<2x8xf32>
      %19 = tpu.matmul %17, %18, %cst_17 {dimension_numbers = #tpu.dot_dimension_numbers<[1], [0], [0], [1], [0, 0, 1, 1], [], []>} : vector<2x256xf32>, vector<256x8xf32>, vector<2x8xf32> -> vector<2x8xf32>
      %c0_18 = arith.constant 0 : index
      %c0_19 = arith.constant 0 : index
      %20 = vector.load %arg5[%c0_18, %c0_19] : memref<1x8xf32, #tpu.memory_space<vmem>>, vector<1x8xf32>
      %21 = vector.broadcast %20 : vector<1x8xf32> to vector<2x8xf32>
      %22 = arith.addf %19, %21 : vector<2x8xf32>
      %c0_20 = arith.constant 0 : index
      %c0_21 = arith.constant 0 : index
      %23 = vector.load %arg6[%c0_20, %c0_21] : memref<2x8xf32, #tpu.memory_space<vmem>>, vector<2x8xf32>
      tpu.vector_store %arg6[%c0_20, %c0_21], %22 {strides = array<i32>} : memref<2x8xf32, #tpu.memory_space<vmem>>, vector<2x8xf32>,
    } else {
    }
    return
  }
  func.func @transform_0(%arg0: i32) -> (i32, i32) {
    %c0_i32 = arith.constant 0 : i32
    %c0_i32_0 = arith.constant 0 : i32
    return %c0_i32, %arg0 : i32, i32
  }
  func.func @transform_1(%arg0: i32) -> (i32, i32) {
    %c0_i32 = arith.constant 0 : i32
    %c0_i32_0 = arith.constant 0 : i32
    return %arg0, %c0_i32 : i32, i32
  }
  func.func @transform_2(%arg0: i32) -> (i32, i32) {
    %c0_i32 = arith.constant 0 : i32
    %c0_i32_0 = arith.constant 0 : i32
    %c0_i32_1 = arith.constant 0 : i32
    return %c0_i32, %c0_i32_0 : i32, i32
  }
  func.func @transform_3(%arg0: i32) -> (i32, i32) {
    %c0_i32 = arith.constant 0 : i32
    %c0_i32_0 = arith.constant 0 : i32
    %c0_i32_1 = arith.constant 0 : i32
    return %c0_i32, %c0_i32_0 : i32, i32
  }
  func.func @transform_4(%arg0: i32) -> (i32, i32) {
    %c0_i32 = arith.constant 0 : i32
    %c0_i32_0 = arith.constant 0 : i32
    %c0_i32_1 = arith.constant 0 : i32
    return %c0_i32, %c0_i32_0 : i32, i32
  }
  func.func @transform_5(%arg0: i32) -> (i32, i32) {
    %c0_i32 = arith.constant 0 : i32
    %c0_i32_0 = arith.constant 0 : i32
    %c0_i32_1 = arith.constant 0 : i32
    return %c0_i32, %c0_i32_0 : i32, i32
  }
}

</mosaic_0001>

<bundles_post_ra>
// kernel: simple_cnn_forward.4
= control target key start
LH: loop header
LB: loop body
LE: loop exit
PB: predicated region body
PF: predicated region fallthrough
CT: control target
= control target key end

     0   :  { %8 = vsyncpa [#allocation3], 0  ;;  %s1663_s12 = smov 0   ;;  %s2099_s0 = inlined_call_operand.vmem [shape: bf16[2,10,10,32], index: 0, kind: input, shape index: {}]   ;;  %s2100_s1 = inlined_call_operand.vmem [shape: bf16[9,32,64], index: 1, kind: input, shape index: {}]   ;;  %s2101_s2 = inlined_call_operand.hbm [shape: f32[1,64], index: 2, kind: input, shape index: {}]   ;;  %s2102_s3 = inlined_call_operand.vmem [shape: bf16[2,4,256], index: 3, kind: output, shape index: {}]  }
   0x1 LB: > { %s1367_s13 = sadd.s32 4294967295, %s1638_s12   ;;  %p1369_p0 = scmp.ge.s32.totalorder %s1638_s12, 1  ;;  %s1638_s12 = sphi %s1663_s12, %s14_s12  }
   0x2   : > { %p113_p1 = scmp.lt.s32.totalorder %s1638_s12, 3  ;;  %s128_s16 = sshll.u32 %s2101_s2, 4  ;;  %s129_s16 = int_to_ptr.hbm [resolvable:$true] %s128_s16 }
   0x3   : > { %p1579_p3 = scmp.eq.s32.totalorder %s1367_s13, 0  ;;  %s1640_s17 = smov [#allocation2]  }
   0x4   : > { %p114_p2 = pnand %p1369_p0, %p113_p1  ;;  %s130_s18 = sshll.u32 %s1640_s17, 4  ;;  %s131_s18 = int_to_ptr.vmem [resolvable:$true] %s130_s18 }
   0x6   : > { %p1575_p4 = pneg %p114_p2  ;;  %151 = sbr.rel (%p114_p2) target bundleno = 499 (0x1f3), region = 32 }
   0x8   : > { %p1576_p5 = pnand %p1579_p3, %p1575_p4 }
   0xa   : > { %1578 = dma.hbm_to_vmem [thread:$0]  (!%p1576_p5), %s129_s16, 16, %s131_s18, [#allocation3]  }
   0xb   : > { %1633 = dma.done.wait (%p1579_p3), [#allocation3], 16  }
   0xc   : > { %1635 = vsyncadd (%p1579_p3), [#allocation3], 4294967280  ;;  %p176_p6 = scmp.lt.s32.totalorder %s1367_s13, 1  ;;  %vm211_vm0 = vsmask.f32 3328  ;;  %v1549_v0 = vld [vmem:[%s2100_s1 + $0x18] sm:$0xff] }
   0xd   : > { %v1548_v1 = vld [vmem:[%s2100_s1 + $0x10] sm:$0xff]  ;;  %vm212_vm1 = vsmask.f32 7440  ;;  %1564 = vmatpush.bf16.msra.mxu1 %v1549_v0  ;;  %1565 = vmatpush.bf16.msra.mxu2 %v1549_v0  ;;  %vm355_vm2 = vcmask 261120   ;;  %v1551_v29 = vld [vmem:[%s2100_s1 + $0x28] sm:$0xff]  ;;  %v1553_v36 = vld [vmem:[%s2100_s1 + $0x38] sm:$0xff] }
   0xe   : > { %s2108_s13 = smov (!%p176_p6, %s1367_s13), 1  ;;  %1566 = vmatpush.bf16.msra.mxu3 %v1549_v0  ;;  %374 = vmatpush.bf16.msra.mxu0 %v1549_v0  ;;  %vm1731_vm3 = vmor %vm211_vm0, %vm212_vm1  ;;  %v1547_v45 = vld [vmem:[%s2100_s1 + $0x8] sm:$0xff]  ;;  %vm478_vm4 = vcmask 1042432   ;;  %v1550_v58 = vld [vmem:[%s2100_s1 + $0x20] sm:$0xff]  ;;  %vm479_vm5 = vcmask 1046532   ;;  %vm1158_vm7 = vcmask 1041409  }
   0xf   : > { %s1570_s19 = smul.u32 80, %s2108_s13  ;;  %v1552_v59 = vld [vmem:[%s2100_s1 + $0x30] sm:$0xff]  ;;  %v1555_v0 = vld [vmem:[%s2100_s1 + $0x48] sm:$0xff]  ;;  %vm1829_vm6 = vmor %vm478_vm4, %vm479_vm5  ;;  %vm1160_vm8 = vcmask 1043459   ;;  %vm1162_vm9 = vcmask 1045509   ;;  %vm1164_vm10 = vcmask 1047559  }
  0x10   : > { %vm1224_vm11 = vcmask 1047556   ;;  %vm1288_vm12 = vcmask 523264   ;;  %s1545_s8 = sshll.u32 %s2108_s13, 2  ;;  %vm1294_vm13 = vcmask 1041408  }
  0x11   : > { %s1680_s22 = scalar_lea.vmem %s2099_s0, %s1570_s19  ;;  %1567 = vmatpush.bf16.msra.mxu1 %v1548_v1  ;;  %1568 = vmatpush.bf16.msra.mxu2 %v1548_v1  ;;  %s185_s11 = scalar_lea.vmem %s2102_s3, %s1545_s8 }
  0x12   : > { %v1689_v2 = vld [vmem:[%s1680_s22 + $0x10] sm:$0xf]  ;;  %v1692_v3 = vld [vmem:[%s1680_s22 + $0x14] sm:$0x1]  ;;  %v1695_v4 = vld [vmem:[%s1680_s22 + $0x18] sm:$0xf]  ;;  %1569 = vmatpush.bf16.msra.mxu3 %v1548_v1  ;;  %375 = vmatpush.bf16.msra.mxu0 %v1548_v1 }
  0x13   : > { %v1698_v5 = vld [vmem:[%s1680_s22 + $0x1c] sm:$0x1]  ;;  %v243_v6 = vshrl.u32 %v1689_v2, 16  ;;  %v246_v7 = vshll.u32 %v1689_v2, 16  ;;  %v252_v8 = vshll.u32 %v1692_v3, 16  ;;  %v257_v9 = vshrl.u32 %v1695_v4, 16 }
  0x14   : > { %v1705_v10 = vld [vmem:[%s1680_s22 + $0x20] sm:$0xf]  ;;  %v260_v11 = vshll.u32 %v1695_v4, 16  ;;  %v266_v12 = vshll.u32 %v1698_v5, 16  ;;  %v1710_v13 = vld [vmem:[%s1680_s22 + $0x24] sm:$0x1] }
  0x15   : > { %v1713_v14 = vld [vmem:[%s1680_s22 + $0x28] sm:$0xf]  ;;  %v245_v15 = vrot.slane %v243_v6, 4  ;;  %v248_v16 = vrot.slane %v246_v7, 5  ;;  %v254_v17 = vrot.slane %v252_v8, 5  ;;  %v259_v18 = vrot.slane %v257_v9, 4  ;;  %560 = vmatpush.bf16.msrb.mxu2 %v1551_v29  ;;  %447 = vmatpush.bf16.msrb.mxu1 %v1547_v45 }
  0x16   : > { %v1716_v19 = vld [vmem:[%s1680_s22 + $0x2c] sm:$0x1]  ;;  %v262_v20 = vrot.slane %v260_v11, 5  ;;  %v268_v21 = vrot.slane %v266_v12, 5  ;;  %v271_v22 = vshrl.u32 %v1705_v10, 16  ;;  %v274_v23 = vshll.u32 %v1705_v10, 16  ;;  %632 = vmatpush.bf16.msrb.mxu3 %v1553_v36  ;;  %717 = vmatpush.bf16.msrb.mxu0 %v1555_v0 }
  0x17   : > { %v249_v24 = vor.u32 %v248_v16, %v245_v15  ;;  %v280_v25 = vshll.u32 %v1710_v13, 16  ;;  %v285_v26 = vshrl.u32 %v1713_v14, 16  ;;  %v288_v27 = vshll.u32 %v1713_v14, 16  ;;  %v1724_v28 = vld [vmem:[%s1680_s22 + $0x30] sm:$0xf]  ;;  %v1546_v1 = vld [vmem:[%s2100_s1] sm:$0xff] }
  0x18   : > { %v263_v31 = vor.u32 %v262_v20, %v259_v18  ;;  %v273_v32 = vrot.slane %v271_v22, 4  ;;  %v276_v33 = vrot.slane %v274_v23, 5  ;;  %v294_v34 = vshll.u32 %v1716_v19, 16  ;;  %v1737_v35 = vld [vmem:[%s1680_s22 + $0x34] sm:$0x1]  ;;  %v1554_v18 = vld [vmem:[%s2100_s1 + $0x40] sm:$0xff] }
  0x19   : > { %v250_v37 = vrot.slane %v249_v24, 4  ;;  %v282_v38 = vrot.slane %v280_v25, 5  ;;  %v287_v39 = vrot.slane %v285_v26, 4  ;;  %v290_v40 = vrot.slane %v288_v27, 5  ;;  %v1749_v48 = vld [vmem:[%s1680_s22 + $0x38] sm:$0xf]  ;;  %561 = vmatpush.bf16.msrb.mxu2 %v1550_v58  ;;  %448 = vmatpush.bf16.msrb.mxu1 %v1546_v1 }
  0x1a   : > { %v264_v41 = vrot.slane %v263_v31, 4  ;;  %v277_v42 = vor.u32 %v276_v33, %v273_v32  ;;  %v296_v43 = vrot.slane %v294_v34, 5  ;;  %v299_v44 = vshrl.u32 %v1724_v28, 16  ;;  %v1752_v49 = vld [vmem:[%s1680_s22 + $0x3c] sm:$0x1]  ;;  %633 = vmatpush.bf16.msrb.mxu3 %v1552_v59  ;;  %v1559_v31 = vld [vmem:[%s2100_s1 + $0x68] sm:$0xff]  ;;  %718 = vmatpush.bf16.msrb.mxu0 %v1554_v18 }
  0x1b   : > { %v255_v46 = vsel %vm1731_vm3, %v250_v37, %v254_v17  ;;  %v291_v47 = vor.u32 %v290_v40, %v287_v39  ;;  %v302_v50 = vshll.u32 %v1724_v28, 16  ;;  %v308_v51 = vshll.u32 %v1737_v35, 16  ;;  %v1761_v56 = vld [vmem:[%s1680_s22] sm:$0xf]  ;;  %v1764_v57 = vld [vmem:[%s1680_s22 + $0x4] sm:$0x1] }
  0x1c   : > { %v269_v52 = vsel %vm1731_vm3, %v264_v41, %v268_v21  ;;  %v1758_v53 = vunpack.c.l.b16 %v255_v46  ;;  %v278_v54 = vrot.slane %v277_v42, 4  ;;  %v301_v55 = vrot.slane %v299_v44, 4  ;;  %v1794_v17 = vld [vmem:[%s1680_s22 + $0x8] sm:$0xf]  ;;  %v1557_v20 = vld [vmem:[%s2100_s1 + $0x58] sm:$0xff] }
  0x1d   : > { %v1772_v60 = vunpack.c.l.b16 %v269_v52  ;;  %v292_v61 = vrot.slane %v291_v47, 4  ;;  %v304_v62 = vrot.slane %v302_v50, 5  ;;  %v310_v63 = vrot.slane %v308_v51, 5  ;;  %v190_v34 = vld [vmem:[%s1680_s22 + $0xc] sm:$0x1]  ;;  %v1561_v1 = vld [vmem:[%s2100_s1 + $0x78] sm:$0xff] }
  0x1e   : > { %v283_v6 = vsel %vm1731_vm3, %v278_v54, %v282_v38  ;;  %v313_v7 = vshrl.u32 %v1749_v48, 16  ;;  %v316_v8 = vshll.u32 %v1749_v48, 16  ;;  %v322_v9 = vshll.u32 %v1752_v49, 16 }
  0x1f   : > { %v1787_v11 = vpack.c.b16 %v1772_v60, %v1758_v53  ;;  %v297_v12 = vsel %vm1731_vm3, %v292_v61, %v296_v43  ;;  %v1791_v15 = vunpack.c.l.b16 %v283_v6  ;;  %v305_v16 = vor.u32 %v304_v62, %v301_v55 }
  0x20   : > { %v1802_v21 = vunpack.c.l.b16 %v297_v12  ;;  %v315_v22 = vrot.slane %v313_v7, 4  ;;  %v318_v23 = vrot.slane %v316_v8, 5  ;;  %v324_v24 = vrot.slane %v322_v9, 5 }
  0x21   : > { %1390 = vmatmul.msk.bf16.vlgmr.msra.gmra.mxu1 %vm355_vm2, %v1787_v11  ;;  %v306_v25 = vrot.slane %v305_v16, 4  ;;  %v215_v26 = vshrl.u32 %v1761_v56, 16  ;;  %v218_v27 = vshll.u32 %v1761_v56, 16  ;;  %v224_v29 = vshll.u32 %v1764_v57, 16 }
  0x22   : > { %v1814_v32 = vpack.c.b16 %v1802_v21, %v1791_v15  ;;  %v319_v33 = vor.u32 %v318_v23, %v315_v22  ;;  %v229_v36 = vshrl.u32 %v1794_v17, 16  ;;  %v232_v37 = vshll.u32 %v1794_v17, 16  ;;  %793 = vmatpush.bf16.msra.mxu1 %v1557_v20 }
  0x23   : > { %v311_v38 = vsel %vm1731_vm3, %v306_v25, %v310_v63  ;;  %v217_v39 = vrot.slane %v215_v26, 4  ;;  %v220_v40 = vrot.slane %v218_v27, 5  ;;  %v226_v42 = vrot.slane %v224_v29, 5 }
  0x24   : > { %1391 = vmatmul.msk.bf16.vlgmr.msra.gmra.mxu2 %vm355_vm2, %v1814_v32  ;;  %v320_v41 = vrot.slane %v319_v33, 4  ;;  %v231_v43 = vrot.slane %v229_v36, 4  ;;  %v234_v44 = vrot.slane %v232_v37, 5  ;;  %v1823_v45 = vunpack.c.l.b16 %v311_v38 }
  0x25   : > { %v221_v46 = vor.u32 %v220_v40, %v217_v39  ;;  %v238_v47 = vshll.u32 %v190_v34, 16  ;;  %v483_v50 = vrot.slane %v1764_v57, 5  ;;  %853 = vmatpush.bf16.msra.mxu2 %v1559_v31  ;;  %v487_v54 = vrot.slane %v190_v34, 5  ;;  %v1560_v40 = vld [vmem:[%s2100_s1 + $0x70] sm:$0xff] }
  0x26   : > { %v325_v51 = vsel %vm1731_vm3, %v320_v41, %v324_v24  ;;  %v235_v52 = vor.u32 %v234_v44, %v231_v43  ;;  %v1405_v62 = vrot.slane %v1761_v56, 9  ;;  %v405_v57 = vunpack.c.l.b16 %v1761_v56  ;;  %v1562_v41 = vld [vmem:[%s2100_s1 + $0x80] sm:$0xff] }
  0x27   : > { %v1833_v58 = vunpack.c.l.b16 %v325_v51  ;;  %v222_v59 = vrot.slane %v221_v46, 4  ;;  %v240_v61 = vrot.slane %v238_v47, 5  ;;  %v1406_v0 = vrot.slane %v1794_v17, 9 }
  0x28   : > { %v236_v63 = vrot.slane %v235_v52, 4  ;;  %v406_v8 = vunpack.c.l.b16 %v1794_v17  ;;  %v484_v9 = vsel %vm1829_vm6, %v1405_v62, %v483_v50  ;;  %v1563_v17 = vld [vmem:[%s2100_s1 + $0x88] sm:$0xff]  ;;  %v407_v26 = vunpack.c.l.b16 %v1689_v2 }
  0x29   : > { %v1843_v6 = vpack.c.b16 %v1833_v58, %v1823_v45  ;;  %v227_v7 = vsel %vm1731_vm3, %v222_v59, %v226_v42  ;;  %v1854_v16 = vsel %vm1829_vm6, %v1406_v0, %v487_v54  ;;  %v518_v20 = vunpack.c.l.b16 %v484_v9 }
  0x2a   : > { %v241_v56 = vsel %vm1731_vm3, %v236_v63, %v240_v61  ;;  %v331_v12 = vunpack.c.l.b16 %v227_v7  ;;  %v519_v22 = vunpack.c.l.b16 %v1854_v16  ;;  %v413_v24 = vpack.c.b16 %v406_v8, %v405_v57  ;;  %v205_v16 = vld [vmem:[%s1680_s22 + $0x48] sm:$0xf] }
  0x2b   : > { %1392 = vmatmul.msk.bf16.vlgmr.msra.gmra.mxu3 %vm355_vm2, %v1843_v6  ;;  %v332_v18 = vunpack.c.l.b16 %v241_v56  ;;  %v1407_v27 = vrot.slane %v1689_v2, 9  ;;  %v491_v29 = vrot.slane %v1692_v3, 5  ;;  %v1408_v31 = vrot.slane %v1695_v4, 9  ;;  %v1558_v3 = vld [vmem:[%s2100_s1 + $0x60] sm:$0xff] }
  0x2c   : > { %926 = vmatpush.bf16.msra.mxu3 %v1561_v1  ;;  %v526_v25 = vpack.c.b16 %v519_v22, %v518_v20  ;;  %v495_v33 = vrot.slane %v1698_v5, 5  ;;  %v598_v34 = vpack.c.b16 %v407_v26, %v406_v8  ;;  %v408_v36 = vunpack.c.l.b16 %v1695_v4  ;;  %854 = vmatpush.bf16.msra.mxu2 %v1558_v3 }
  0x2d   : > { %v339_v23 = vpack.c.b16 %v332_v18, %v331_v12  ;;  %v1875_v37 = vsel %vm1829_vm6, %v1407_v27, %v491_v29  ;;  %v683_v2 = vpack.c.b16 %v1758_v53, %v332_v18  ;;  %v1556_v53 = vld [vmem:[%s2100_s1 + $0x50] sm:$0xff]  ;;  %v409_v43 = vunpack.c.l.b16 %v1705_v10 }
  0x2e   : > { %v1879_v38 = vsel %vm1829_vm6, %v1408_v31, %v495_v33  ;;  %v520_v5 = vunpack.c.l.b16 %v1875_v37  ;;  %v1888_v39 = vpack.c.b16 %v408_v36, %v407_v26  ;;  %794 = vmatpush.bf16.msra.mxu1 %v1556_v53  ;;  %v1409_v44 = vrot.slane %v1705_v10, 9 }
  0x2f   : > { %1389 = vmatmul.msk.bf16.vlgmr.msra.gmra.mxu0 %vm355_vm2, %v339_v23  ;;  %v521_v4 = vunpack.c.l.b16 %v1879_v38  ;;  %v499_v46 = vrot.slane %v1710_v13, 5  ;;  %v1410_v47 = vrot.slane %v1713_v14, 9  ;;  %v503_v50 = vrot.slane %v1716_v19, 5 }
  0x30   : > { %990 = vmatpush.bf16.msra.mxu0 %v1563_v17  ;;  %927 = vmatpush.bf16.msra.mxu3 %v1560_v40  ;;  %v599_v51 = vpack.c.b16 %v409_v43, %v408_v36  ;;  %v410_v52 = vunpack.c.l.b16 %v1713_v14  ;;  %v684_v10 = vpack.c.b16 %v1791_v15, %v1772_v60  ;;  %v1926_v14 = vld [vmem:[%s1680_s22 + $0x40] sm:$0xf]  ;;  %v411_v63 = vunpack.c.l.b16 %v1724_v28  ;;  %v204_v17 = vld [vmem:[%s1680_s22 + $0x44] sm:$0x1] }
  0x31   : > { %1401 = vmatmul.msk.bf16.vlgmr.msrb.gmra.mxu1 %vm355_vm2, %v413_v24  ;;  %v1904_v42 = vpack.c.b16 %v521_v4, %v520_v5  ;;  %v500_v54 = vsel %vm1829_vm6, %v1409_v44, %v499_v46  ;;  %v504_v59 = vsel %vm1829_vm6, %v1410_v47, %v503_v50  ;;  %v664_v57 = vshrl.u32 %v1926_v14, 16 }
  0x32   : > { %v522_v61 = vunpack.c.l.b16 %v500_v54  ;;  %v523_v13 = vunpack.c.l.b16 %v504_v59  ;;  %v415_v62 = vpack.c.b16 %v410_v52, %v409_v43  ;;  %v667_v0 = vshll.u32 %v1926_v14, 16 }
  0x33   : > { %v1411_v60 = vrot.slane %v1724_v28, 9  ;;  %v507_v15 = vrot.slane %v1737_v35, 5  ;;  %v1412_v1 = vrot.slane %v1749_v48, 9  ;;  %v511_v7 = vrot.slane %v1752_v49, 5 }
  0x34   : > { %1425 = vmatmul.msk.bf16.vlgmr.msrb.gmra.mxu2 %vm355_vm2, %v526_v25  ;;  %991 = vmatpush.bf16.msra.mxu0 %v1562_v41  ;;  %v528_v19 = vpack.c.b16 %v523_v13, %v522_v61  ;;  %v600_v8 = vpack.c.b16 %v411_v63, %v410_v52  ;;  %v666_v9 = vrot.slane %v664_v57, 4  ;;  %v669_v56 = vrot.slane %v667_v0, 5 }
  0x35   : > { %v412_v12 = vunpack.c.l.b16 %v1749_v48  ;;  %v508_v18 = vsel %vm1829_vm6, %v1411_v60, %v507_v15  ;;  %v512_v20 = vsel %vm1829_vm6, %v1412_v1, %v511_v7  ;;  %v685_v28 = vpack.c.b16 %v1823_v45, %v1802_v21 }
  0x36   : > { %v524_v35 = vunpack.c.l.b16 %v508_v18  ;;  %v525_v23 = vunpack.c.l.b16 %v512_v20  ;;  %v670_v49 = vor.u32 %v669_v56, %v666_v9  ;;  %v673_v24 = vshll.u32 %v204_v17, 16 }
  0x37   : > { %v416_v25 = vpack.c.b16 %v412_v12, %v411_v63  ;;  %v597_v29 = vunpack.c.l.b16 %v1926_v14  ;;  %v760_v36 = vpack.c.b16 %v522_v61, %v521_v4  ;;  %v1461_v37 = vrot.slane %v1926_v14, 9 }
  0x38   : > { %v529_v48 = vpack.c.b16 %v525_v23, %v524_v35  ;;  %v671_v26 = vrot.slane %v670_v49, 4  ;;  %v675_v27 = vrot.slane %v673_v24, 5  ;;  %v751_v38 = vrot.slane %v204_v17, 5 }
  0x39   : > { %v601_v21 = vpack.c.b16 %v597_v29, %v412_v12  ;;  %v830_v53 = vunpack.c.l.b16 %v205_v16  ;;  %v1510_v50 = vrot.slane %v205_v16, 9 }
  0x3a   : > { %v676_v31 = vsel %vm1731_vm3, %v671_v26, %v675_v27  ;;  %v752_v4 = vsel %vm1829_vm6, %v1461_v37, %v751_v38 }
  0x3b   : > { %1441 = vmatmul.msk.bf16.vlgmr.msrb.gmra.mxu3 %vm355_vm2, %v598_v34  ;;  %v682_v45 = vunpack.c.l.b16 %v676_v31  ;;  %v759_v34 = vpack.c.b16 %v520_v5, %v519_v22  ;;  %v885_v22 = vshrl.u32 %v205_v16, 16  ;;  %v206_v5 = vld [vmem:[%s1680_s22 + $0x4c] sm:$0x1]  ;;  %v758_v40 = vunpack.c.l.b16 %v752_v4  ;;  %s1642_s22 = smov 64  }
  0x3c   : > { %v831_v46 = vpack.c.b16 %v830_v53, %v597_v29 }
  0x3d   : > { %v686_v33 = vpack.c.b16 %v682_v45, %v1833_v58  ;;  %v761_v58 = vpack.c.b16 %v524_v35, %v523_v13  ;;  %v762_v43 = vpack.c.b16 %v758_v40, %v525_v23 }
  0x3f   : > { %1457 = vmatmul.msk.bf16.vlgmr.msrb.gmra.mxu0 %vm355_vm2, %v683_v2  ;;  %v887_v2 = vrot.slane %v885_v22, 4 }
  0x41   : > { %1402 = vmatmul.msk.bf16.gmra.mxu1 %vm355_vm2, %v1888_v39 }
  0x44   : > { %1426 = vmatmul.msk.bf16.gmra.mxu2 %vm355_vm2, %v1904_v42 }
  0x4b   : > { %1442 = vmatmul.msk.bf16.gmra.mxu3 %vm355_vm2, %v599_v51  ;;  %v960_v51 = vrot.slane %v206_v5, 5 }
  0x4f   : > { %1458 = vmatmul.msk.bf16.gmra.mxu0 %vm355_vm2, %v684_v10 }
  0x51   : > { %1403 = vmatmul.msk.bf16.gmra.mxu1 %vm355_vm2, %v415_v62 }
  0x54   : > { %1427 = vmatmul.msk.bf16.gmra.mxu2 %vm355_vm2, %v528_v19 }
  0x5b   : > { %1443 = vmatmul.msk.bf16.gmra.mxu3 %vm355_vm2, %v600_v8 }
  0x5f   : > { %1459 = vmatmul.msk.bf16.gmra.mxu0 %vm355_vm2, %v685_v28 }
  0x61   : > { %1404 = vmatmul.msk.bf16.gmra.mxu1 %vm355_vm2, %v416_v25 }
  0x64   : > { %1428 = vmatmul.msk.bf16.gmra.mxu2 %vm355_vm2, %v529_v48 }
  0x6b   : > { %1444 = vmatmul.msk.bf16.gmra.mxu3 %vm355_vm2, %v601_v21 }
  0x6f   : > { %1460 = vmatmul.msk.bf16.gmra.mxu0 %vm355_vm2, %v686_v33 }
  0x71   : > { %1474 = vmatmul.msk.bf16.vlgmr.msra.gmra.mxu1 %vm355_vm2, %v759_v34 }
  0x74   : > { %1490 = vmatmul.msk.bf16.vlgmr.msra.gmra.mxu2 %vm355_vm2, %v1888_v39  ;;  %v894_v39 = vshll.u32 %v206_v5, 16 }
  0x7b   : > { %1506 = vmatmul.msk.bf16.vlgmr.msra.gmra.mxu3 %vm355_vm2, %v1787_v11  ;;  %v888_v11 = vshll.u32 %v205_v16, 16 }
  0x7d   : > { %v890_v3 = vrot.slane %v888_v11, 5 }
  0x7f   : > { %1523 = vmatmul.msk.bf16.vlgmr.msra.gmra.mxu0 %vm355_vm2, %v1904_v42  ;;  %v896_v42 = vrot.slane %v894_v39, 5 }
  0x81   : > { %1475 = vmatmul.msk.bf16.gmra.mxu1 %vm355_vm2, %v760_v36 }
  0x84   : > { %1491 = vmatmul.msk.bf16.gmra.mxu2 %vm355_vm2, %v415_v62 }
  0x8b   : > { %1507 = vmatmul.msk.bf16.gmra.mxu3 %vm355_vm2, %v1814_v32  ;;  %v891_v32 = vor.u32 %v890_v3, %v887_v2 }
  0x8d   : > { %v892_v41 = vrot.slane %v891_v32, 4 }
  0x8f   : > { %1524 = vmatmul.msk.bf16.gmra.mxu0 %vm355_vm2, %v528_v19  ;;  %v897_v47 = vsel %vm1731_vm3, %v892_v41, %v896_v42 }
  0x90   : > { %v903_v52 = vunpack.c.l.b16 %v897_v47 }
  0x91   : > { %1476 = vmatmul.msk.bf16.gmra.mxu1 %vm355_vm2, %v761_v58 }
  0x92   : > { %v904_v59 = vpack.c.b16 %v903_v52, %v682_v45 }
  0x94   : > { %1492 = vmatmul.msk.bf16.gmra.mxu2 %vm355_vm2, %v416_v25 }
  0x9b   : > { %1508 = vmatmul.msk.bf16.gmra.mxu3 %vm355_vm2, %v1843_v6  ;;  %v961_v6 = vsel %vm1829_vm6, %v1510_v50, %v960_v51 }
  0x9c   : > { %v967_v10 = vunpack.c.l.b16 %v961_v6 }
  0x9e   : > { %v382_v44 = vpop.f32.mrf.mxu1  ;;  %v968_v13 = vpack.c.b16 %v967_v10, %v758_v40 }
  0x9f   : > { %1525 = vmatmul.msk.bf16.gmra.mxu0 %vm355_vm2, %v529_v48 }
  0xa1   : > { %1477 = vmatmul.msk.bf16.gmra.mxu1 %vm355_vm2, %v762_v43 }
  0xa4   : > { %1493 = vmatmul.msk.bf16.gmra.mxu2 %vm355_vm2, %v831_v46 }
  0xa6   : > { %v1988_v54 = vpop.f32.mrf.mxu1 }
  0xa7   : > { %v387_v61 = vpop.f32.mrf.mxu2 }
  0xab   : > { %1509 = vmatmul.msk.bf16.gmra.mxu3 %vm355_vm2, %v904_v59 }
  0xac   : > { %v377_v30 = vpop.f32.mrf.mxu0 }
  0xae   : > { %v392_v62 = vpop.f32.mrf.mxu3  ;;  %v450_v19 = vpop.f32.mrf.mxu1 }
  0xaf   : > { %1526 = vmatmul.msk.bf16.gmra.mxu0 %vm355_vm2, %v968_v13  ;;  %v389_v14 = vpop.f32.mrf.mxu2  ;;  %v451_v63 = vadd.f32 %v450_v19, %v377_v30 }
  0xb4   : > { %v379_v57 = vpop.f32.mrf.mxu0 }
  0xb6   : > { %v1992_v0 = vpop.f32.mrf.mxu3  ;;  %v452_v55 = vpop.f32.mrf.mxu1 }
  0xb7   : > { %v563_v60 = vpop.f32.mrf.mxu2  ;;  %v453_v15 = vadd.f32 %v452_v55, %v379_v57 }
  0xb8   : > { %v583_v1 = vadd.f32 %v563_v60, %v451_v63 }
  0xbc   : > { %v720_v7 = vpop.f32.mrf.mxu0 }
  0xbe   : > { %v635_v8 = vpop.f32.mrf.mxu3  ;;  %v455_v9 = vpop.f32.mrf.mxu1 }
  0xbf   : > { %v655_v56 = vadd.f32 %v635_v8, %v583_v1  ;;  %v565_v12 = vpop.f32.mrf.mxu2  ;;  %v456_v18 = vadd.f32 %v455_v9, %v382_v44 }
  0xc0   : > { %v584_v20 = vadd.f32 %v565_v12, %v453_v15 }
  0xc1   : > { %v740_v17 = vadd.f32 %v720_v7, %v655_v56  ;;  %v2009_v56 = vld [vmem:[#allocation2] ss:$0 sm:$0xff] }
  0xc4   : > { %v722_v28 = vpop.f32.mrf.mxu0 }
  0xc6   : > { %v637_v35 = vpop.f32.mrf.mxu3  ;;  %v457_v23 = vpop.f32.mrf.mxu1 }
  0xc7   : > { %v656_v49 = vadd.f32 %v637_v35, %v584_v20  ;;  %v568_v24 = vpop.f32.mrf.mxu2  ;;  %v458_v8 = vadd.f32 %v457_v23, %v1988_v54 }
  0xc8   : > { %v585_v25 = vadd.f32 %v568_v24, %v456_v18 }
  0xc9   : > { %v741_v48 = vadd.f32 %v722_v28, %v656_v49 }
  0xcc   : > { %v725_v26 = vpop.f32.mrf.mxu0 }
  0xce   : > { %v640_v27 = vpop.f32.mrf.mxu3  ;;  %v460_v29 = vpop.f32.mrf.mxu1 }
  0xcf   : > { %v657_v31 = vadd.f32 %v640_v27, %v585_v25  ;;  %v570_v21 = vpop.f32.mrf.mxu2  ;;  %v461_v45 = vadd.f32 %v460_v29, %v387_v61 }
  0xd0   : > { %v586_v20 = vadd.f32 %v570_v21, %v458_v8 }
  0xd1   : > { %v742_v33 = vadd.f32 %v725_v26, %v657_v31 }
  0xd4   : > { %v727_v34 = vpop.f32.mrf.mxu0 }
  0xd6   : > { %v642_v36 = vpop.f32.mrf.mxu3  ;;  %v462_v58 = vpop.f32.mrf.mxu1 }
  0xd7   : > { %v573_v16 = vpop.f32.mrf.mxu2  ;;  %v463_v22 = vadd.f32 %v462_v58, %v389_v14  ;;  %v658_v24 = vadd.f32 %v642_v36, %v586_v20 }
  0xd8   : > { %v587_v11 = vadd.f32 %v573_v16, %v461_v45 }
  0xd9   : > { %v743_v45 = vadd.f32 %v727_v34, %v658_v24 }
  0xdc   : > { %v730_v37 = vpop.f32.mrf.mxu0 }
  0xde   : > { %v645_v38 = vpop.f32.mrf.mxu3  ;;  %v465_v2 = vpop.f32.mrf.mxu1 }
  0xdf   : > { %v659_v3 = vadd.f32 %v645_v38, %v587_v11  ;;  %v575_v5 = vpop.f32.mrf.mxu2  ;;  %v466_v4 = vadd.f32 %v465_v2, %v392_v62 }
  0xe0   : > { %v588_v32 = vadd.f32 %v575_v5, %v463_v22 }
  0xe1   : > { %v1994_v39 = vadd.f32 %v730_v37, %v659_v3 }
  0xe4   : > { %v732_v40 = vpop.f32.mrf.mxu0 }
  0xe6   : > { %v647_v53 = vpop.f32.mrf.mxu3  ;;  %v1996_v41 = vpop.f32.mrf.mxu1 }
  0xe7   : > { %v660_v42 = vadd.f32 %v647_v53, %v588_v32  ;;  %v578_v43 = vpop.f32.mrf.mxu2 }
  0xe8   : > { %v589_v44 = vadd.f32 %v578_v43, %v466_v4 }
  0xe9   : > { %v1998_v46 = vadd.f32 %v732_v40, %v660_v42 }
  0xec   : > { %v735_v47 = vpop.f32.mrf.mxu0 }
  0xee   : > { %v650_v50 = vpop.f32.mrf.mxu3  ;;  %v796_v51 = vpop.f32.mrf.mxu1 }
  0xef   : > { %v661_v52 = vadd.f32 %v650_v50, %v589_v44  ;;  %v2000_v6 = vpop.f32.mrf.mxu2  ;;  %v816_v62 = vadd.f32 %v796_v51, %v740_v17 }
  0xf1   : > { %v2002_v59 = vadd.f32 %v735_v47, %v661_v52 }
  0xf4   : > { %v2004_v10 = vpop.f32.mrf.mxu0 }
  0xf6   : > { %v2006_v61 = vpop.f32.mrf.mxu3  ;;  %v798_v13 = vpop.f32.mrf.mxu1 }
  0xf7   : > { %v856_v30 = vpop.f32.mrf.mxu2  ;;  %v817_v15 = vadd.f32 %v798_v13, %v741_v48 }
  0xf8   : > { %v876_v14 = vadd.f32 %v856_v30, %v816_v62 }
  0xfc   : > { %v993_v19 = vpop.f32.mrf.mxu0 }
  0xfe   : > { %v929_v63 = vpop.f32.mrf.mxu3  ;;  %v801_v57 = vpop.f32.mrf.mxu1 }
  0xff   : > { %v858_v55 = vpop.f32.mrf.mxu2  ;;  %v949_v60 = vadd.f32 %v929_v63, %v876_v14  ;;  %v818_v26 = vadd.f32 %v801_v57, %v742_v33 }
 0x100   : > { %v877_v1 = vadd.f32 %v858_v55, %v817_v15  ;;  %v468_v15 = vadd.f32 %v1996_v41, %v1992_v0 }
 0x101   : > { %v1013_v9 = vadd.f32 %v993_v19, %v949_v60 }
 0x103   : > { %v1025_v17 = vadd.f32 %v2009_v56, %v1013_v9 }
 0x104   : > { %v995_v7 = vpop.f32.mrf.mxu0 }
 0x105   : > { %v1033_v27 = vmax.f32 %v1025_v17, 0.0 }
 0x106   : > { %v931_v12 = vpop.f32.mrf.mxu3  ;;  %v803_v18 = vpop.f32.mrf.mxu1 }
 0x107   : > { %v950_v28 = vadd.f32 %v931_v12, %v877_v1  ;;  %v861_v35 = vpop.f32.mrf.mxu2  ;;  %v819_v21 = vadd.f32 %v803_v18, %v743_v45 }
 0x108   : > { %v878_v31 = vadd.f32 %v861_v35, %v818_v26 }
 0x109   : > { %v1014_v49 = vadd.f32 %v995_v7, %v950_v28 }
 0x10b   : > { %v1026_v25 = vadd.f32 %v2009_v56, %v1014_v49 }
 0x10c   : > { %v998_v48 = vpop.f32.mrf.mxu0 }
 0x10d   : > { %v1034_v29 = vmax.f32 %v1026_v25, 0.0  ;;  %v590_v25 = vadd.f32 %v2000_v6, %v468_v15 }
 0x10e   : > { %v934_v54 = vpop.f32.mrf.mxu3  ;;  %v806_v16 = vpop.f32.mrf.mxu1 }
 0x10f   : > { %v1041_v23 = vmax.f32 %v1033_v27, %v1034_v29  ;;  %v863_v58 = vpop.f32.mrf.mxu2  ;;  %v951_v22 = vadd.f32 %v934_v54, %v878_v31  ;;  %v820_v47 = vadd.f32 %v806_v16, %v1994_v39  ;;  %v662_v6 = vadd.f32 %v2006_v61, %v590_v25 }
 0x110   : > { %v879_v38 = vadd.f32 %v863_v58, %v819_v21 }
 0x111   : > { %v1049_v11 = vrot.slane %v1041_v23, 2  ;;  %v1051_v37 = vrot.slane %v1041_v23, 6  ;;  %v1015_v3 = vadd.f32 %v998_v48, %v951_v22  ;;  %v1050_v40 = vrot.slane %v1041_v23, 4 }
 0x112   : > { %v1527_v51 = vrot.slane %v1041_v23, 9 }
 0x113   : > { %v1528_v36 = vrot.slane %v1049_v11, 9  ;;  %v1530_v5 = vrot.slane %v1051_v37, 9  ;;  %v1027_v53 = vadd.f32 %v2009_v56, %v1015_v3  ;;  %v1529_v52 = vrot.slane %v1050_v40, 9 }
 0x114   : > { %v1000_v2 = vpop.f32.mrf.mxu0  ;;  %v1121_v39 = vmax.f32 %v1041_v23, %v1527_v51 }
 0x115   : > { %v1122_v34 = vmax.f32 %v1049_v11, %v1528_v36  ;;  %v1124_v44 = vmax.f32 %v1051_v37, %v1530_v5  ;;  %v1035_v62 = vmax.f32 %v1027_v53, 0.0  ;;  %v1123_v1 = vmax.f32 %v1050_v40, %v1529_v52 }
 0x116   : > { %v936_v4 = vpop.f32.mrf.mxu3  ;;  %v808_v43 = vpop.f32.mrf.mxu1  ;;  %v1641_v37 = vmov 1934713408  }
 0x117   : > { %v952_v33 = vadd.f32 %v936_v4, %v879_v38  ;;  %v866_v32 = vpop.f32.mrf.mxu2  ;;  %v2016_v14 = vrot.slane %v1122_v34, 7  ;;  %v2018_v63 = vrot.slane %v1124_v44, 7  ;;  %v821_v18 = vadd.f32 %v808_v43, %v1998_v46 }
 0x118   : > { %v880_v30 = vadd.f32 %v866_v32, %v820_v47  ;;  %v1227_v38 = vunpack.c.l.s4 %v1641_v37 }
 0x119   : > { %v1016_v42 = vadd.f32 %v1000_v2, %v952_v33  ;;  %v1159_v20 = vsel %vm1158_vm7, %v2016_v14, %v1121_v39  ;;  %v1169_v28 = vsel %vm1158_vm7, %v2018_v63, %v1123_v1 }
 0x11a   : > { %v1161_v46 = vsel %vm1160_vm8, %v2016_v14, %v1159_v20  ;;  %v1170_v31 = vsel %vm1160_vm8, %v2018_v63, %v1169_v28  ;;  %v2048_v47 = vunpack.c.0.s8 %v1227_v38 }
 0x11b   : > { %v1028_v50 = vadd.f32 %v2009_v56, %v1016_v42  ;;  %v1163_v5 = vsel %vm1162_vm9, %v2016_v14, %v1161_v46  ;;  %v1171_v4 = vsel %vm1162_vm9, %v2018_v63, %v1170_v31 }
 0x11c   : > { %v1003_v13 = vpop.f32.mrf.mxu0 }
 0x11d   : > { %v1036_v19 = vmax.f32 %v1028_v50, 0.0 }
 0x11e   : > { %v939_v57 = vpop.f32.mrf.mxu3  ;;  %v811_v41 = vpop.f32.mrf.mxu1 }
 0x11f   : > { %v1042_v55 = vmax.f32 %v1035_v62, %v1036_v19  ;;  %v868_v60 = vpop.f32.mrf.mxu2  ;;  %v953_v7 = vadd.f32 %v939_v57, %v880_v30  ;;  %v822_v42 = vadd.f32 %v811_v41, %v2002_v59  ;;  %v1165_v57 = vsel %vm1164_vm10, %v2016_v14, %v1163_v5 }
 0x120   : > { %v881_v0 = vadd.f32 %v868_v60, %v821_v18  ;;  %v1172_v59 = vsel %vm1164_vm10, %v2018_v63, %v1171_v4  ;;  %v747_v60 = vadd.f32 %v2004_v10, %v662_v6 }
 0x121   : > { %v1052_v8 = vrot.slane %v1042_v55, 2  ;;  %v1053_v9 = vrot.slane %v1042_v55, 4  ;;  %v1054_v12 = vrot.slane %v1042_v55, 6  ;;  %v1531_v35 = vrot.slane %v1042_v55, 9 }
 0x122   : > { %v1017_v26 = vadd.f32 %v1003_v13, %v953_v7 }
 0x123   : > { %v1532_v17 = vrot.slane %v1052_v8, 9  ;;  %v1533_v49 = vrot.slane %v1053_v9, 9  ;;  %v1534_v24 = vrot.slane %v1054_v12, 9  ;;  %v1125_v54 = vmax.f32 %v1042_v55, %v1531_v35 }
 0x124   : > { %v1005_v48 = vpop.f32.mrf.mxu0  ;;  %v1029_v11 = vadd.f32 %v2009_v56, %v1017_v26 }
 0x125   : > { %v1126_v27 = vmax.f32 %v1052_v8, %v1532_v17  ;;  %v1128_v29 = vmax.f32 %v1054_v12, %v1534_v24  ;;  %v1127_v45 = vmax.f32 %v1053_v9, %v1533_v49 }
 0x126   : > { %v941_v23 = vpop.f32.mrf.mxu3  ;;  %v1037_v44 = vmax.f32 %v1029_v11, 0.0  ;;  %v813_v30 = vpop.f32.mrf.mxu1 }
 0x127   : > { %v1175_v58 = vrot.slane %v1126_v27, 7  ;;  %v1182_v16 = vrot.slane %v1128_v29, 7  ;;  %v954_v22 = vadd.f32 %v941_v23, %v881_v0  ;;  %v871_v21 = vpop.f32.mrf.mxu2  ;;  %v823_v9 = vadd.f32 %v813_v30, %v747_v60 }
 0x128   : > { %v882_v13 = vadd.f32 %v871_v21, %v822_v42 }
 0x129   : > { %v1176_v2 = vsel %vm1158_vm7, %v1175_v58, %v1125_v54  ;;  %v1183_v3 = vsel %vm1158_vm7, %v1182_v16, %v1127_v45  ;;  %v1018_v36 = vadd.f32 %v1005_v48, %v954_v22 }
 0x12a   : > { %v1177_v33 = vsel %vm1160_vm8, %v1175_v58, %v1176_v2  ;;  %v1184_v61 = vsel %vm1160_vm8, %v1182_v16, %v1183_v3 }
 0x12b   : > { %v1178_v32 = vsel %vm1162_vm9, %v1175_v58, %v1177_v33  ;;  %v1185_v40 = vsel %vm1162_vm9, %v1182_v16, %v1184_v61  ;;  %v1030_v53 = vadd.f32 %v2009_v56, %v1018_v36 }
 0x12c   : > { %v1179_v43 = vsel %vm1164_vm10, %v1175_v58, %v1178_v32  ;;  %v1186_v34 = vsel %vm1164_vm10, %v1182_v16, %v1185_v40  ;;  %v1008_v62 = vpop.f32.mrf.mxu0 }
 0x12d   : > { %v1223_v50 = vrot.slane %v1179_v43, 4  ;;  %v1240_v51 = vrot.slane %v1186_v34, 4  ;;  %v1038_v52 = vmax.f32 %v1030_v53, 0.0 }
 0x12e   : > { %v944_v19 = vpop.f32.mrf.mxu3 }
 0x12f   : > { %v1043_v55 = vmax.f32 %v1037_v44, %v1038_v52  ;;  %v1225_v15 = vsel %vm1224_vm11, %v1223_v50, %v1165_v57  ;;  %v2057_v39 = vsel %vm1224_vm11, %v1240_v51, %v1172_v59  ;;  %v873_v1 = vpop.f32.mrf.mxu2  ;;  %v955_v8 = vadd.f32 %v944_v19, %v882_v13 }
 0x130   : > { %v2060_v7 = vperm.slane %v1225_v15, %v2048_v47  ;;  %v883_v14 = vadd.f32 %v873_v1, %v823_v9 }
 0x131   : > { %v1055_v12 = vrot.slane %v1043_v55, 2  ;;  %v1057_v18 = vrot.slane %v1043_v55, 6  ;;  %v1019_v63 = vadd.f32 %v1008_v62, %v955_v8  ;;  %v1056_v0 = vrot.slane %v1043_v55, 4 }
 0x132   : > { %1258 = vst [vmem:[#allocation1] ss:$4 sm:$0xff] %v2060_v7  ;;  %v1535_v29 = vrot.slane %v1043_v55, 9  ;;  %v1230_v1 = vrot.slane %v2060_v7, 4 }
 0x133   : > { %v1536_v10 = vrot.slane %v1055_v12, 9  ;;  %v1538_v17 = vrot.slane %v1057_v18, 9  ;;  %v1031_v49 = vadd.f32 %v2009_v56, %v1019_v63  ;;  %v1537_v46 = vrot.slane %v1056_v0, 9 }
 0x134   : > { %v1010_v35 = vpop.f32.mrf.mxu0  ;;  %v1129_v22 = vmax.f32 %v1043_v55, %v1535_v29  ;;  %v1231_v9 = vsel %vm1224_vm11, 0.0, %v1230_v1 }
 0x135   : > { %v1130_v25 = vmax.f32 %v1055_v12, %v1536_v10  ;;  %v1132_v26 = vmax.f32 %v1057_v18, %v1538_v17  ;;  %v1039_v48 = vmax.f32 %v1031_v49, 0.0  ;;  %v1131_v21 = vmax.f32 %v1056_v0, %v1537_v46 }
 0x136   : > { %v946_v20 = vpop.f32.mrf.mxu3  ;;  %v1245_v18 = vperm.slane %v2057_v39, %v2048_v47 }
 0x137   : > { %v956_v28 = vadd.f32 %v946_v20, %v883_v14  ;;  %v1189_v54 = vrot.slane %v1130_v25, 7  ;;  %v1196_v23 = vrot.slane %v1132_v26, 7 }
 0x139   : > { %v1020_v24 = vadd.f32 %v1010_v35, %v956_v28  ;;  %v1197_v2 = vsel %vm1158_vm7, %v1196_v23, %v1131_v21  ;;  %v1246_v28 = vrot.slane %v1245_v18, 4 }
 0x13a   : > { %v1198_v40 = vsel %vm1160_vm8, %v1196_v23, %v1197_v2 }
 0x13b   : > { %v1032_v41 = vadd.f32 %v2009_v56, %v1020_v24  ;;  %v1190_v56 = vsel %vm1158_vm7, %v1189_v54, %v1129_v22  ;;  %v1199_v50 = vsel %vm1162_vm9, %v1196_v23, %v1198_v40  ;;  %v1247_v7 = vsel %vm1224_vm11, 0.0, %v1246_v28 }
 0x13c   : > { %v1191_v32 = vsel %vm1160_vm8, %v1189_v54, %v1190_v56  ;;  %v1200_v59 = vsel %vm1164_vm10, %v1196_v23, %v1199_v50 }
 0x13d   : > { %v1040_v27 = vmax.f32 %v1032_v41, 0.0  ;;  %v1192_v44 = vsel %vm1162_vm9, %v1189_v54, %v1191_v32 }
 0x13e   : > { %v1193_v57 = vsel %vm1164_vm10, %v1189_v54, %v1192_v44 }
 0x13f   : > { %v1044_v31 = vmax.f32 %v1039_v48, %v1040_v27 }
 0x141   : > { %v1058_v45 = vrot.slane %v1044_v31, 2  ;;  %v1059_v58 = vrot.slane %v1044_v31, 4  ;;  %v1060_v16 = vrot.slane %v1044_v31, 6  ;;  %v1539_v6 = vrot.slane %v1044_v31, 9 }
 0x143   : > { %v1540_v11 = vrot.slane %v1058_v45, 9  ;;  %v1541_v37 = vrot.slane %v1059_v58, 9  ;;  %v1542_v38 = vrot.slane %v1060_v16, 9  ;;  %v1133_v5 = vmax.f32 %v1044_v31, %v1539_v6 }
 0x145   : > { %v1134_v3 = vmax.f32 %v1058_v45, %v1540_v11  ;;  %v1136_v36 = vmax.f32 %v1060_v16, %v1542_v38  ;;  %v1135_v4 = vmax.f32 %v1059_v58, %v1541_v37 }
 0x147   : > { %v1203_v33 = vrot.slane %v1134_v3, 7  ;;  %v1210_v61 = vrot.slane %v1136_v36, 7 }
 0x149   : > { %v1204_v53 = vsel %vm1158_vm7, %v1203_v33, %v1133_v5  ;;  %v1211_v42 = vsel %vm1158_vm7, %v1210_v61, %v1135_v4 }
 0x14a   : > { %v1205_v43 = vsel %vm1160_vm8, %v1203_v33, %v1204_v53  ;;  %v1212_v34 = vsel %vm1160_vm8, %v1210_v61, %v1211_v42 }
 0x14b   : > { %v1206_v51 = vsel %vm1162_vm9, %v1203_v33, %v1205_v43  ;;  %v1213_v52 = vsel %vm1162_vm9, %v1210_v61, %v1212_v34 }
 0x14c   : > { %v1207_v13 = vsel %vm1164_vm10, %v1203_v33, %v1206_v51  ;;  %v1214_v30 = vsel %vm1164_vm10, %v1210_v61, %v1213_v52 }
 0x14d   : > { %v1232_v62 = vrot.slane %v1207_v13, 4  ;;  %v1248_v19 = vrot.slane %v1214_v30, 4 }
 0x14f   : > { %v1233_v55 = vsel %vm1224_vm11, %v1232_v62, %v1193_v57  ;;  %v1249_v60 = vsel %vm1224_vm11, %v1248_v19, %v1200_v59 }
 0x150   : > { %v1237_v15 = vperm.slane %v1233_v55, %v2048_v47  ;;  %v1253_v63 = vperm.slane %v1249_v60, %v2048_v47 }
 0x152   : > { %1260 = vst [vmem:[#allocation1 + $0x1] ss:$4 sm:$0xff] %v1237_v15  ;;  %v1238_v8 = vrot.slane %v1237_v15, 4  ;;  %v1254_v10 = vrot.slane %v1253_v63, 4 }
 0x154   : > { %v1239_v12 = vsel %vm1224_vm11, 0.0, %v1238_v8  ;;  %v1255_v17 = vsel %vm1224_vm11, 0.0, %v1254_v10 }
 0x159   : > { %v1261_v14 = vld.sshfl [vmem:[#allocation1] sm:$0xff pattern:$0x73625140] }
 0x15a   : > { %1265 = vst [vmem:[#allocation1] ss:$4 sm:$0xff] %v1231_v9 }
 0x15b   : > { %1267 = vst [vmem:[#allocation1 + $0x1] ss:$4 sm:$0xff] %v1239_v12 }
 0x162   : > { %v1268_v20 = vld.sshfl [vmem:[#allocation1] sm:$0xff pattern:$0x73625140] }
 0x163   : > { %1274 = vst [vmem:[#allocation1] ss:$4 sm:$0xff] %v1245_v18 }
 0x164   : > { %1276 = vst [vmem:[#allocation1 + $0x1] ss:$4 sm:$0xff] %v1253_v63 }
 0x16b   : > { %v1277_v35 = vld.sshfl [vmem:[#allocation1] sm:$0xff pattern:$0x73625140] }
 0x16c   : > { %1281 = vst [vmem:[#allocation1] ss:$4 sm:$0xff] %v1247_v7 }
 0x16d   : > { %1283 = vst [vmem:[#allocation1 + $0x1] ss:$4 sm:$0xff] %v1255_v17 }
 0x174   : > { %v1284_v49 = vld.sshfl [vmem:[#allocation1] sm:$0xff pattern:$0x73625140] }
 0x175   : > { %v1592_v24 = vpack.i.bf16 %v1284_v49, %v1268_v20 }
 0x177   : > { %1593 = vrot.lane.b32.xlu0 %v1592_v24, %s1642_s22 }
 0x1e9   : > { %v1594_v39 = vpop.permute.xlu0 %1593 }
 0x1ea   : > { %v1596_v47 = vunpack.i.h.bf16 %v1594_v39  ;;  %v1595_v0 = vunpack.i.l.bf16 %v1594_v39 }
 0x1ec   : > { %v1290_v41 = vsel %vm1288_vm12, %v1277_v35, %v1596_v47  ;;  %v1289_v25 = vsel %vm1288_vm12, %v1261_v14, %v1595_v0 }
 0x1ed   : > { %v1291_v26 = vpack.c.bf16 %v1290_v41, %v1289_v25 }
 0x1ef   : > { %v1293_v48 = vrot.slane %v1291_v26, 2 }
 0x1f1   : > { %v1297_v27 = vsel %vm1294_vm13, %v1291_v26, %v1293_v48 }
 0x1f2   : > { %1299 = vst [vmem:[%s185_s11] sm:$0xf] %v1297_v27 }
 0x1f3 PF: > { %s14_s12 = sadd.s32 1, %s1638_s12  }
 0x1f4   : > { %p11_p7 = scmp.ge.s32.totalorder %s14_s12, 4  }
 0x1f6   :  { %13 = sbr.rel (!%p11_p7) target bundleno = 1 (0x1), region = 79 }
 0x1fb   :  { %1321 = vsyncpa [#allocation3], 1 }
 0x1fc   :  { %1323 = vsyncpa [#allocation3 + $0x1], 1 }

// kernel: simple_cnn_forward.5
= control target key start
LH: loop header
LB: loop body
LE: loop exit
PB: predicated region body
PF: predicated region fallthrough
CT: control target
= control target key end

     0   :  { %s2761_s0 = inlined_call_operand.vmem [shape: bf16[2,1024], index: 0, kind: input, shape index: {}]   ;;  %s2762_s1 = inlined_call_operand.vmem [shape: bf16[1024,256], index: 1, kind: input, shape index: {}]   ;;  %s2763_s2 = inlined_call_operand.vmem [shape: f32[1,256], index: 2, kind: input, shape index: {}]   ;;  %s2764_s3 = inlined_call_operand.vmem [shape: f32[256,8], index: 3, kind: input, shape index: {}]   ;;  %s2765_s4 = inlined_call_operand.vmem [shape: f32[1,8], index: 4, kind: input, shape index: {}]   ;;  %s2766_s5 = inlined_call_operand.hbm [shape: f32[2,8], index: 5, kind: output, shape index: {}]  }
   0x1   :  { %v1201_v0 = vld [vmem:[%s2762_s1 + $0x70] sm:$0xf]  ;;  %v1670_v1 = vld [vmem:[%s2762_s1 + $0x74] sm:$0xf0]  ;;  %v1193_v11 = vld [vmem:[%s2762_s1 + $0x60] sm:$0xf] }
   0x2   :  { %v1265_v2 = vld [vmem:[%s2762_s1 + $0xf0] sm:$0xf]  ;;  %v1202_v3 = vor.u32 %v1670_v1, %v1201_v0  ;;  %v1686_v4 = vld [vmem:[%s2762_s1 + $0xf4] sm:$0xf0]  ;;  %v1668_v13 = vld [vmem:[%s2762_s1 + $0x64] sm:$0xf0] }
   0x3   :  { %v1329_v5 = vld [vmem:[%s2762_s1 + $0x170] sm:$0xf]  ;;  %v1702_v6 = vld [vmem:[%s2762_s1 + $0x174] sm:$0xf0]  ;;  %v1266_v7 = vor.u32 %v1686_v4, %v1265_v2  ;;  %v1257_v14 = vld [vmem:[%s2762_s1 + $0xe0] sm:$0xf]  ;;  %v1194_v16 = vor.u32 %v1668_v13, %v1193_v11 }
   0x4   :  { %v1330_v8 = vor.u32 %v1702_v6, %v1329_v5  ;;  %v1393_v9 = vld [vmem:[%s2762_s1 + $0x1f0] sm:$0xf]  ;;  %v1718_v10 = vld [vmem:[%s2762_s1 + $0x1f4] sm:$0xf0]  ;;  %814 = vmatpush.bf16.msra.mxu0 %v1202_v3  ;;  %v1684_v15 = vld [vmem:[%s2762_s1 + $0xe4] sm:$0xf0] }
   0x5   :  { %v1394_v12 = vor.u32 %v1718_v10, %v1393_v9  ;;  %827 = vmatpush.bf16.msra.mxu1 %v1266_v7  ;;  %v1258_v17 = vor.u32 %v1684_v15, %v1257_v14  ;;  %v1321_v18 = vld [vmem:[%s2762_s1 + $0x160] sm:$0xf]  ;;  %v1700_v19 = vld [vmem:[%s2762_s1 + $0x164] sm:$0xf0]  ;;  %v1185_v23 = vld [vmem:[%s2762_s1 + $0x50] sm:$0xf] }
   0x6   :  { %840 = vmatpush.bf16.msra.mxu2 %v1330_v8  ;;  %v1385_v20 = vld [vmem:[%s2762_s1 + $0x1e0] sm:$0xf]  ;;  %v1322_v21 = vor.u32 %v1700_v19, %v1321_v18  ;;  %v1716_v22 = vld [vmem:[%s2762_s1 + $0x1e4] sm:$0xf0]  ;;  %v1666_v24 = vld [vmem:[%s2762_s1 + $0x54] sm:$0xf0] }
   0x7   :  { %853 = vmatpush.bf16.msra.mxu3 %v1394_v12  ;;  %v1386_v25 = vor.u32 %v1716_v22, %v1385_v20  ;;  %v1249_v26 = vld [vmem:[%s2762_s1 + $0xd0] sm:$0xf]  ;;  %v1682_v27 = vld [vmem:[%s2762_s1 + $0xd4] sm:$0xf0]  ;;  %v1186_v29 = vor.u32 %v1666_v24, %v1185_v23  ;;  %v1177_v35 = vld [vmem:[%s2762_s1 + $0x40] sm:$0xf] }
   0x8   :  { %v1313_v28 = vld [vmem:[%s2762_s1 + $0x150] sm:$0xf]  ;;  %815 = vmatpush.bf16.msra.mxu0 %v1194_v16  ;;  %v1698_v30 = vld [vmem:[%s2762_s1 + $0x154] sm:$0xf0]  ;;  %v1250_v33 = vor.u32 %v1682_v27, %v1249_v26  ;;  %v1664_v36 = vld [vmem:[%s2762_s1 + $0x44] sm:$0xf0] }
   0x9   :  { %v1377_v31 = vld [vmem:[%s2762_s1 + $0x1d0] sm:$0xf]  ;;  %v1714_v32 = vld [vmem:[%s2762_s1 + $0x1d4] sm:$0xf0]  ;;  %828 = vmatpush.bf16.msra.mxu1 %v1258_v17  ;;  %v1314_v34 = vor.u32 %v1698_v30, %v1313_v28  ;;  %v1241_v37 = vld [vmem:[%s2762_s1 + $0xc0] sm:$0xf]  ;;  %v1178_v44 = vor.u32 %v1664_v36, %v1177_v35 }
   0xa   :  { %841 = vmatpush.bf16.msra.mxu2 %v1322_v21  ;;  %v1378_v38 = vor.u32 %v1714_v32, %v1377_v31  ;;  %v1680_v39 = vld [vmem:[%s2762_s1 + $0xc4] sm:$0xf0]  ;;  %v1305_v40 = vld [vmem:[%s2762_s1 + $0x140] sm:$0xf]  ;;  %v1169_v47 = vld [vmem:[%s2762_s1 + $0x30] sm:$0xf] }
   0xb   :  { %854 = vmatpush.bf16.msra.mxu3 %v1386_v25  ;;  %v1696_v41 = vld [vmem:[%s2762_s1 + $0x144] sm:$0xf0]  ;;  %v1369_v42 = vld [vmem:[%s2762_s1 + $0x1c0] sm:$0xf]  ;;  %v1242_v45 = vor.u32 %v1680_v39, %v1241_v37  ;;  %v1662_v48 = vld [vmem:[%s2762_s1 + $0x34] sm:$0xf0] }
   0xc   :  { %v1712_v43 = vld [vmem:[%s2762_s1 + $0x1c4] sm:$0xf0]  ;;  %816 = vmatpush.bf16.msra.mxu0 %v1186_v29  ;;  %v1306_v46 = vor.u32 %v1696_v41, %v1305_v40  ;;  %v1233_v49 = vld [vmem:[%s2762_s1 + $0xb0] sm:$0xf]  ;;  %v1678_v51 = vld [vmem:[%s2762_s1 + $0xb4] sm:$0xf0]  ;;  %v1170_v56 = vor.u32 %v1662_v48, %v1169_v47 }
   0xd   :  { %829 = vmatpush.bf16.msra.mxu1 %v1250_v33  ;;  %v1370_v50 = vor.u32 %v1712_v43, %v1369_v42  ;;  %v1297_v52 = vld [vmem:[%s2762_s1 + $0x130] sm:$0xf]  ;;  %v1694_v53 = vld [vmem:[%s2762_s1 + $0x134] sm:$0xf0]  ;;  %v1234_v57 = vor.u32 %v1678_v51, %v1233_v49  ;;  %v1161_v59 = vld [vmem:[%s2762_s1 + $0x20] sm:$0xf] }
   0xe   :  { %842 = vmatpush.bf16.msra.mxu2 %v1314_v34  ;;  %v1361_v54 = vld [vmem:[%s2762_s1 + $0x1b0] sm:$0xf]  ;;  %v1710_v55 = vld [vmem:[%s2762_s1 + $0x1b4] sm:$0xf0]  ;;  %v1298_v58 = vor.u32 %v1694_v53, %v1297_v52  ;;  %v1660_v60 = vld [vmem:[%s2762_s1 + $0x24] sm:$0xf0] }
   0xf   :  { %855 = vmatpush.bf16.msra.mxu3 %v1378_v38  ;;  %v1225_v61 = vld [vmem:[%s2762_s1 + $0xa0] sm:$0xf]  ;;  %v1362_v62 = vor.u32 %v1710_v55, %v1361_v54  ;;  %v1676_v63 = vld [vmem:[%s2762_s1 + $0xa4] sm:$0xf0]  ;;  %v1162_v4 = vor.u32 %v1660_v60, %v1161_v59  ;;  %v1153_v7 = vld [vmem:[%s2762_s1 + $0x10] sm:$0xf] }
  0x10   :  { %817 = vmatpush.bf16.msra.mxu0 %v1178_v44  ;;  %v1289_v0 = vld [vmem:[%s2762_s1 + $0x120] sm:$0xf]  ;;  %v1692_v1 = vld [vmem:[%s2762_s1 + $0x124] sm:$0xf0]  ;;  %v1226_v5 = vor.u32 %v1676_v63, %v1225_v61  ;;  %v1658_v8 = vld [vmem:[%s2762_s1 + $0x14] sm:$0xf0] }
  0x11   :  { %830 = vmatpush.bf16.msra.mxu1 %v1242_v45  ;;  %v1353_v2 = vld [vmem:[%s2762_s1 + $0x1a0] sm:$0xf]  ;;  %v1708_v3 = vld [vmem:[%s2762_s1 + $0x1a4] sm:$0xf0]  ;;  %v1290_v6 = vor.u32 %v1692_v1, %v1289_v0  ;;  %v1217_v9 = vld [vmem:[%s2762_s1 + $0x90] sm:$0xf]  ;;  %v1154_v16 = vor.u32 %v1658_v8, %v1153_v7 }
  0x12   :  { %843 = vmatpush.bf16.msra.mxu2 %v1306_v46  ;;  %v1354_v10 = vor.u32 %v1708_v3, %v1353_v2  ;;  %v1674_v11 = vld [vmem:[%s2762_s1 + $0x94] sm:$0xf0]  ;;  %v1281_v12 = vld [vmem:[%s2762_s1 + $0x110] sm:$0xf]  ;;  %v1145_v17 = vld [vmem:[%s2762_s1] sm:$0xf] }
  0x13   :  { %856 = vmatpush.bf16.msra.mxu3 %v1370_v50  ;;  %v1690_v13 = vld [vmem:[%s2762_s1 + $0x114] sm:$0xf0]  ;;  %v1345_v14 = vld [vmem:[%s2762_s1 + $0x190] sm:$0xf]  ;;  %v1656_v18 = vld [vmem:[%s2762_s1 + $0x4] sm:$0xf0]  ;;  %v1218_v19 = vor.u32 %v1674_v11, %v1217_v9 }
  0x14   :  { %818 = vmatpush.bf16.msra.mxu0 %v1170_v56  ;;  %v1706_v15 = vld [vmem:[%s2762_s1 + $0x194] sm:$0xf0]  ;;  %v1282_v20 = vor.u32 %v1690_v13, %v1281_v12  ;;  %v1209_v21 = vld [vmem:[%s2762_s1 + $0x80] sm:$0xf]  ;;  %v1672_v22 = vld [vmem:[%s2762_s1 + $0x84] sm:$0xf0]  ;;  %v1146_v31 = vor.u32 %v1656_v18, %v1145_v17 }
  0x15   :  { %831 = vmatpush.bf16.msra.mxu1 %v1234_v57  ;;  %v1273_v23 = vld [vmem:[%s2762_s1 + $0x100] sm:$0xf]  ;;  %v1346_v24 = vor.u32 %v1706_v15, %v1345_v14  ;;  %v1688_v25 = vld [vmem:[%s2762_s1 + $0x104] sm:$0xf0]  ;;  %v1457_v28 = vld [vmem:[%s2762_s1 + $0x270] sm:$0xf]  ;;  %v1210_v35 = vor.u32 %v1672_v22, %v1209_v21 }
  0x16   :  { %844 = vmatpush.bf16.msra.mxu2 %v1298_v58  ;;  %v1337_v26 = vld [vmem:[%s2762_s1 + $0x180] sm:$0xf]  ;;  %v1704_v27 = vld [vmem:[%s2762_s1 + $0x184] sm:$0xf0]  ;;  %v1734_v29 = vld [vmem:[%s2762_s1 + $0x274] sm:$0xf0]  ;;  %v1274_v36 = vor.u32 %v1688_v25, %v1273_v23 }
  0x17   :  { %857 = vmatpush.bf16.msra.mxu3 %v1362_v62  ;;  %v1521_v30 = vld [vmem:[%s2762_s1 + $0x2f0] sm:$0xf]  ;;  %v1750_v32 = vld [vmem:[%s2762_s1 + $0x2f4] sm:$0xf0]  ;;  %v1338_v39 = vor.u32 %v1704_v27, %v1337_v26  ;;  %v1458_v40 = vor.u32 %v1734_v29, %v1457_v28  ;;  %v1449_v43 = vld [vmem:[%s2762_s1 + $0x260] sm:$0xf] }
  0x18   :  { %819 = vmatpush.bf16.msra.mxu0 %v1162_v4  ;;  %v1585_v33 = vld [vmem:[%s2762_s1 + $0x370] sm:$0xf]  ;;  %v1766_v34 = vld [vmem:[%s2762_s1 + $0x374] sm:$0xf0]  ;;  %v1522_v41 = vor.u32 %v1750_v32, %v1521_v30  ;;  %v1732_v44 = vld [vmem:[%s2762_s1 + $0x264] sm:$0xf0] }
  0x19   :  { %832 = vmatpush.bf16.msra.mxu1 %v1226_v5  ;;  %v1649_v37 = vld [vmem:[%s2762_s1 + $0x3f0] sm:$0xf]  ;;  %v1782_v38 = vld [vmem:[%s2762_s1 + $0x3f4] sm:$0xf0]  ;;  %v1586_v42 = vor.u32 %v1766_v34, %v1585_v33  ;;  %v1513_v45 = vld [vmem:[%s2762_s1 + $0x2e0] sm:$0xf]  ;;  %v1450_v52 = vor.u32 %v1732_v44, %v1449_v43 }
  0x1a   :  { %845 = vmatpush.bf16.msra.mxu2 %v1290_v6  ;;  %v1650_v46 = vor.u32 %v1782_v38, %v1649_v37  ;;  %v1748_v47 = vld [vmem:[%s2762_s1 + $0x2e4] sm:$0xf0]  ;;  %v1577_v48 = vld [vmem:[%s2762_s1 + $0x360] sm:$0xf]  ;;  %v1441_v53 = vld [vmem:[%s2762_s1 + $0x250] sm:$0xf] }
  0x1b   :  { %858 = vmatpush.bf16.msra.mxu3 %v1354_v10  ;;  %v1764_v49 = vld [vmem:[%s2762_s1 + $0x364] sm:$0xf0]  ;;  %v1641_v50 = vld [vmem:[%s2762_s1 + $0x3e0] sm:$0xf]  ;;  %v1730_v54 = vld [vmem:[%s2762_s1 + $0x254] sm:$0xf0]  ;;  %v1514_v55 = vor.u32 %v1748_v47, %v1513_v45 }
  0x1c   :  { %820 = vmatpush.bf16.msra.mxu0 %v1154_v16  ;;  %v1780_v51 = vld [vmem:[%s2762_s1 + $0x3e4] sm:$0xf0]  ;;  %v1578_v56 = vor.u32 %v1764_v49, %v1577_v48  ;;  %v1505_v57 = vld [vmem:[%s2762_s1 + $0x2d0] sm:$0xf]  ;;  %v1746_v58 = vld [vmem:[%s2762_s1 + $0x2d4] sm:$0xf0]  ;;  %v1442_v1 = vor.u32 %v1730_v54, %v1441_v53 }
  0x1d   :  { %833 = vmatpush.bf16.msra.mxu1 %v1218_v19  ;;  %v27_v59 = vld [vmem:[%s2761_s0] sm:$0xff]  ;;  %v1642_v60 = vor.u32 %v1780_v51, %v1641_v50  ;;  %v1569_v61 = vld [vmem:[%s2762_s1 + $0x350] sm:$0xf]  ;;  %v1762_v62 = vld [vmem:[%s2762_s1 + $0x354] sm:$0xf0]  ;;  %v1506_v2 = vor.u32 %v1746_v58, %v1505_v57 }
  0x1e   :  { %846 = vmatpush.bf16.msra.mxu2 %v1282_v20  ;;  %157 = vst [vmem:[#allocation1] ss:$9 sm:$0xff] %v27_v59  ;;  %v1633_v63 = vld [vmem:[%s2762_s1 + $0x3d0] sm:$0xf]  ;;  %v1778_v0 = vld [vmem:[%s2762_s1 + $0x3d4] sm:$0xf0]  ;;  %v1570_v3 = vor.u32 %v1762_v62, %v1569_v61 }
  0x1f   :  { %859 = vmatpush.bf16.msra.mxu3 %v1346_v24  ;;  %v1433_v4 = vld [vmem:[%s2762_s1 + $0x240] sm:$0xf]  ;;  %v1728_v5 = vld [vmem:[%s2762_s1 + $0x244] sm:$0xf0]  ;;  %v1634_v7 = vor.u32 %v1778_v0, %v1633_v63  ;;  %v1425_v13 = vld [vmem:[%s2762_s1 + $0x230] sm:$0xf] }
  0x20   :  { %821 = vmatpush.bf16.msra.mxu0 %v1146_v31  ;;  %v1497_v6 = vld [vmem:[%s2762_s1 + $0x2c0] sm:$0xf]  ;;  %v1744_v8 = vld [vmem:[%s2762_s1 + $0x2c4] sm:$0xf0]  ;;  %v1434_v14 = vor.u32 %v1728_v5, %v1433_v4  ;;  %v1726_v15 = vld [vmem:[%s2762_s1 + $0x234] sm:$0xf0] }
  0x21   :  { %834 = vmatpush.bf16.msra.mxu1 %v1210_v35  ;;  %v1561_v9 = vld [vmem:[%s2762_s1 + $0x340] sm:$0xf]  ;;  %v1760_v10 = vld [vmem:[%s2762_s1 + $0x344] sm:$0xf0]  ;;  %v1489_v16 = vld [vmem:[%s2762_s1 + $0x2b0] sm:$0xf]  ;;  %v1498_v18 = vor.u32 %v1744_v8, %v1497_v6  ;;  %v1426_v29 = vor.u32 %v1726_v15, %v1425_v13 }
  0x22   :  { %847 = vmatpush.bf16.msra.mxu2 %v1274_v36  ;;  %v1625_v11 = vld [vmem:[%s2762_s1 + $0x3c0] sm:$0xf]  ;;  %v1776_v12 = vld [vmem:[%s2762_s1 + $0x3c4] sm:$0xf0]  ;;  %v1742_v17 = vld [vmem:[%s2762_s1 + $0x2b4] sm:$0xf0]  ;;  %v1562_v19 = vor.u32 %v1760_v10, %v1561_v9 }
  0x23   :  { %860 = vmatpush.bf16.msra.mxu3 %v1338_v39  ;;  %v1626_v23 = vor.u32 %v1776_v12, %v1625_v11  ;;  %v1553_v24 = vld [vmem:[%s2762_s1 + $0x330] sm:$0xf]  ;;  %v1758_v25 = vld [vmem:[%s2762_s1 + $0x334] sm:$0xf0]  ;;  %v1490_v30 = vor.u32 %v1742_v17, %v1489_v16  ;;  %v1417_v32 = vld [vmem:[%s2762_s1 + $0x220] sm:$0xf] }
  0x24   :  { %866 = vmatpush.bf16.msrb.mxu0 %v1458_v40  ;;  %v1617_v27 = vld [vmem:[%s2762_s1 + $0x3b0] sm:$0xf]  ;;  %v1774_v28 = vld [vmem:[%s2762_s1 + $0x3b4] sm:$0xf0]  ;;  %v1554_v31 = vor.u32 %v1758_v25, %v1553_v24  ;;  %v1724_v33 = vld [vmem:[%s2762_s1 + $0x224] sm:$0xf0] }
  0x25   :  { %879 = vmatpush.bf16.msrb.mxu1 %v1522_v41  ;;  %v2147_v20 = vld [vmem:[#allocation1 + $0x12] sm:$0xff]  ;;  %v2149_v21 = vld [vmem:[#allocation1] sm:$0xff]  ;;  %v2160_v26 = vld [vmem:[#allocation1 + $0x9] sm:$0xff]  ;;  %v1618_v35 = vor.u32 %v1774_v28, %v1617_v27  ;;  %v1418_v41 = vor.u32 %v1724_v33, %v1417_v32 }
  0x26   :  { %892 = vmatpush.bf16.msrb.mxu2 %v1586_v42  ;;  %v2151_v22 = vld [vmem:[#allocation1 + $0x1b] sm:$0xff]  ;;  %822 = vmatmul.bf16.vlgmr.msra.gmra.mxu0 %v2149_v21  ;;  %v1740_v36 = vld [vmem:[%s2762_s1 + $0x2a4] sm:$0xf0]  ;;  %v1409_v44 = vld [vmem:[%s2762_s1 + $0x210] sm:$0xf] }
  0x27   :  { %905 = vmatpush.bf16.msrb.mxu3 %v1650_v46  ;;  %848 = vmatmul.bf16.vlgmr.msra.gmra.mxu2 %v2147_v20  ;;  %v1481_v34 = vld [vmem:[%s2762_s1 + $0x2a0] sm:$0xf]  ;;  %v1756_v38 = vld [vmem:[%s2762_s1 + $0x324] sm:$0xf0]  ;;  %v1722_v45 = vld [vmem:[%s2762_s1 + $0x214] sm:$0xf0] }
  0x28   :  { %867 = vmatpush.bf16.msrb.mxu0 %v1450_v52  ;;  %861 = vmatmul.bf16.vlgmr.msra.gmra.mxu3 %v2151_v22  ;;  %v1545_v37 = vld [vmem:[%s2762_s1 + $0x320] sm:$0xf]  ;;  %v1772_v40 = vld [vmem:[%s2762_s1 + $0x3a4] sm:$0xf0]  ;;  %v1482_v42 = vor.u32 %v1740_v36, %v1481_v34  ;;  %v1473_v46 = vld [vmem:[%s2762_s1 + $0x290] sm:$0xf]  ;;  %v1410_v53 = vor.u32 %v1722_v45, %v1409_v44 }
  0x29   :  { %880 = vmatpush.bf16.msrb.mxu1 %v1514_v55  ;;  %v1609_v39 = vld [vmem:[%s2762_s1 + $0x3a0] sm:$0xf]  ;;  %v1546_v43 = vor.u32 %v1756_v38, %v1545_v37  ;;  %v1738_v48 = vld [vmem:[%s2762_s1 + $0x294] sm:$0xf0]  ;;  %v1537_v49 = vld [vmem:[%s2762_s1 + $0x310] sm:$0xf] }
  0x2a   :  { %893 = vmatpush.bf16.msrb.mxu2 %v1578_v56  ;;  %835 = vmatmul.bf16.vlgmr.msra.gmra.mxu1 %v2160_v26  ;;  %v1610_v47 = vor.u32 %v1772_v40, %v1609_v39  ;;  %v1754_v50 = vld [vmem:[%s2762_s1 + $0x314] sm:$0xf0]  ;;  %v1601_v51 = vld [vmem:[%s2762_s1 + $0x390] sm:$0xf]  ;;  %v1401_v54 = vld [vmem:[%s2762_s1 + $0x200] sm:$0xf]  ;;  %v1474_v56 = vor.u32 %v1738_v48, %v1473_v46 }
  0x2b   :  { %906 = vmatpush.bf16.msrb.mxu3 %v1642_v60  ;;  %v1770_v52 = vld [vmem:[%s2762_s1 + $0x394] sm:$0xf0]  ;;  %v1720_v55 = vld [vmem:[%s2762_s1 + $0x204] sm:$0xf0]  ;;  %v1538_v57 = vor.u32 %v1754_v50, %v1537_v49  ;;  %v1465_v58 = vld [vmem:[%s2762_s1 + $0x280] sm:$0xf] }
  0x2c   :  { %868 = vmatpush.bf16.msrb.mxu0 %v1442_v1  ;;  %v1736_v59 = vld [vmem:[%s2762_s1 + $0x284] sm:$0xf0]  ;;  %v1529_v60 = vld [vmem:[%s2762_s1 + $0x300] sm:$0xf]  ;;  %v1602_v61 = vor.u32 %v1770_v52, %v1601_v51  ;;  %v1669_v1 = vld [vmem:[%s2762_s1 + $0x74] sm:$0xf]  ;;  %v1402_v4 = vor.u32 %v1720_v55, %v1401_v54 }
  0x2d   :  { %881 = vmatpush.bf16.msrb.mxu1 %v1506_v2  ;;  %v1752_v62 = vld [vmem:[%s2762_s1 + $0x304] sm:$0xf0]  ;;  %v1593_v63 = vld [vmem:[%s2762_s1 + $0x380] sm:$0xf]  ;;  %v1203_v2 = vld [vmem:[%s2762_s1 + $0x78] sm:$0xf0]  ;;  %v1466_v8 = vor.u32 %v1736_v59, %v1465_v58 }
  0x2e   :  { %894 = vmatpush.bf16.msrb.mxu2 %v1570_v3  ;;  %v1768_v0 = vld [vmem:[%s2762_s1 + $0x384] sm:$0xf0]  ;;  %v1685_v3 = vld [vmem:[%s2762_s1 + $0xf4] sm:$0xf]  ;;  %v1267_v5 = vld [vmem:[%s2762_s1 + $0xf8] sm:$0xf0]  ;;  %v1530_v9 = vor.u32 %v1752_v62, %v1529_v60  ;;  %v1206_v13 = vor.u32 %v1669_v1, %v1203_v2 }
  0x2f   :  { %907 = vmatpush.bf16.msrb.mxu3 %v1634_v7  ;;  %v1701_v6 = vld [vmem:[%s2762_s1 + $0x174] sm:$0xf]  ;;  %v1331_v7 = vld [vmem:[%s2762_s1 + $0x178] sm:$0xf0]  ;;  %v1594_v12 = vor.u32 %v1768_v0, %v1593_v63  ;;  %v1667_v16 = vld [vmem:[%s2762_s1 + $0x64] sm:$0xf] }
  0x30   :  { %869 = vmatpush.bf16.msrb.mxu0 %v1434_v14  ;;  %v1717_v10 = vld [vmem:[%s2762_s1 + $0x1f4] sm:$0xf]  ;;  %v1395_v11 = vld [vmem:[%s2762_s1 + $0x1f8] sm:$0xf0]  ;;  %v1270_v14 = vor.u32 %v1685_v3, %v1267_v5  ;;  %v1334_v15 = vor.u32 %v1701_v6, %v1331_v7  ;;  %v1195_v17 = vld [vmem:[%s2762_s1 + $0x68] sm:$0xf0] }
  0x31   :  { %882 = vmatpush.bf16.msrb.mxu1 %v1498_v18  ;;  %v1683_v18 = vld [vmem:[%s2762_s1 + $0xe4] sm:$0xf]  ;;  %v1323_v25 = vld [vmem:[%s2762_s1 + $0x168] sm:$0xf0]  ;;  %v1665_v33 = vld [vmem:[%s2762_s1 + $0x54] sm:$0xf] }
  0x32   :  { %895 = vmatpush.bf16.msrb.mxu2 %v1562_v19  ;;  %v1398_v19 = vor.u32 %v1717_v10, %v1395_v11  ;;  %v1699_v24 = vld [vmem:[%s2762_s1 + $0x164] sm:$0xf]  ;;  %v1387_v28 = vld [vmem:[%s2762_s1 + $0x1e8] sm:$0xf0]  ;;  %v1187_v36 = vld [vmem:[%s2762_s1 + $0x58] sm:$0xf0] }
  0x33   :  { %908 = vmatpush.bf16.msrb.mxu3 %v1626_v23  ;;  %v1259_v23 = vld [vmem:[%s2762_s1 + $0xe8] sm:$0xf0]  ;;  %v1715_v27 = vld [vmem:[%s2762_s1 + $0x1e4] sm:$0xf]  ;;  %v1681_v37 = vld [vmem:[%s2762_s1 + $0xd4] sm:$0xf]  ;;  %v1190_v45 = vor.u32 %v1665_v33, %v1187_v36 }
  0x34   :  { %870 = vmatpush.bf16.msrb.mxu0 %v1426_v29  ;;  %v2291_v29 = vld [vmem:[#allocation1 + $0x36] sm:$0xff]  ;;  %v2295_v32 = vld [vmem:[#allocation1 + $0x3f] sm:$0xff]  ;;  %v1262_v34 = vor.u32 %v1683_v18, %v1259_v23  ;;  %v2306_v38 = vld [vmem:[#allocation1 + $0x2d] sm:$0xff]  ;;  %v1390_v39 = vor.u32 %v1715_v27, %v1387_v28 }
  0x35   :  { %883 = vmatpush.bf16.msrb.mxu1 %v1490_v30  ;;  %v1198_v30 = vor.u32 %v1667_v16, %v1195_v17  ;;  %v1251_v40 = vld [vmem:[%s2762_s1 + $0xd8] sm:$0xf0]  ;;  %v1663_v48 = vld [vmem:[%s2762_s1 + $0x44] sm:$0xf]  ;;  %v1179_v49 = vld [vmem:[%s2762_s1 + $0x48] sm:$0xf0] }
  0x36   :  { %896 = vmatpush.bf16.msrb.mxu2 %v1554_v31  ;;  %v2293_v31 = vld [vmem:[#allocation1 + $0x24] sm:$0xff]  ;;  %v1379_v44 = vld [vmem:[%s2762_s1 + $0x1d8] sm:$0xf0]  ;;  %v1254_v46 = vor.u32 %v1681_v37, %v1251_v40  ;;  %v1243_v52 = vld [vmem:[%s2762_s1 + $0xc8] sm:$0xf0] }
  0x37   :  { %909 = vmatpush.bf16.msrb.mxu3 %v1618_v35  ;;  %v1326_v35 = vor.u32 %v1699_v24, %v1323_v25  ;;  %v1679_v50 = vld [vmem:[%s2762_s1 + $0xc4] sm:$0xf]  ;;  %v1307_v54 = vld [vmem:[%s2762_s1 + $0x148] sm:$0xf0]  ;;  %v1661_v60 = vld [vmem:[%s2762_s1 + $0x34] sm:$0xf] }
  0x38   :  { %871 = vmatpush.bf16.msrb.mxu0 %v1418_v41  ;;  %v1697_v41 = vld [vmem:[%s2762_s1 + $0x154] sm:$0xf]  ;;  %v1711_v55 = vld [vmem:[%s2762_s1 + $0x1c4] sm:$0xf]  ;;  %v1246_v58 = vor.u32 %v1679_v50, %v1243_v52  ;;  %v1235_v0 = vld [vmem:[%s2762_s1 + $0xb8] sm:$0xf0] }
  0x39   :  { %884 = vmatpush.bf16.msrb.mxu1 %v1482_v42  ;;  %v1315_v42 = vld [vmem:[%s2762_s1 + $0x158] sm:$0xf0]  ;;  %v1677_v62 = vld [vmem:[%s2762_s1 + $0xb4] sm:$0xf]  ;;  %v1675_v10 = vld [vmem:[%s2762_s1 + $0xa4] sm:$0xf] }
  0x3a   :  { %897 = vmatpush.bf16.msrb.mxu2 %v1546_v43  ;;  %v1713_v43 = vld [vmem:[%s2762_s1 + $0x1d4] sm:$0xf]  ;;  %v1299_v2 = vld [vmem:[%s2762_s1 + $0x138] sm:$0xf0]  ;;  %v1238_v6 = vor.u32 %v1677_v62, %v1235_v0  ;;  %v1355_v16 = vld [vmem:[%s2762_s1 + $0x1a8] sm:$0xf0] }
  0x3b   :  { %910 = vmatpush.bf16.msrb.mxu3 %v1610_v47  ;;  %v1318_v47 = vor.u32 %v1697_v41, %v1315_v42  ;;  %v1382_v51 = vor.u32 %v1713_v43, %v1379_v44  ;;  %v1693_v1 = vld [vmem:[%s2762_s1 + $0x134] sm:$0xf]  ;;  %v1155_v24 = vld [vmem:[%s2762_s1 + $0x18] sm:$0xf0]  ;;  %v1655_v36 = vld [vmem:[%s2762_s1 + $0x4] sm:$0xf] }
  0x3c   :  { %872 = vmatpush.bf16.msrb.mxu0 %v1410_v53  ;;  %v1695_v53 = vld [vmem:[%s2762_s1 + $0x144] sm:$0xf]  ;;  %v1709_v3 = vld [vmem:[%s2762_s1 + $0x1b4] sm:$0xf]  ;;  %v1302_v7 = vor.u32 %v1693_v1, %v1299_v2  ;;  %v1219_v28 = vld [vmem:[%s2762_s1 + $0x98] sm:$0xf0] }
  0x3d   :  { %885 = vmatpush.bf16.msrb.mxu1 %v1474_v56  ;;  %v1371_v56 = vld [vmem:[%s2762_s1 + $0x1c8] sm:$0xf0]  ;;  %v1310_v59 = vor.u32 %v1695_v53, %v1307_v54  ;;  %v1657_v23 = vld [vmem:[%s2762_s1 + $0x14] sm:$0xf]  ;;  %v1283_v33 = vld [vmem:[%s2762_s1 + $0x118] sm:$0xf0] }
  0x3e   :  { %898 = vmatpush.bf16.msrb.mxu2 %v1538_v57  ;;  %v1182_v57 = vor.u32 %v1663_v48, %v1179_v49  ;;  %v1374_v63 = vor.u32 %v1711_v55, %v1371_v56  ;;  %v1673_v25 = vld [vmem:[%s2762_s1 + $0x94] sm:$0xf]  ;;  %v1158_v37 = vor.u32 %v1657_v23, %v1155_v24  ;;  %v1671_v40 = vld [vmem:[%s2762_s1 + $0x84] sm:$0xf]  ;;  %v1211_v41 = vld [vmem:[%s2762_s1 + $0x88] sm:$0xf0] }
  0x3f   :  { %911 = vmatpush.bf16.msrb.mxu3 %v1602_v61  ;;  %v1171_v61 = vld [vmem:[%s2762_s1 + $0x38] sm:$0xf0]  ;;  %v1222_v42 = vor.u32 %v1673_v25, %v1219_v28  ;;  %v1687_v44 = vld [vmem:[%s2762_s1 + $0x104] sm:$0xf]  ;;  %v1339_v48 = vld [vmem:[%s2762_s1 + $0x188] sm:$0xf0] }
  0x40   :  { %873 = vmatpush.bf16.msrb.mxu0 %v1402_v4  ;;  %v1363_v4 = vld [vmem:[%s2762_s1 + $0x1b8] sm:$0xf0]  ;;  %v1174_v5 = vor.u32 %v1661_v60, %v1171_v61  ;;  %v1733_v49 = vld [vmem:[%s2762_s1 + $0x274] sm:$0xf] }
  0x41   :  { %886 = vmatpush.bf16.msrb.mxu1 %v1466_v8  ;;  %v1659_v8 = vld [vmem:[%s2762_s1 + $0x24] sm:$0xf]  ;;  %v1366_v11 = vor.u32 %v1709_v3, %v1363_v4  ;;  %v1459_v50 = vld [vmem:[%s2762_s1 + $0x278] sm:$0xf0] }
  0x42   :  { %899 = vmatpush.bf16.msrb.mxu2 %v1530_v9  ;;  %v1163_v9 = vld [vmem:[%s2762_s1 + $0x28] sm:$0xf0] }
  0x43   :  { %912 = vmatpush.bf16.msrb.mxu3 %v1594_v12  ;;  %874 = vmatmul.bf16.vlgmr.msrb.gmra.mxu0 %v2293_v31  ;;  %v1227_v12 = vld [vmem:[%s2762_s1 + $0xa8] sm:$0xf0]  ;;  %v1166_v17 = vor.u32 %v1659_v8, %v1163_v9 }
  0x44   :  { %918 = vmatpush.bf16.msra.mxu0 %v1206_v13  ;;  %887 = vmatmul.bf16.vlgmr.msrb.gmra.mxu1 %v2306_v38  ;;  %v1691_v13 = vld [vmem:[%s2762_s1 + $0x124] sm:$0xf]  ;;  %v1230_v18 = vor.u32 %v1675_v10, %v1227_v12 }
  0x45   :  { %931 = vmatpush.bf16.msra.mxu1 %v1270_v14  ;;  %900 = vmatmul.bf16.vlgmr.msrb.gmra.mxu2 %v2291_v29  ;;  %v1291_v14 = vld [vmem:[%s2762_s1 + $0x128] sm:$0xf0] }
  0x46   :  { %944 = vmatpush.bf16.msra.mxu2 %v1334_v15  ;;  %913 = vmatmul.bf16.vlgmr.msrb.gmra.mxu3 %v2295_v32  ;;  %v1707_v15 = vld [vmem:[%s2762_s1 + $0x1a4] sm:$0xf] }
  0x47   :  { %957 = vmatpush.bf16.msra.mxu3 %v1398_v19  ;;  %v1294_v19 = vor.u32 %v1691_v13, %v1291_v14  ;;  %v1358_v27 = vor.u32 %v1707_v15, %v1355_v16 }
  0x48   :  { %919 = vmatpush.bf16.msra.mxu0 %v1198_v30  ;;  %v1689_v30 = vld [vmem:[%s2762_s1 + $0x114] sm:$0xf] }
  0x49   :  { %932 = vmatpush.bf16.msra.mxu1 %v1262_v34  ;;  %v1705_v34 = vld [vmem:[%s2762_s1 + $0x194] sm:$0xf]  ;;  %v1286_v43 = vor.u32 %v1689_v30, %v1283_v33 }
  0x4a   :  { %945 = vmatpush.bf16.msra.mxu2 %v1326_v35  ;;  %v1347_v35 = vld [vmem:[%s2762_s1 + $0x198] sm:$0xf0] }
  0x4b   :  { %958 = vmatpush.bf16.msra.mxu3 %v1390_v39  ;;  %v1147_v39 = vld [vmem:[%s2762_s1 + $0x8] sm:$0xf0] }
  0x4c   :  { %920 = vmatpush.bf16.msra.mxu0 %v1190_v45  ;;  %v1275_v45 = vld [vmem:[%s2762_s1 + $0x108] sm:$0xf0] }
  0x4d   :  { %933 = vmatpush.bf16.msra.mxu1 %v1254_v46  ;;  %v1703_v46 = vld [vmem:[%s2762_s1 + $0x184] sm:$0xf] }
  0x4e   :  { %946 = vmatpush.bf16.msra.mxu2 %v1318_v47  ;;  %v1350_v47 = vor.u32 %v1705_v34, %v1347_v35 }
  0x4f   :  { %959 = vmatpush.bf16.msra.mxu3 %v1382_v51  ;;  %v1749_v51 = vld [vmem:[%s2762_s1 + $0x2f4] sm:$0xf] }
  0x50   :  { %921 = vmatpush.bf16.msra.mxu0 %v1182_v57 }
  0x51   :  { %934 = vmatpush.bf16.msra.mxu1 %v1246_v58 }
  0x52   :  { %947 = vmatpush.bf16.msra.mxu2 %v1310_v59 }
  0x53   :  { %960 = vmatpush.bf16.msra.mxu3 %v1374_v63 }
  0x54   :  { %922 = vmatpush.bf16.msra.mxu0 %v1174_v5 }
  0x55   :  { %935 = vmatpush.bf16.msra.mxu1 %v1238_v6 }
  0x56   :  { %948 = vmatpush.bf16.msra.mxu2 %v1302_v7 }
  0x57   :  { %961 = vmatpush.bf16.msra.mxu3 %v1366_v11 }
  0x58   :  { %923 = vmatpush.bf16.msra.mxu0 %v1166_v17 }
  0x59   :  { %936 = vmatpush.bf16.msra.mxu1 %v1230_v18 }
  0x5a   :  { %949 = vmatpush.bf16.msra.mxu2 %v1294_v19 }
  0x5b   :  { %962 = vmatpush.bf16.msra.mxu3 %v1358_v27 }
  0x5c   :  { %10 = vsyncpa [#allocation4], 0  ;;  %924 = vmatpush.bf16.msra.mxu0 %v1158_v37  ;;  %v1150_v52 = vor.u32 %v1655_v36, %v1147_v39  ;;  %v1523_v53 = vld [vmem:[%s2762_s1 + $0x2f8] sm:$0xf0]  ;;  %v1765_v54 = vld [vmem:[%s2762_s1 + $0x374] sm:$0xf]  ;;  %v1214_v56 = vor.u32 %v1671_v40, %v1211_v41  ;;  %v1278_v57 = vor.u32 %v1687_v44, %v1275_v45  ;;  %v1342_v60 = vor.u32 %v1703_v46, %v1339_v48 }
  0x5d   :  { %v1587_v55 = vld [vmem:[%s2762_s1 + $0x378] sm:$0xf0]  ;;  %937 = vmatpush.bf16.msra.mxu1 %v1222_v42  ;;  %v1781_v58 = vld [vmem:[%s2762_s1 + $0x3f4] sm:$0xf]  ;;  %v1462_v61 = vor.u32 %v1733_v49, %v1459_v50  ;;  %v1526_v62 = vor.u32 %v1749_v51, %v1523_v53  ;;  %v1731_v0 = vld [vmem:[%s2762_s1 + $0x264] sm:$0xf] }
  0x5e   :  { %950 = vmatpush.bf16.msra.mxu2 %v1286_v43  ;;  %v1651_v59 = vld [vmem:[%s2762_s1 + $0x3f8] sm:$0xf0]  ;;  %v1590_v63 = vor.u32 %v1765_v54, %v1587_v55  ;;  %v1451_v1 = vld [vmem:[%s2762_s1 + $0x268] sm:$0xf0]  ;;  %v1747_v2 = vld [vmem:[%s2762_s1 + $0x2e4] sm:$0xf] }
  0x5f   :  { %963 = vmatpush.bf16.msra.mxu3 %v1350_v47  ;;  %v1654_v3 = vor.u32 %v1781_v58, %v1651_v59  ;;  %v1515_v4 = vld [vmem:[%s2762_s1 + $0x2e8] sm:$0xf0]  ;;  %v1763_v5 = vld [vmem:[%s2762_s1 + $0x364] sm:$0xf]  ;;  %v1454_v9 = vor.u32 %v1731_v0, %v1451_v1  ;;  %v1729_v12 = vld [vmem:[%s2762_s1 + $0x254] sm:$0xf] }
  0x60   :  { %925 = vmatpush.bf16.msra.mxu0 %v1150_v52  ;;  %v1579_v6 = vld [vmem:[%s2762_s1 + $0x368] sm:$0xf0]  ;;  %v1779_v7 = vld [vmem:[%s2762_s1 + $0x3e4] sm:$0xf]  ;;  %v1518_v10 = vor.u32 %v1747_v2, %v1515_v4  ;;  %v1443_v13 = vld [vmem:[%s2762_s1 + $0x258] sm:$0xf0] }
  0x61   :  { %938 = vmatpush.bf16.msra.mxu1 %v1214_v56  ;;  %v1643_v8 = vld [vmem:[%s2762_s1 + $0x3e8] sm:$0xf0]  ;;  %v1582_v11 = vor.u32 %v1763_v5, %v1579_v6  ;;  %v1745_v14 = vld [vmem:[%s2762_s1 + $0x2d4] sm:$0xf]  ;;  %v1507_v16 = vld [vmem:[%s2762_s1 + $0x2d8] sm:$0xf0]  ;;  %v1446_v23 = vor.u32 %v1729_v12, %v1443_v13 }
  0x62   :  { %951 = vmatpush.bf16.msra.mxu2 %v1278_v57  ;;  %v1646_v15 = vor.u32 %v1779_v7, %v1643_v8  ;;  %v1761_v17 = vld [vmem:[%s2762_s1 + $0x354] sm:$0xf]  ;;  %v1571_v18 = vld [vmem:[%s2762_s1 + $0x358] sm:$0xf0]  ;;  %v1510_v24 = vor.u32 %v1745_v14, %v1507_v16  ;;  %v1727_v27 = vld [vmem:[%s2762_s1 + $0x244] sm:$0xf] }
  0x63   :  { %964 = vmatpush.bf16.msra.mxu3 %v1342_v60  ;;  %v1777_v19 = vld [vmem:[%s2762_s1 + $0x3d4] sm:$0xf]  ;;  %926 = vmatmul.bf16.vlgmr.msra.gmra.mxu0 %v2149_v21  ;;  %v1574_v25 = vor.u32 %v1761_v17, %v1571_v18  ;;  %v1435_v28 = vld [vmem:[%s2762_s1 + $0x248] sm:$0xf0]  ;;  %v1743_v21 = vld [vmem:[%s2762_s1 + $0x2c4] sm:$0xf] }
  0x64   :  { %970 = vmatpush.bf16.msrb.mxu0 %v1462_v61  ;;  %939 = vmatmul.bf16.vlgmr.msra.gmra.mxu1 %v2160_v26  ;;  %v1499_v26 = vld [vmem:[%s2762_s1 + $0x2c8] sm:$0xf0]  ;;  %v1759_v30 = vld [vmem:[%s2762_s1 + $0x344] sm:$0xf]  ;;  %v1438_v36 = vor.u32 %v1727_v27, %v1435_v28  ;;  %v1725_v40 = vld [vmem:[%s2762_s1 + $0x234] sm:$0xf] }
  0x65   :  { %983 = vmatpush.bf16.msrb.mxu1 %v1526_v62  ;;  %952 = vmatmul.bf16.vlgmr.msra.gmra.mxu2 %v2147_v20  ;;  %v1635_v20 = vld [vmem:[%s2762_s1 + $0x3d8] sm:$0xf0]  ;;  %v1563_v33 = vld [vmem:[%s2762_s1 + $0x348] sm:$0xf0]  ;;  %v1775_v34 = vld [vmem:[%s2762_s1 + $0x3c4] sm:$0xf]  ;;  %v1502_v37 = vor.u32 %v1743_v21, %v1499_v26 }
  0x66   :  { %996 = vmatpush.bf16.msrb.mxu2 %v1590_v63  ;;  %965 = vmatmul.bf16.vlgmr.msra.gmra.mxu3 %v2151_v22  ;;  %v1638_v22 = vor.u32 %v1777_v19, %v1635_v20  ;;  %v1627_v35 = vld [vmem:[%s2762_s1 + $0x3c8] sm:$0xf0]  ;;  %v1566_v39 = vor.u32 %v1759_v30, %v1563_v33  ;;  %v1427_v41 = vld [vmem:[%s2762_s1 + $0x238] sm:$0xf0]  ;;  %v1741_v42 = vld [vmem:[%s2762_s1 + $0x2b4] sm:$0xf] }
  0x67   :  { %1009 = vmatpush.bf16.msrb.mxu3 %v1654_v3  ;;  %v1630_v43 = vor.u32 %v1775_v34, %v1627_v35  ;;  %v1491_v44 = vld [vmem:[%s2762_s1 + $0x2b8] sm:$0xf0]  ;;  %v1757_v45 = vld [vmem:[%s2762_s1 + $0x334] sm:$0xf]  ;;  %v1430_v49 = vor.u32 %v1725_v40, %v1427_v41  ;;  %v1723_v52 = vld [vmem:[%s2762_s1 + $0x224] sm:$0xf] }
  0x68   :  { %971 = vmatpush.bf16.msrb.mxu0 %v1454_v9  ;;  %v1555_v46 = vld [vmem:[%s2762_s1 + $0x338] sm:$0xf0]  ;;  %v1773_v47 = vld [vmem:[%s2762_s1 + $0x3b4] sm:$0xf]  ;;  %v1494_v50 = vor.u32 %v1741_v42, %v1491_v44  ;;  %v1419_v53 = vld [vmem:[%s2762_s1 + $0x228] sm:$0xf0] }
  0x69   :  { %984 = vmatpush.bf16.msrb.mxu1 %v1518_v10  ;;  %v1619_v48 = vld [vmem:[%s2762_s1 + $0x3b8] sm:$0xf0]  ;;  %v1558_v51 = vor.u32 %v1757_v45, %v1555_v46  ;;  %v1739_v54 = vld [vmem:[%s2762_s1 + $0x2a4] sm:$0xf]  ;;  %v1483_v56 = vld [vmem:[%s2762_s1 + $0x2a8] sm:$0xf0]  ;;  %v1422_v61 = vor.u32 %v1723_v52, %v1419_v53 }
  0x6a   :  { %997 = vmatpush.bf16.msrb.mxu2 %v1582_v11  ;;  %v1622_v55 = vor.u32 %v1773_v47, %v1619_v48  ;;  %v1755_v57 = vld [vmem:[%s2762_s1 + $0x324] sm:$0xf]  ;;  %v1547_v58 = vld [vmem:[%s2762_s1 + $0x328] sm:$0xf0]  ;;  %v1486_v62 = vor.u32 %v1739_v54, %v1483_v56  ;;  %v1721_v0 = vld [vmem:[%s2762_s1 + $0x214] sm:$0xf] }
  0x6b   :  { %1010 = vmatpush.bf16.msrb.mxu3 %v1646_v15  ;;  %v1771_v59 = vld [vmem:[%s2762_s1 + $0x3a4] sm:$0xf]  ;;  %v1611_v60 = vld [vmem:[%s2762_s1 + $0x3a8] sm:$0xf0]  ;;  %v1550_v63 = vor.u32 %v1755_v57, %v1547_v58  ;;  %v1411_v1 = vld [vmem:[%s2762_s1 + $0x218] sm:$0xf0] }
  0x6c   :  { %972 = vmatpush.bf16.msrb.mxu0 %v1446_v23  ;;  %v1737_v2 = vld [vmem:[%s2762_s1 + $0x294] sm:$0xf]  ;;  %v1614_v3 = vor.u32 %v1771_v59, %v1611_v60  ;;  %v1475_v4 = vld [vmem:[%s2762_s1 + $0x298] sm:$0xf0]  ;;  %v1414_v9 = vor.u32 %v1721_v0, %v1411_v1  ;;  %v1719_v12 = vld [vmem:[%s2762_s1 + $0x204] sm:$0xf] }
  0x6d   :  { %985 = vmatpush.bf16.msrb.mxu1 %v1510_v24  ;;  %v1753_v5 = vld [vmem:[%s2762_s1 + $0x314] sm:$0xf]  ;;  %v1539_v6 = vld [vmem:[%s2762_s1 + $0x318] sm:$0xf0]  ;;  %v1478_v10 = vor.u32 %v1737_v2, %v1475_v4  ;;  %v1403_v13 = vld [vmem:[%s2762_s1 + $0x208] sm:$0xf0] }
  0x6e   :  { %998 = vmatpush.bf16.msrb.mxu2 %v1574_v25  ;;  %v1769_v7 = vld [vmem:[%s2762_s1 + $0x394] sm:$0xf]  ;;  %v1603_v8 = vld [vmem:[%s2762_s1 + $0x398] sm:$0xf0]  ;;  %v1542_v11 = vor.u32 %v1753_v5, %v1539_v6  ;;  %v1735_v14 = vld [vmem:[%s2762_s1 + $0x284] sm:$0xf]  ;;  %v1406_v23 = vor.u32 %v1719_v12, %v1403_v13 }
  0x6f   :  { %1011 = vmatpush.bf16.msrb.mxu3 %v1638_v22  ;;  %v1606_v15 = vor.u32 %v1769_v7, %v1603_v8  ;;  %v1467_v16 = vld [vmem:[%s2762_s1 + $0x288] sm:$0xf0]  ;;  %v1751_v17 = vld [vmem:[%s2762_s1 + $0x304] sm:$0xf]  ;;  %v1058_v46 = vld [vmem:[%s2764_s3 + $0x78] sm:$0xff]  ;;  %vm1025_vm0 = vcmask 1041408  }
  0x70   :  { %973 = vmatpush.bf16.msrb.mxu0 %v1438_v36  ;;  %v1531_v18 = vld [vmem:[%s2762_s1 + $0x308] sm:$0xf0]  ;;  %v1767_v19 = vld [vmem:[%s2762_s1 + $0x384] sm:$0xf]  ;;  %v1470_v24 = vor.u32 %v1735_v14, %v1467_v16  ;;  %v1074_v47 = vld [vmem:[%s2764_s3 + $0xf8] sm:$0xff]  ;;  %s1813_s29 = smov [#allocation3]  }
  0x71   :  { %986 = vmatpush.bf16.msrb.mxu1 %v1502_v37  ;;  %v1595_v20 = vld [vmem:[%s2762_s1 + $0x388] sm:$0xf0]  ;;  %v1534_v25 = vor.u32 %v1751_v17, %v1531_v18  ;;  %v1073_v52 = vld [vmem:[%s2764_s3 + $0xf0] sm:$0xff]  ;;  %v1055_v58 = vld [vmem:[%s2764_s3 + $0x60] sm:$0xff]  ;;  %s1132_s30 = sshll.u32 %s1813_s29, 4  ;;  %s1134_s8 = sshll.u32 %s2766_s5, 4  ;;  %s1133_s30 = int_to_ptr.vmem [resolvable:$true] %s1132_s30  ;;  %s1135_s8 = int_to_ptr.hbm [resolvable:$true] %s1134_s8 }
  0x72   :  { %999 = vmatpush.bf16.msrb.mxu2 %v1566_v39  ;;  %v1598_v27 = vor.u32 %v1767_v19, %v1595_v20  ;;  %v1072_v56 = vld [vmem:[%s2764_s3 + $0xe8] sm:$0xff]  ;;  %v1071_v59 = vld [vmem:[%s2764_s3 + $0xe0] sm:$0xff]  ;;  %v1069_v0 = vld [vmem:[%s2764_s3 + $0xd0] sm:$0xff]  ;;  %vm1125_vm1 = vcmask 58368  }
  0x73   :  { %1012 = vmatpush.bf16.msrb.mxu3 %v1630_v43  ;;  %v1068_v4 = vld [vmem:[%s2764_s3 + $0xc8] sm:$0xff]  ;;  %v1051_v5 = vld [vmem:[%s2764_s3 + $0x40] sm:$0xff]  ;;  %v1050_v7 = vld [vmem:[%s2764_s3 + $0x38] sm:$0xff] }
  0x74   :  { %974 = vmatpush.bf16.msrb.mxu0 %v1430_v49  ;;  %v1067_v6 = vld [vmem:[%s2764_s3 + $0xc0] sm:$0xff]  ;;  %v1066_v8 = vld [vmem:[%s2764_s3 + $0xb8] sm:$0xff]  ;;  %v1048_v12 = vld [vmem:[%s2764_s3 + $0x28] sm:$0xff] }
  0x75   :  { %987 = vmatpush.bf16.msrb.mxu1 %v1494_v50  ;;  %v1812_v50 = vmov 0.0   ;;  %v1064_v13 = vld [vmem:[%s2764_s3 + $0xa8] sm:$0xff]  ;;  %v1063_v16 = vld [vmem:[%s2764_s3 + $0xa0] sm:$0xff]  ;;  %v1046_v17 = vld [vmem:[%s2764_s3 + $0x18] sm:$0xff] }
  0x76   :  { %1000 = vmatpush.bf16.msrb.mxu2 %v1558_v51  ;;  %25 = vst [vmem:[#allocation2] sm:$0xf] %v1812_v50  ;;  %v1057_v51 = vld [vmem:[%s2764_s3 + $0x70] sm:$0xff]  ;;  %v1062_v18 = vld [vmem:[%s2764_s3 + $0x98] sm:$0xff] }
  0x77   :  { %1013 = vmatpush.bf16.msrb.mxu3 %v1622_v55  ;;  %v1056_v55 = vld [vmem:[%s2764_s3 + $0x68] sm:$0xff]  ;;  %v1045_v19 = vld [vmem:[%s2764_s3 + $0x10] sm:$0xff] }
  0x78   :  { %975 = vmatpush.bf16.msrb.mxu0 %v1422_v61  ;;  %v1054_v61 = vld [vmem:[%s2764_s3 + $0x58] sm:$0xff]  ;;  %v1061_v20 = vld [vmem:[%s2764_s3 + $0x90] sm:$0xff] }
  0x79   :  { %988 = vmatpush.bf16.msrb.mxu1 %v1486_v62  ;;  %v1070_v62 = vld [vmem:[%s2764_s3 + $0xd8] sm:$0xff] }
  0x7a   :  { %1001 = vmatpush.bf16.msrb.mxu2 %v1550_v63  ;;  %v1053_v63 = vld [vmem:[%s2764_s3 + $0x50] sm:$0xff] }
  0x7b   :  { %1014 = vmatpush.bf16.msrb.mxu3 %v1614_v3  ;;  %v1052_v3 = vld [vmem:[%s2764_s3 + $0x48] sm:$0xff] }
  0x7c   :  { %976 = vmatpush.bf16.msrb.mxu0 %v1414_v9 }
  0x7d   :  { %989 = vmatpush.bf16.msrb.mxu1 %v1478_v10  ;;  %v1049_v10 = vld [vmem:[%s2764_s3 + $0x30] sm:$0xff] }
  0x7e   :  { %1002 = vmatpush.bf16.msrb.mxu2 %v1542_v11  ;;  %v1065_v11 = vld [vmem:[%s2764_s3 + $0xb0] sm:$0xff] }
  0x7f   :  { %1015 = vmatpush.bf16.msrb.mxu3 %v1606_v15  ;;  %v1047_v15 = vld [vmem:[%s2764_s3 + $0x20] sm:$0xff] }
  0x80   :  { %977 = vmatpush.bf16.msrb.mxu0 %v1406_v23 }
  0x81   :  { %990 = vmatpush.bf16.msrb.mxu1 %v1470_v24 }
  0x82   :  { %1003 = vmatpush.bf16.msrb.mxu2 %v1534_v25  ;;  %v1044_v25 = vld [vmem:[%s2764_s3 + $0x8] sm:$0xff] }
  0x83   :  { %1016 = vmatpush.bf16.msrb.mxu3 %v1598_v27  ;;  %978 = vmatmul.bf16.vlgmr.msrb.gmra.mxu0 %v2293_v31  ;;  %v1060_v27 = vld [vmem:[%s2764_s3 + $0x88] sm:$0xff] }
  0x84   :  { %991 = vmatmul.bf16.vlgmr.msrb.gmra.mxu1 %v2306_v38  ;;  %1085 = vmatpush.msra.mxu0 %v1058_v46 }
  0x85   :  { %1004 = vmatmul.bf16.vlgmr.msrb.gmra.mxu2 %v2291_v29  ;;  %1105 = vmatpush.msra.mxu1 %v1074_v47 }
  0x86   :  { %1017 = vmatmul.bf16.vlgmr.msrb.gmra.mxu3 %v2295_v32  ;;  %1086 = vmatpush.msra.mxu0 %v1057_v51 }
  0x87   :  { %1106 = vmatpush.msra.mxu1 %v1073_v52 }
  0x88   :  { %1087 = vmatpush.msra.mxu0 %v1056_v55 }
  0x89   :  { %1107 = vmatpush.msra.mxu1 %v1072_v56 }
  0x8a   :  { %1088 = vmatpush.msra.mxu0 %v1055_v58 }
  0x8b   :  { %1108 = vmatpush.msra.mxu1 %v1071_v59 }
  0x8c   :  { %1089 = vmatpush.msra.mxu0 %v1054_v61 }
  0x8d   :  { %1109 = vmatpush.msra.mxu1 %v1070_v62 }
  0x8e   :  { %1090 = vmatpush.msra.mxu0 %v1053_v63 }
  0x8f   :  { %1110 = vmatpush.msra.mxu1 %v1069_v0 }
  0x90   :  { %1091 = vmatpush.msra.mxu0 %v1052_v3 }
  0x91   :  { %1111 = vmatpush.msra.mxu1 %v1068_v4 }
  0x92   :  { %1092 = vmatpush.msra.mxu0 %v1051_v5 }
  0x93   :  { %1112 = vmatpush.msra.mxu1 %v1067_v6 }
  0x94   :  { %1093 = vmatpush.msra.mxu0 %v1050_v7 }
  0x95   :  { %1113 = vmatpush.msra.mxu1 %v1066_v8 }
  0x96   :  { %1094 = vmatpush.msra.mxu0 %v1049_v10 }
  0x97   :  { %1114 = vmatpush.msra.mxu1 %v1065_v11 }
  0x98   :  { %1095 = vmatpush.msra.mxu0 %v1048_v12 }
  0x99   :  { %1115 = vmatpush.msra.mxu1 %v1064_v13 }
  0x9a   :  { %1096 = vmatpush.msra.mxu0 %v1047_v15 }
  0x9b   :  { %1116 = vmatpush.msra.mxu1 %v1063_v16 }
  0x9c   :  { %1097 = vmatpush.msra.mxu0 %v1046_v17 }
  0x9d   :  { %1117 = vmatpush.msra.mxu1 %v1062_v18 }
  0x9e   :  { %1098 = vmatpush.msra.mxu0 %v1045_v19 }
  0x9f   :  { %1118 = vmatpush.msra.mxu1 %v1061_v20 }
  0xa0   :  { %1099 = vmatpush.msra.mxu0 %v1044_v25 }
  0xa1   :  { %1119 = vmatpush.msra.mxu1 %v1060_v27 }
  0xa3   :  { %v823_v28 = vpop.f32.mrf.mxu0 }
  0xa7   :  { %v836_v21 = vpop.f32.mrf.mxu1 }
  0xa8   :  { %v837_v22 = vadd.f32 %v836_v21, %v823_v28 }
  0xaa   :  { %v849_v26 = vpop.f32.mrf.mxu2 }
  0xab   :  { %v850_v30 = vadd.f32 %v849_v26, %v837_v22  ;;  %v862_v33 = vpop.f32.mrf.mxu3  ;;  %v825_v35 = vpop.f32.mrf.mxu0  ;;  %v1043_v22 = vld [vmem:[%s2764_s3] sm:$0xff] }
  0xac   :  { %v1059_v26 = vld [vmem:[%s2764_s3 + $0x80] sm:$0xff]  ;;  %1100 = vmatpush.msra.mxu0 %v1043_v22 }
  0xad   :  { %v863_v34 = vadd.f32 %v862_v33, %v850_v30  ;;  %1120 = vmatpush.msra.mxu1 %v1059_v26 }
  0xaf   :  { %v838_v36 = vpop.f32.mrf.mxu1 }
  0xb2   :  { %v851_v37 = vpop.f32.mrf.mxu2 }
  0xb3   :  { %v864_v39 = vpop.f32.mrf.mxu3 }
  0xc0   :  { %v875_v40 = vpop.f32.mrf.mxu0 }
  0xc1   :  { %v876_v41 = vadd.f32 %v875_v40, %v863_v34  ;;  %v888_v31 = vpop.f32.mrf.mxu1 }
  0xc3   :  { %v2647_v42 = vadd.f32 %v888_v31, %v876_v41  ;;  %v1034_v41 = vld [vmem:[%s2763_s2] sm:$0x3] }
  0xc8   :  { %v2649_v38 = vpop.f32.mrf.mxu2  ;;  %v877_v32 = vpop.f32.mrf.mxu0 }
  0xc9   :  { %v2651_v29 = vpop.f32.mrf.mxu3  ;;  %v890_v43 = vpop.f32.mrf.mxu1  ;;  %v902_v34 = vadd.f32 %v2649_v38, %v2647_v42  ;;  %v26_v32 = vld [vmem:[#allocation2] sm:$0xf]  ;;  %v1036_v42 = vperm.slane %v1034_v41, 0 }
  0xcb   :  { %v915_v31 = vadd.f32 %v2651_v29, %v902_v34  ;;  %v1785_v29 = vld [vmem:[%s2765_s4] ss:$0 sm:$0xff] }
  0xd0   :  { %v903_v44 = vpop.f32.mrf.mxu2 }
  0xd1   :  { %v916_v45 = vpop.f32.mrf.mxu3 }
  0xd2   :  { %v1037_v45 = vperm.slane %v1034_v41, 1 }
  0xd4   :  { %v1038_v38 = vrot.slane %v1037_v45, 6 }
  0xe0   :  { %v927_v48 = vpop.f32.mrf.mxu0 }
  0xe1   :  { %v940_v49 = vpop.f32.mrf.mxu1 }
  0xe2   :  { %v941_v9 = vadd.f32 %v940_v49, %v927_v48  ;;  %v1039_v49 = vsel %vm1025_vm0, %v1036_v42, %v1038_v38 }
  0xe8   :  { %v953_v53 = vpop.f32.mrf.mxu2  ;;  %v929_v57 = vpop.f32.mrf.mxu0 }
  0xe9   :  { %v966_v54 = vpop.f32.mrf.mxu3  ;;  %v942_v60 = vpop.f32.mrf.mxu1  ;;  %v954_v14 = vadd.f32 %v953_v53, %v941_v9 }
  0xeb   :  { %v967_v23 = vadd.f32 %v966_v54, %v954_v14 }
  0xf0   :  { %v955_v1 = vpop.f32.mrf.mxu2 }
  0xf1   :  { %v968_v2 = vpop.f32.mrf.mxu3 }
 0x100   :  { %v979_v24 = vpop.f32.mrf.mxu0 }
 0x101   :  { %v992_v28 = vpop.f32.mrf.mxu1  ;;  %v980_v21 = vadd.f32 %v979_v24, %v967_v23 }
 0x103   :  { %v993_v30 = vadd.f32 %v992_v28, %v980_v21 }
 0x108   :  { %v1005_v33 = vpop.f32.mrf.mxu2  ;;  %v981_v37 = vpop.f32.mrf.mxu0 }
 0x109   :  { %v1006_v35 = vadd.f32 %v1005_v33, %v993_v30  ;;  %v1018_v36 = vpop.f32.mrf.mxu3  ;;  %v994_v39 = vpop.f32.mrf.mxu1 }
 0x10b   :  { %v1019_v40 = vadd.f32 %v1018_v36, %v1006_v35 }
 0x10d   :  { %v1024_v43 = vrot.slane %v1019_v40, 6 }
 0x10f   :  { %v1026_v44 = vsel %vm1025_vm0, %v915_v31, %v1024_v43 }
 0x110   :  { %v1028_v46 = vadd.f32 %v1026_v44, %v26_v32  ;;  %v1007_v47 = vpop.f32.mrf.mxu2 }
 0x111   :  { %v1020_v48 = vpop.f32.mrf.mxu3 }
 0x112   :  { %1029 = vst [vmem:[#allocation2] sm:$0xf] %v1028_v46 }
 0x119   :  { %v1033_v50 = vld [vmem:[#allocation2] sm:$0xf] }
 0x11a   :  { %v1041_v51 = vadd.f32 %v1039_v49, %v1033_v50 }
 0x11c   :  { %v1042_v52 = vmax.f32 %v1041_v51, 0.0 }
 0x11e   :  { %1080 = vst [vmem:[#allocation1] ss:$4 sm:$0xff] %v1042_v52 }
 0x125   :  { %v1081_v53 = vld.sshfl [vmem:[#allocation1] sm:$0xff pattern:$0x73625140]  ;;  %v1082_v54 = vld.sshfl [vmem:[#allocation1 + $0x8] sm:$0xff pattern:$0x73625140] }
 0x126   :  { %1101 = vmatmul.f32.vlgmr.msra.gmra.mxu0 %v1081_v53  ;;  %1121 = vmatmul.f32.vlgmr.msra.gmra.mxu1 %v1082_v54 }
 0x1a3   :  { %v1102_v55 = vpop.f32.mrf.mxu0  ;;  %v1122_v57 = vpop.f32.mrf.mxu1 }
 0x1a4   :  { %v1103_v56 = vadd.f32 %v1785_v29, %v1102_v55 }
 0x1a6   :  { %v1123_v58 = vadd.f32 %v1122_v57, %v1103_v56 }
 0x1a8   :  { %1126 = vst.msk [vmem:[#allocation3] sm:$0x3] %vm1125_vm1, %v1123_v58 }
 0x1a9   :  { %1137 = dma.vmem_to_hbm [thread:$0]  %s1133_s30, 32, %s1135_s8, [#allocation4]  }
 0x1aa   :  { %1810 = dma.done.wait [#allocation4], 32  }
 0x1ab   :  { %1811 = vsyncadd [#allocation4], 4294967264 }
 0x1ac   :  { %1142 = vsyncpa [#allocation4], 1 }

// kernel: simple_cnn_forward.3
= control target key start
LH: loop header
LB: loop body
LE: loop exit
PB: predicated region body
PF: predicated region fallthrough
CT: control target
= control target key end

     0   :  { %8 = vsyncpa [#allocation3], 0  ;;  %s3812_s12 = smov 0   ;;  %s5246_s0 = inlined_call_operand.vmem [shape: bf16[2,18,18,8], index: 0, kind: input, shape index: {}]   ;;  %s5247_s1 = inlined_call_operand.vmem [shape: bf16[9,8,32], index: 1, kind: input, shape index: {}]   ;;  %s5248_s2 = inlined_call_operand.hbm [shape: f32[1,32], index: 2, kind: input, shape index: {}]   ;;  %s5249_s3 = inlined_call_operand.vmem [shape: bf16[2,8,256], index: 3, kind: output, shape index: {}]  }
   0x1 LB: > { %s3355_s13 = sadd.s32 4294967295, %s3785_s12   ;;  %p3357_p0 = scmp.ge.s32.totalorder %s3785_s12, 1  ;;  %s3785_s12 = sphi %s3812_s12, %s14_s12  }
   0x2   : > { %p113_p1 = scmp.lt.s32.totalorder %s3785_s12, 3  ;;  %s128_s16 = sshll.u32 %s5248_s2, 4  ;;  %s129_s16 = int_to_ptr.hbm [resolvable:$true] %s128_s16 }
   0x3   : > { %p3704_p3 = scmp.eq.s32.totalorder %s3355_s13, 0  ;;  %s3787_s17 = smov [#allocation2]  }
   0x4   : > { %p114_p2 = pnand %p3357_p0, %p113_p1  ;;  %s130_s18 = sshll.u32 %s3787_s17, 4  ;;  %s131_s18 = int_to_ptr.vmem [resolvable:$true] %s130_s18 }
   0x6   : > { %p3700_p4 = pneg %p114_p2  ;;  %151 = sbr.rel (%p114_p2) target bundleno = 978 (0x3d2), region = 32 }
   0x8   : > { %p3701_p5 = pnand %p3704_p3, %p3700_p4 }
   0xa   : > { %3703 = dma.hbm_to_vmem [thread:$0]  (!%p3701_p5), %s129_s16, 16, %s131_s18, [#allocation3]  }
   0xb   : > { %3780 = dma.done.wait (%p3704_p3), [#allocation3], 16  }
   0xc   : > { %3782 = vsyncadd (%p3704_p3), [#allocation3], 4294967280  ;;  %p176_p6 = scmp.lt.s32.totalorder %s3355_s13, 1  ;;  %vm728_vm0 = vcmask 1043456   ;;  %vm242_vm1 = vsmask.f32 3328 }
   0xd   : > { %vm243_vm2 = vsmask.f32 7440  ;;  %v3365_v0 = vld [vmem:[%s5247_s1 + $0x4] sm:$0xf]  ;;  %v3478_v52 = vld [vmem:[%s5247_s1 + $0x8] sm:$0xf] }
   0xe   : > { %s5392_s13 = smov (!%p176_p6, %s3355_s13), 1  ;;  %v730_v3 = vsel %vm728_vm0, %v3365_v0, 0  ;;  %vm3856_vm3 = vmor %vm242_vm1, %vm243_vm2  ;;  %vm679_vm4 = vcmask 64512   ;;  %vm1057_vm5 = vcmask 1042432   ;;  %vm1058_vm6 = vcmask 1046532   ;;  %s3789_s16 = smov 32  }
   0xf   : > { %s3695_s19 = smul.u32 216, %s5392_s13  ;;  %3692 = vmatpush.bf16.msra.mxu1 %v730_v3  ;;  %3693 = vmatpush.bf16.msra.mxu2 %v730_v3  ;;  %vm4171_vm7 = vmor %vm1057_vm5, %vm1058_vm6  ;;  %vm2775_vm8 = vcmask 1041409   ;;  %vm2777_vm9 = vcmask 1043459   ;;  %vm2779_vm10 = vcmask 1045509   ;;  %vm2781_vm11 = vcmask 1047559   ;;  %s3790_s17 = smov 64  }
  0x10   : > { %3694 = vmatpush.bf16.msra.mxu3 %v730_v3  ;;  %739 = vmatpush.bf16.msra.mxu0 %v730_v3  ;;  %vm3033_vm12 = vcmask 1047556   ;;  %s3791_s18 = smov 96   ;;  %vm3277_vm13 = vcmask 261120   ;;  %vm3279_vm14 = vcmask 523264   ;;  %vm3281_vm15 = vcmask 785408  }
  0x11   : > { %s3829_s22 = scalar_lea.vmem %s5246_s0, %s3695_s19  ;;  %s3673_s19 = sshll.u32 %s5392_s13, 3 }
  0x12   : > { %v3835_v1 = vld [vmem:[%s3829_s22 + $0x30] sm:$0xf]  ;;  %v3838_v2 = vld [vmem:[%s3829_s22 + $0x34] sm:$0xf]  ;;  %v3842_v4 = vld [vmem:[%s3829_s22 + $0x38] sm:$0x1] }
  0x13   : > { %v342_v5 = vshrl.u32 %v3835_v1, 16  ;;  %v345_v6 = vshll.u32 %v3835_v1, 16  ;;  %v351_v7 = vshll.u32 %v3838_v2, 16  ;;  %v355_v8 = vshrl.u32 %v3838_v2, 16  ;;  %v211_v10 = vld [vmem:[%s3829_s22 + $0x60] sm:$0xf] }
  0x14   : > { %v361_v9 = vshll.u32 %v3842_v4, 16  ;;  %v212_v11 = vld [vmem:[%s3829_s22 + $0x64] sm:$0xf]  ;;  %v213_v15 = vld [vmem:[%s3829_s22 + $0x68] sm:$0x1]  ;;  %v438_v16 = vshrl.u32 %v211_v10, 16 }
  0x15   : > { %v344_v12 = vrot.slane %v342_v5, 4  ;;  %v347_v13 = vrot.slane %v345_v6, 5  ;;  %v353_v14 = vrot.slane %v351_v7, 5  ;;  %v357_v17 = vrot.slane %v355_v8, 4  ;;  %v223_v20 = vld [vmem:[%s3829_s22 + $0x90] sm:$0xf] }
  0x16   : > { %v441_v18 = vshll.u32 %v211_v10, 16  ;;  %v447_v19 = vshll.u32 %v212_v11, 16  ;;  %v440_v22 = vrot.slane %v438_v16, 4  ;;  %v451_v23 = vshrl.u32 %v212_v11, 16  ;;  %v224_v25 = vld [vmem:[%s3829_s22 + $0x94] sm:$0xf] }
  0x17   : > { %v348_v21 = vor.u32 %v347_v13, %v344_v12  ;;  %v457_v24 = vshll.u32 %v213_v15, 16  ;;  %v358_v27 = vor.u32 %v357_v17, %v353_v14  ;;  %v363_v28 = vrot.slane %v361_v9, 5  ;;  %v225_v41 = vld [vmem:[%s3829_s22 + $0x98] sm:$0x1]  ;;  %v3871_v56 = vld [vmem:[%s3829_s22] sm:$0xf] }
  0x18   : > { %v443_v29 = vrot.slane %v441_v18, 5  ;;  %v449_v30 = vrot.slane %v447_v19, 5  ;;  %v453_v32 = vrot.slane %v451_v23, 4  ;;  %v534_v34 = vshrl.u32 %v223_v20, 16  ;;  %v3874_v57 = vld [vmem:[%s3829_s22 + $0x4] sm:$0xf] }
  0x19   : > { %v349_v31 = vrot.slane %v348_v21, 4  ;;  %v459_v33 = vrot.slane %v457_v24, 5  ;;  %v359_v35 = vrot.slane %v358_v27, 4  ;;  %v537_v37 = vshll.u32 %v223_v20, 16  ;;  %v3881_v62 = vld [vmem:[%s3829_s22 + $0x8] sm:$0x1] }
  0x1a   : > { %v444_v36 = vor.u32 %v443_v29, %v440_v22  ;;  %v543_v38 = vshll.u32 %v224_v25, 16  ;;  %v454_v40 = vor.u32 %v453_v32, %v449_v30  ;;  %v536_v42 = vrot.slane %v534_v34, 4  ;;  %v241_v15 = vld [vmem:[%s5247_s1] sm:$0xf]  ;;  %v3516_v20 = vld [vmem:[%s5247_s1 + $0x10] sm:$0xf] }
  0x1b   : > { %v354_v39 = vsel %vm3856_vm3, %v349_v31, %v353_v14  ;;  %v547_v43 = vshrl.u32 %v224_v25, 16  ;;  %v364_v44 = vsel %vm3856_vm3, %v359_v35, %v363_v28  ;;  %v539_v47 = vrot.slane %v537_v37, 5  ;;  %v3495_v14 = vld [vmem:[%s5247_s1 + $0xc] sm:$0xf]  ;;  %v3907_v21 = vld [vmem:[%s3829_s22 + $0x3c] sm:$0xf] }
  0x1c   : > { %v639_v45 = vunpack.c.l.b16 %v354_v39  ;;  %v445_v46 = vrot.slane %v444_v36, 4  ;;  %v640_v48 = vunpack.c.l.b16 %v364_v44  ;;  %v455_v49 = vrot.slane %v454_v40, 4  ;;  %v3912_v25 = vld [vmem:[%s3829_s22 + $0x40] sm:$0xf]  ;;  %v3915_v27 = vld [vmem:[%s3829_s22 + $0x44] sm:$0x1] }
  0x1d   : > { %v545_v50 = vrot.slane %v543_v38, 5  ;;  %v549_v51 = vrot.slane %v547_v43, 4  ;;  %v540_v54 = vor.u32 %v539_v47, %v536_v42  ;;  %v553_v55 = vshll.u32 %v225_v41, 16  ;;  %v3920_v32 = vld [vmem:[%s3829_s22 + $0x6c] sm:$0xf] }
  0x1e   : > { %v450_v53 = vsel %vm3856_vm3, %v445_v46, %v449_v30  ;;  %v3876_v58 = vpack.c.b16 %v640_v48, %v639_v45  ;;  %v460_v59 = vsel %vm3856_vm3, %v455_v49, %v459_v33  ;;  %v1271_v5 = vsel %vm728_vm0, %v3478_v52, 0  ;;  %v3933_v44 = vld [vmem:[%s3829_s22 + $0x70] sm:$0xf] }
  0x1f   : > { %v647_v60 = vunpack.c.l.b16 %v450_v53  ;;  %v550_v61 = vor.u32 %v549_v51, %v545_v50  ;;  %v648_v63 = vunpack.c.l.b16 %v460_v59  ;;  %v541_v0 = vrot.slane %v540_v54, 4  ;;  %1280 = vmatpush.bf16.msrb.mxu2 %v1271_v5 }
  0x20   : > { %v555_v3 = vrot.slane %v553_v55, 5  ;;  %3370 = vmatmul.msk.bf16.vlgmr.msra.gmra.mxu1 %vm679_vm4, %v3876_v58  ;;  %v246_v7 = vshrl.u32 %v3871_v56, 16  ;;  %v249_v8 = vshll.u32 %v3871_v56, 16  ;;  %v255_v9 = vshll.u32 %v3874_v57, 16 }
  0x21   : > { %v551_v6 = vrot.slane %v550_v61, 4  ;;  %v3889_v10 = vpack.c.b16 %v648_v63, %v647_v60  ;;  %v546_v11 = vsel %vm3856_vm3, %v541_v0, %v545_v50  ;;  %v259_v12 = vshrl.u32 %v3874_v57, 16  ;;  %v3939_v50 = vld [vmem:[%s3829_s22 + $0x74] sm:$0x1]  ;;  %v226_v63 = vld [vmem:[%s3829_s22 + $0x9c] sm:$0xf] }
  0x22   : > { %v265_v13 = vshll.u32 %v3881_v62, 16  ;;  %v655_v17 = vunpack.c.l.b16 %v546_v11  ;;  %v248_v18 = vrot.slane %v246_v7, 4  ;;  %v251_v19 = vrot.slane %v249_v8, 5  ;;  %v227_v11 = vld [vmem:[%s3829_s22 + $0xa0] sm:$0xf] }
  0x23   : > { %5291 = vst [vmem:[#allocation5_spill] sm:$0xff] %v3889_v10  ;;  %v556_v16 = vsel %vm3856_vm3, %v551_v6, %v555_v3  ;;  %3374 = vmatmul.msk.bf16.vlgmr.msra.gmra.mxu2 %vm679_vm4, %v3889_v10  ;;  %v257_v23 = vrot.slane %v255_v9, 5  ;;  %v261_v24 = vrot.slane %v259_v12, 4  ;;  %v1405_v30 = vsel %vm728_vm0, %v3495_v14, 0 }
  0x24   : > { %v656_v22 = vunpack.c.l.b16 %v556_v16  ;;  %v252_v28 = vor.u32 %v251_v19, %v248_v18  ;;  %v267_v29 = vrot.slane %v265_v13, 5  ;;  %v950_v31 = vsel %vm728_vm0, %v241_v15, 0  ;;  %1414 = vmatpush.bf16.msrb.mxu3 %v1405_v30  ;;  %v228_v19 = vld [vmem:[%s3829_s22 + $0xa4] sm:$0x1] }
  0x25   : > { %v262_v34 = vor.u32 %v261_v24, %v257_v23  ;;  %959 = vmatpush.bf16.msrb.mxu1 %v950_v31  ;;  %v1561_v35 = vsel %vm728_vm0, %v3516_v20, 0  ;;  %v366_v36 = vshrl.u32 %v3907_v21, 16  ;;  %v369_v38 = vshll.u32 %v3907_v21, 16 }
  0x26   : > { %v3922_v33 = vpack.c.b16 %v656_v22, %v655_v17  ;;  %v253_v37 = vrot.slane %v252_v28, 4  ;;  %1570 = vmatpush.bf16.msrb.mxu0 %v1561_v35  ;;  %v375_v39 = vshll.u32 %v3912_v25, 16  ;;  %v379_v40 = vshrl.u32 %v3912_v25, 16  ;;  %v3956_v35 = vld [vmem:[%s3829_s22 + $0xc] sm:$0xf] }
  0x27   : > { %v263_v41 = vrot.slane %v262_v34, 4  ;;  %v368_v42 = vrot.slane %v366_v36, 4  ;;  %v385_v43 = vshll.u32 %v3915_v27, 16  ;;  %v462_v45 = vshrl.u32 %v3920_v32, 16 }
  0x28   : > { %5292 = vst [vmem:[#allocation6_spill] sm:$0xff] %v3922_v33  ;;  %3378 = vmatmul.msk.bf16.vlgmr.msra.gmra.mxu3 %vm679_vm4, %v3922_v33  ;;  %v258_v46 = vsel %vm3856_vm3, %v253_v37, %v257_v23  ;;  %v371_v47 = vrot.slane %v369_v38, 5  ;;  %v377_v48 = vrot.slane %v375_v39, 5  ;;  %v381_v49 = vrot.slane %v379_v40, 4  ;;  %v3534_v33 = vld [vmem:[%s5247_s1 + $0x14] sm:$0xf] }
  0x29   : > { %v268_v51 = vsel %vm3856_vm3, %v263_v41, %v267_v29  ;;  %v631_v52 = vunpack.c.l.b16 %v258_v46  ;;  %v387_v53 = vrot.slane %v385_v43, 5  ;;  %v464_v54 = vrot.slane %v462_v45, 4  ;;  %v3963_v43 = vld [vmem:[%s3829_s22 + $0x10] sm:$0xf]  ;;  %v3966_v45 = vld [vmem:[%s3829_s22 + $0x14] sm:$0x1] }
  0x2a   : > { %v632_v55 = vunpack.c.l.b16 %v268_v51  ;;  %v372_v59 = vor.u32 %v371_v47, %v368_v42  ;;  %v382_v60 = vor.u32 %v381_v49, %v377_v48  ;;  %v465_v61 = vshll.u32 %v3920_v32, 16 }
  0x2b   : > { %v471_v0 = vshll.u32 %v3933_v44, 16  ;;  %v475_v3 = vshrl.u32 %v3933_v44, 16  ;;  %v481_v5 = vshll.u32 %v3939_v50, 16  ;;  %v558_v15 = vshrl.u32 %v226_v63, 16 }
  0x2c   : > { %v663_v6 = vpack.c.b16 %v632_v55, %v631_v52  ;;  %v373_v7 = vrot.slane %v372_v59, 4  ;;  %v383_v8 = vrot.slane %v382_v60, 4  ;;  %v467_v9 = vrot.slane %v465_v61, 5 }
  0x2d   : > { %v473_v12 = vrot.slane %v471_v0, 5  ;;  %v477_v13 = vrot.slane %v475_v3, 4  ;;  %v483_v14 = vrot.slane %v481_v5, 5  ;;  %v561_v20 = vshll.u32 %v226_v63, 16  ;;  %v3978_v63 = vld [vmem:[%s3829_s22 + $0x48] sm:$0xf] }
  0x2e   : > { %3366 = vmatmul.msk.bf16.vlgmr.msra.gmra.mxu0 %vm679_vm4, %v663_v6  ;;  %v378_v16 = vsel %vm3856_vm3, %v373_v7, %v377_v48  ;;  %v388_v17 = vsel %vm3856_vm3, %v383_v8, %v387_v53  ;;  %v468_v18 = vor.u32 %v467_v9, %v464_v54  ;;  %v560_v28 = vrot.slane %v558_v15, 4  ;;  %v3985_v7 = vld [vmem:[%s3829_s22 + $0x4c] sm:$0xf] }
  0x2f   : > { %v641_v22 = vunpack.c.l.b16 %v378_v16  ;;  %v642_v23 = vunpack.c.l.b16 %v388_v17  ;;  %v478_v24 = vor.u32 %v477_v13, %v473_v12  ;;  %v563_v30 = vrot.slane %v561_v20, 5  ;;  %v3988_v13 = vld [vmem:[%s3829_s22 + $0x50] sm:$0x1] }
  0x30   : > { %v469_v29 = vrot.slane %v468_v18, 4  ;;  %v567_v31 = vshll.u32 %v227_v11, 16  ;;  %v571_v34 = vshrl.u32 %v227_v11, 16  ;;  %v577_v38 = vshll.u32 %v228_v19, 16 }
  0x31   : > { %v3958_v36 = vpack.c.b16 %v642_v23, %v641_v22  ;;  %v479_v37 = vrot.slane %v478_v24, 4  ;;  %v564_v40 = vor.u32 %v563_v30, %v560_v28  ;;  %v270_v49 = vshrl.u32 %v3956_v35, 16  ;;  %v3999_v23 = vld [vmem:[%s3829_s22 + $0x78] sm:$0xf] }
  0x32   : > { %v474_v39 = vsel %vm3856_vm3, %v469_v29, %v473_v12  ;;  %v569_v41 = vrot.slane %v567_v31, 5  ;;  %v573_v42 = vrot.slane %v571_v34, 4  ;;  %v579_v48 = vrot.slane %v577_v38, 5 }
  0x33   : > { %3371 = vmatmul.msk.bf16.gmra.mxu1 %vm679_vm4, %v3958_v36  ;;  %v484_v46 = vsel %vm3856_vm3, %v479_v37, %v483_v14  ;;  %v649_v47 = vunpack.c.l.b16 %v474_v39  ;;  %v565_v52 = vrot.slane %v564_v40, 4  ;;  %v273_v54 = vshll.u32 %v3956_v35, 16  ;;  %v4005_v39 = vld [vmem:[%s3829_s22 + $0x7c] sm:$0xf] }
  0x34   : > { %v650_v51 = vunpack.c.l.b16 %v484_v46  ;;  %v574_v53 = vor.u32 %v573_v42, %v569_v41  ;;  %v272_v55 = vrot.slane %v270_v49, 4  ;;  %v279_v59 = vshll.u32 %v3963_v43, 16  ;;  %v4010_v46 = vld [vmem:[%s3829_s22 + $0x80] sm:$0x1] }
  0x35   : > { %v283_v60 = vshrl.u32 %v3963_v43, 16  ;;  %v289_v61 = vshll.u32 %v3966_v45, 16  ;;  %v570_v3 = vsel %vm3856_vm3, %v565_v52, %v569_v41  ;;  %v275_v6 = vrot.slane %v273_v54, 5 }
  0x36   : > { %v3980_v0 = vpack.c.b16 %v650_v51, %v649_v47  ;;  %v575_v5 = vrot.slane %v574_v53, 4  ;;  %v657_v8 = vunpack.c.l.b16 %v570_v3  ;;  %v281_v9 = vrot.slane %v279_v59, 5 }
  0x37   : > { %v285_v11 = vrot.slane %v283_v60, 4  ;;  %v291_v12 = vrot.slane %v289_v61, 5  ;;  %v276_v15 = vor.u32 %v275_v6, %v272_v55  ;;  %v390_v16 = vshrl.u32 %v3978_v63, 16  ;;  %v4022_v6 = vld [vmem:[%s3829_s22 + $0xa8] sm:$0xf] }
  0x38   : > { %3375 = vmatmul.msk.bf16.gmra.mxu2 %vm679_vm4, %v3980_v0  ;;  %v580_v14 = vsel %vm3856_vm3, %v575_v5, %v579_v48  ;;  %v393_v17 = vshll.u32 %v3978_v63, 16  ;;  %v399_v20 = vshll.u32 %v3985_v7, 16  ;;  %v403_v22 = vshrl.u32 %v3985_v7, 16  ;;  %5294 = vst [vmem:[#allocation8_spill] sm:$0xff] %v4022_v6 }
  0x39   : > { %v658_v18 = vunpack.c.l.b16 %v580_v14  ;;  %v286_v19 = vor.u32 %v285_v11, %v281_v9  ;;  %v277_v24 = vrot.slane %v276_v15, 4  ;;  %v392_v28 = vrot.slane %v390_v16, 4 }
  0x3a   : > { %v395_v29 = vrot.slane %v393_v17, 5  ;;  %v409_v30 = vshll.u32 %v3988_v13, 16  ;;  %v401_v37 = vrot.slane %v399_v20, 5  ;;  %v405_v38 = vrot.slane %v403_v22, 4 }
  0x3b   : > { %v4002_v31 = vpack.c.b16 %v658_v18, %v657_v8  ;;  %v287_v34 = vrot.slane %v286_v19, 4  ;;  %v282_v40 = vsel %vm3856_vm3, %v277_v24, %v281_v9  ;;  %v486_v47 = vshrl.u32 %v3999_v23, 16  ;;  %v4034_v18 = vld [vmem:[%s3829_s22 + $0xb0] sm:$0x1] }
  0x3c   : > { %v396_v41 = vor.u32 %v395_v29, %v392_v28  ;;  %v411_v42 = vrot.slane %v409_v30, 5  ;;  %v633_v49 = vunpack.c.l.b16 %v282_v40  ;;  %v406_v51 = vor.u32 %v405_v38, %v401_v37  ;;  %5296 = vst [vmem:[#allocation10_spill] sm:$0xff] %v4034_v18 }
  0x3d   : > { %5293 = vst [vmem:[#allocation7_spill] sm:$0xff] %v4002_v31  ;;  %3379 = vmatmul.msk.bf16.gmra.mxu3 %vm679_vm4, %v4002_v31  ;;  %v292_v48 = vsel %vm3856_vm3, %v287_v34, %v291_v12  ;;  %v489_v52 = vshll.u32 %v3999_v23, 16  ;;  %v488_v55 = vrot.slane %v486_v47, 4  ;;  %v495_v59 = vshll.u32 %v4005_v39, 16  ;;  %v4029_v12 = vld [vmem:[%s3829_s22 + $0xac] sm:$0xf] }
  0x3e   : > { %v634_v53 = vunpack.c.l.b16 %v292_v48  ;;  %v397_v54 = vrot.slane %v396_v41, 4  ;;  %v407_v60 = vrot.slane %v406_v51, 4  ;;  %v499_v3 = vshrl.u32 %v4005_v39, 16  ;;  %5295 = vst [vmem:[#allocation9_spill] sm:$0xff] %v4029_v12  ;;  %v4132_v31 = vld [vmem:[%s3829_s22 + $0x24] sm:$0xf] }
  0x3f   : > { %v491_v61 = vrot.slane %v489_v52, 5  ;;  %v505_v5 = vshll.u32 %v4010_v46, 16  ;;  %v497_v11 = vrot.slane %v495_v59, 5  ;;  %v582_v22 = vshrl.u32 %v4022_v6, 16  ;;  %v4051_v52 = vld [vmem:[%s3829_s22 + $0x1c] sm:$0xf] }
  0x40   : > { %v4024_v8 = vpack.c.b16 %v634_v53, %v633_v49  ;;  %v402_v9 = vsel %vm3856_vm3, %v397_v54, %v401_v37  ;;  %v412_v14 = vsel %vm3856_vm3, %v407_v60, %v411_v42  ;;  %v501_v17 = vrot.slane %v499_v3, 4  ;;  %v4046_v42 = vld [vmem:[%s3829_s22 + $0x18] sm:$0xf]  ;;  %v4056_v59 = vld [vmem:[%s3829_s22 + $0x20] sm:$0x1] }
  0x41   : > { %v643_v15 = vunpack.c.l.b16 %v402_v9  ;;  %v492_v16 = vor.u32 %v491_v61, %v488_v55  ;;  %v644_v19 = vunpack.c.l.b16 %v412_v14  ;;  %v507_v20 = vrot.slane %v505_v5, 5 }
  0x42   : > { %3367 = vmatmul.msk.bf16.gmra.mxu0 %vm679_vm4, %v4024_v8  ;;  %v585_v24 = vshll.u32 %v4022_v6, 16  ;;  %v502_v29 = vor.u32 %v501_v17, %v497_v11  ;;  %v591_v30 = vshll.u32 %v4029_v12, 16  ;;  %v595_v34 = vshrl.u32 %v4029_v12, 16 }
  0x43   : > { %v493_v28 = vrot.slane %v492_v16, 4  ;;  %v4042_v37 = vpack.c.b16 %v644_v19, %v643_v15  ;;  %v584_v38 = vrot.slane %v582_v22, 4  ;;  %v601_v41 = vshll.u32 %v4034_v18, 16 }
  0x44   : > { %v587_v40 = vrot.slane %v585_v24, 5  ;;  %v503_v48 = vrot.slane %v502_v29, 4  ;;  %v593_v49 = vrot.slane %v591_v30, 5  ;;  %v597_v51 = vrot.slane %v595_v34, 4  ;;  %v4066_v24 = vld [vmem:[%s3829_s22 + $0x54] sm:$0xf] }
  0x45   : > { %5297 = vst [vmem:[#allocation11_spill] sm:$0xff] %v4042_v37  ;;  %v498_v47 = vsel %vm3856_vm3, %v493_v28, %v497_v11  ;;  %3372 = vmatmul.msk.bf16.gmra.mxu1 %vm679_vm4, %v4042_v37  ;;  %v603_v55 = vrot.slane %v601_v41, 5  ;;  %v294_v3 = vshrl.u32 %v4046_v42, 16  ;;  %v297_v5 = vshll.u32 %v4046_v42, 16  ;;  %v4073_v34 = vld [vmem:[%s3829_s22 + $0x58] sm:$0xf] }
  0x46   : > { %v651_v53 = vunpack.c.l.b16 %v498_v47  ;;  %v588_v54 = vor.u32 %v587_v40, %v584_v38  ;;  %v508_v60 = vsel %vm3856_vm3, %v503_v48, %v507_v20  ;;  %v598_v61 = vor.u32 %v597_v51, %v593_v49  ;;  %v4076_v38 = vld [vmem:[%s3829_s22 + $0x5c] sm:$0x1] }
  0x47   : > { %v652_v9 = vunpack.c.l.b16 %v508_v60  ;;  %v303_v14 = vshll.u32 %v4051_v52, 16  ;;  %v307_v15 = vshrl.u32 %v4051_v52, 16  ;;  %v296_v17 = vrot.slane %v294_v3, 4 }
  0x48   : > { %v589_v11 = vrot.slane %v588_v54, 4  ;;  %v599_v16 = vrot.slane %v598_v61, 4  ;;  %v299_v19 = vrot.slane %v297_v5, 5  ;;  %v313_v22 = vshll.u32 %v4056_v59, 16  ;;  %v4088_v5 = vld [vmem:[%s3829_s22 + $0x84] sm:$0xf] }
  0x49   : > { %v4068_v20 = vpack.c.b16 %v652_v9, %v651_v53  ;;  %v305_v29 = vrot.slane %v303_v14, 5  ;;  %v309_v30 = vrot.slane %v307_v15, 4  ;;  %v417_v54 = vshll.u32 %v4066_v24, 16 }
  0x4a   : > { %v594_v28 = vsel %vm3856_vm3, %v589_v11, %v593_v49  ;;  %v604_v40 = vsel %vm3856_vm3, %v599_v16, %v603_v55  ;;  %v300_v47 = vor.u32 %v299_v19, %v296_v17  ;;  %v315_v48 = vrot.slane %v313_v22, 5  ;;  %v4093_v16 = vld [vmem:[%s3829_s22 + $0x88] sm:$0xf] }
  0x4b   : > { %v659_v41 = vunpack.c.l.b16 %v594_v28  ;;  %3376 = vmatmul.msk.bf16.gmra.mxu2 %vm679_vm4, %v4068_v20  ;;  %v660_v51 = vunpack.c.l.b16 %v604_v40  ;;  %v310_v53 = vor.u32 %v309_v30, %v305_v29  ;;  %v414_v49 = vshrl.u32 %v4066_v24, 16  ;;  %v4098_v30 = vld [vmem:[%s3829_s22 + $0x8c] sm:$0x1] }
  0x4c   : > { %v301_v60 = vrot.slane %v300_v47, 4  ;;  %v423_v61 = vshll.u32 %v4073_v34, 16  ;;  %v427_v3 = vshrl.u32 %v4073_v34, 16  ;;  %v433_v55 = vshll.u32 %v4076_v38, 16 }
  0x4d   : > { %v4090_v9 = vpack.c.b16 %v660_v51, %v659_v41  ;;  %v311_v11 = vrot.slane %v310_v53, 4  ;;  %v416_v14 = vrot.slane %v414_v49, 4  ;;  %v419_v15 = vrot.slane %v417_v54, 5 }
  0x4e   : > { %v306_v17 = vsel %vm3856_vm3, %v301_v60, %v305_v29  ;;  %v425_v19 = vrot.slane %v423_v61, 5  ;;  %v429_v22 = vrot.slane %v427_v3, 4  ;;  %v435_v28 = vrot.slane %v433_v55, 5 }
  0x4f   : > { %5298 = vst [vmem:[#allocation12_spill] sm:$0xff] %v4090_v9  ;;  %3380 = vmatmul.msk.bf16.gmra.mxu3 %vm679_vm4, %v4090_v9  ;;  %v316_v40 = vsel %vm3856_vm3, %v311_v11, %v315_v48  ;;  %v635_v41 = vunpack.c.l.b16 %v306_v17  ;;  %v420_v47 = vor.u32 %v419_v15, %v416_v14  ;;  %v510_v51 = vshrl.u32 %v4088_v5, 16  ;;  %v4110_v9 = vld [vmem:[%s3829_s22 + $0xb4] sm:$0xf]  ;;  %v4115_v17 = vld [vmem:[%s3829_s22 + $0xb8] sm:$0xf] }
  0x50   : > { %v636_v53 = vunpack.c.l.b16 %v316_v40  ;;  %v430_v49 = vor.u32 %v429_v22, %v425_v19  ;;  %v513_v29 = vshll.u32 %v4088_v5, 16  ;;  %v519_v54 = vshll.u32 %v4093_v16, 16  ;;  %5299 = vst [vmem:[#allocation13_spill] sm:$0xff] %v4110_v9 }
  0x51   : > { %v421_v60 = vrot.slane %v420_v47, 4  ;;  %v512_v61 = vrot.slane %v510_v51, 4  ;;  %v523_v3 = vshrl.u32 %v4093_v16, 16  ;;  %v529_v55 = vshll.u32 %v4098_v30, 16  ;;  %5300 = vst [vmem:[#allocation14_spill] sm:$0xff] %v4115_v17 }
  0x52   : > { %v4112_v48 = vpack.c.b16 %v636_v53, %v635_v41  ;;  %v431_v11 = vrot.slane %v430_v49, 4  ;;  %v515_v14 = vrot.slane %v513_v29, 5  ;;  %v521_v15 = vrot.slane %v519_v54, 5  ;;  %v4120_v51 = vld [vmem:[%s3829_s22 + $0xbc] sm:$0x1] }
  0x53   : > { %v426_v22 = vsel %vm3856_vm3, %v421_v60, %v425_v19  ;;  %v525_v40 = vrot.slane %v523_v3, 4  ;;  %v531_v47 = vrot.slane %v529_v55, 5  ;;  %5301 = vst [vmem:[#allocation15_spill] sm:$0xff] %v4120_v51  ;;  %v606_v29 = vshrl.u32 %v4110_v9, 16 }
  0x54   : > { %3368 = vmatmul.msk.bf16.gmra.mxu0 %vm679_vm4, %v4112_v48  ;;  %v436_v41 = vsel %vm3856_vm3, %v431_v11, %v435_v28  ;;  %v645_v53 = vunpack.c.l.b16 %v426_v22  ;;  %v516_v49 = vor.u32 %v515_v14, %v512_v61  ;;  %v609_v19 = vshll.u32 %v4110_v9, 16  ;;  %v4137_v22 = vld [vmem:[%s3829_s22 + $0x28] sm:$0xf]  ;;  %v4143_v9 = vld [vmem:[%s3829_s22 + $0x2c] sm:$0x1] }
  0x55   : > { %v646_v54 = vunpack.c.l.b16 %v436_v41  ;;  %v526_v6 = vor.u32 %v525_v40, %v521_v15  ;;  %v615_v60 = vshll.u32 %v4115_v17, 16  ;;  %v608_v55 = vrot.slane %v606_v29, 4 }
  0x56   : > { %v517_v3 = vrot.slane %v516_v49, 4  ;;  %v619_v18 = vshrl.u32 %v4115_v17, 16  ;;  %v625_v12 = vshll.u32 %v4120_v51, 16  ;;  %v611_v11 = vrot.slane %v609_v19, 5 }
  0x57   : > { %v4134_v28 = vpack.c.b16 %v646_v54, %v645_v53  ;;  %v527_v61 = vrot.slane %v526_v6, 4  ;;  %v617_v14 = vrot.slane %v615_v60, 5  ;;  %v1065_v40 = vrot.slane %v3881_v62, 5 }
  0x58   : > { %v522_v41 = vsel %vm3856_vm3, %v517_v3, %v521_v15  ;;  %v621_v49 = vrot.slane %v619_v18, 4  ;;  %v627_v29 = vrot.slane %v625_v12, 5  ;;  %v612_v54 = vor.u32 %v611_v11, %v608_v55 }
  0x59   : > { %5302 = vst [vmem:[#allocation16_spill] sm:$0xff] %v4134_v28  ;;  %3373 = vmatmul.msk.bf16.gmra.mxu1 %vm679_vm4, %v4134_v28  ;;  %v532_v53 = vsel %vm3856_vm3, %v527_v61, %v531_v47  ;;  %v653_v6 = vunpack.c.l.b16 %v522_v41  ;;  %v318_v19 = vshrl.u32 %v4132_v31, 16  ;;  %v321_v62 = vshll.u32 %v4132_v31, 16  ;;  %v3551_v47 = vld [vmem:[%s5247_s1 + $0x18] sm:$0xf] }
  0x5a   : > { %v654_v60 = vunpack.c.l.b16 %v532_v53  ;;  %v622_v51 = vor.u32 %v621_v49, %v617_v14  ;;  %v327_v15 = vshll.u32 %v4137_v22, 16  ;;  %v613_v18 = vrot.slane %v612_v54, 4  ;;  %v3572_v49 = vld [vmem:[%s5247_s1 + $0x1c] sm:$0xf] }
  0x5b   : > { %v320_v12 = vrot.slane %v318_v19, 4  ;;  %v331_v3 = vshrl.u32 %v4137_v22, 16  ;;  %v337_v17 = vshll.u32 %v4143_v9, 16  ;;  %v323_v11 = vrot.slane %v321_v62, 5 }
  0x5c   : > { %v4157_v61 = vpack.c.b16 %v654_v60, %v653_v6  ;;  %v623_v55 = vrot.slane %v622_v51, 4  ;;  %v329_v41 = vrot.slane %v327_v15, 5  ;;  %v618_v53 = vsel %vm3856_vm3, %v613_v18, %v617_v14 }
  0x5d   : > { %v333_v54 = vrot.slane %v331_v3, 4  ;;  %v339_v19 = vrot.slane %v337_v17, 5  ;;  %v661_v6 = vunpack.c.l.b16 %v618_v53  ;;  %v324_v60 = vor.u32 %v323_v11, %v320_v12  ;;  %v3590_v3 = vld [vmem:[%s5247_s1 + $0x20] sm:$0xf] }
  0x5e   : > { %5303 = vst [vmem:[#allocation17_spill] sm:$0xff] %v4157_v61  ;;  %3377 = vmatmul.msk.bf16.gmra.mxu2 %vm679_vm4, %v4157_v61  ;;  %v628_v51 = vsel %vm3856_vm3, %v623_v55, %v627_v29  ;;  %v3462_v17 = vrot.slane %v3871_v56, 9  ;;  %v1062_v18 = vrot.slane %v3874_v57, 5  ;;  %v1835_v29 = vsel %vm728_vm0, %v3551_v47, 0 }
  0x5f   : > { %v662_v62 = vunpack.c.l.b16 %v628_v51  ;;  %v334_v15 = vor.u32 %v333_v54, %v329_v41  ;;  %v325_v61 = vrot.slane %v324_v60, 4  ;;  %v1991_v12 = vsel %vm728_vm0, %v3572_v49, 0  ;;  %1844 = vmatpush.bf16.msra.mxu2 %v1835_v29 }
  0x60   : > { %v1701_v55 = vsel %vm728_vm0, %v3534_v33, 0  ;;  %v1063_v54 = vsel %vm4171_vm7, %v3462_v17, %v1062_v18  ;;  %v1064_v56 = vrot.slane %v1062_v18, 4  ;;  %2000 = vmatpush.bf16.msra.mxu3 %v1991_v12  ;;  %v2131_v47 = vsel %vm728_vm0, %v3590_v3, 0  ;;  %v3674_v17 = vld [vmem:[%s3829_s22] sm:$0xff]  ;;  %v3675_v12 = vld [vmem:[%s3829_s22 + $0xc] sm:$0xff] }
  0x61   : > { %v4183_v11 = vpack.c.b16 %v662_v62, %v661_v6  ;;  %v335_v53 = vrot.slane %v334_v15, 4  ;;  %v330_v57 = vsel %vm3856_vm3, %v325_v61, %v329_v41  ;;  %v1174_v51 = vunpack.c.l.b16 %v1063_v54  ;;  %1710 = vmatpush.bf16.msra.mxu1 %v1701_v55  ;;  %2140 = vmatpush.bf16.msra.mxu0 %v2131_v47 }
  0x62   : > { %v3463_v49 = vrot.slane %v3956_v35, 9  ;;  %v637_v6 = vunpack.c.l.b16 %v330_v57  ;;  %v1066_v60 = vsel %vm4171_vm7, %v1064_v56, %v1065_v40  ;;  %v1069_v62 = vrot.slane %v3963_v43, 5 }
  0x63   : > { %3381 = vmatmul.msk.bf16.gmra.mxu3 %vm679_vm4, %v4183_v11  ;;  %v340_v33 = vsel %vm3856_vm3, %v335_v53, %v339_v19  ;;  %v1175_v41 = vunpack.c.l.b16 %v1066_v60  ;;  %v1072_v15 = vrot.slane %v3966_v45, 5  ;;  %v1076_v55 = vrot.slane %v4051_v52, 5  ;;  %v4221_v53 = vld [vmem:[%s3829_s22 + $0x18] sm:$0xff] }
  0x64   : > { %v638_v61 = vunpack.c.l.b16 %v340_v33  ;;  %v1070_v35 = vsel %vm4171_vm7, %v3463_v49, %v1069_v62  ;;  %v1071_v18 = vrot.slane %v1069_v62, 4  ;;  %v3464_v54 = vrot.slane %v4046_v42, 9  ;;  %v4241_v49 = vld [vmem:[%s3829_s22 + $0x24] sm:$0xff] }
  0x65   : > { %v1206_v19 = vpack.c.b16 %v1175_v41, %v1174_v51  ;;  %v1176_v29 = vunpack.c.l.b16 %v1070_v35  ;;  %v1078_v56 = vrot.slane %v1076_v55, 4  ;;  %v1079_v57 = vrot.slane %v4056_v59, 5 }
  0x66   : > { %v4202_v3 = vpack.c.b16 %v638_v61, %v637_v6  ;;  %v1073_v40 = vsel %vm4171_vm7, %v1071_v18, %v1072_v15  ;;  %v1083_v59 = vrot.slane %v4137_v22, 5  ;;  %v3465_v33 = vrot.slane %v4132_v31, 9 }
  0x67   : > { %v1177_v43 = vunpack.c.l.b16 %v1073_v40  ;;  %v1080_v52 = vsel %vm4171_vm7, %v1078_v56, %v1079_v57  ;;  %v1086_v60 = vrot.slane %v4143_v9, 5  ;;  %v1090_v9 = vrot.slane %v3838_v2, 5  ;;  %v4291_v57 = vld [vmem:[%s3829_s22 + $0x3c] sm:$0xff] }
  0x68   : > { %3369 = vmatmul.msk.bf16.gmra.mxu0 %vm679_vm4, %v4202_v3  ;;  %v1179_v47 = vunpack.c.l.b16 %v1080_v52  ;;  %v1085_v6 = vrot.slane %v1083_v59, 4  ;;  %v1084_v62 = vsel %vm4171_vm7, %v3465_v33, %v1083_v59  ;;  %v3466_v35 = vrot.slane %v3835_v1, 9 }
  0x69   : > { %3446 = vmatmul.msk.bf16.vlgmr.msrb.gmra.mxu1 %vm679_vm4, %v3674_v17  ;;  %v4209_v45 = vpack.c.b16 %v1177_v43, %v1176_v29  ;;  %v1180_v61 = vunpack.c.l.b16 %v1084_v62  ;;  %v4263_v17 = vld [vmem:[%s3829_s22 + $0x30] sm:$0xff]  ;;  %v1092_v18 = vrot.slane %v1090_v9, 4  ;;  %v1097_v56 = vrot.slane %v3912_v25, 5 }
  0x6a   : > { %v1087_v22 = vsel %vm4171_vm7, %v1085_v6, %v1086_v60  ;;  %v1091_v29 = vsel %vm4171_vm7, %v3466_v35, %v1090_v9  ;;  %v3467_v52 = vrot.slane %v3907_v21, 9  ;;  %v4325_v35 = vld [vmem:[%s3829_s22 + $0x48] sm:$0xff] }
  0x6b   : > { %v1181_v41 = vunpack.c.l.b16 %v1087_v22  ;;  %v1182_v43 = vunpack.c.l.b16 %v1091_v29  ;;  %5308 = vst [vmem:[#allocation20_spill] sm:$0xff] %v4325_v35 }
  0x6c   : > { %v1098_v25 = vsel %vm4171_vm7, %v3467_v52, %v1097_v56 }
  0x6d   : > { %v4255_v31 = vpack.c.b16 %v1181_v41, %v1180_v61  ;;  %v1184_v21 = vunpack.c.l.b16 %v1098_v25  ;;  %v1104_v41 = vrot.slane %v3985_v7, 5  ;;  %v1111_v25 = vrot.slane %v4073_v34, 5 }
  0x6e   : > { %3479 = vmatmul.msk.bf16.vlgmr.msrb.gmra.mxu2 %vm679_vm4, %v1206_v19  ;;  %v1093_v19 = vrot.slane %v3842_v4, 5 }
  0x6f   : > { %v1106_v29 = vrot.slane %v1104_v41, 4 }
  0x70   : > { %v1094_v2 = vsel %vm4171_vm7, %v1092_v18, %v1093_v19  ;;  %v3468_v19 = vrot.slane %v3978_v63, 9 }
  0x72   : > { %v1105_v7 = vsel %vm4171_vm7, %v3468_v19, %v1104_v41  ;;  %v3469_v41 = vrot.slane %v4066_v24, 9  ;;  %v1113_v19 = vrot.slane %v1111_v25, 4 }
  0x73   : > { %3500 = vmatmul.msk.bf16.vlgmr.msrb.gmra.mxu3 %vm679_vm4, %v3675_v12  ;;  %v1186_v52 = vunpack.c.l.b16 %v1105_v7 }
  0x74   : > { %v1112_v34 = vsel %vm4171_vm7, %v3469_v41, %v1111_v25  ;;  %v3735_v41 = vld [vmem:[%s3829_s22 + $0x64] sm:$0xf] }
  0x78   : > { %3517 = vmatmul.msk.bf16.vlgmr.msrb.gmra.mxu0 %vm679_vm4, %v4024_v8  ;;  %v1077_v8 = vsel %vm4171_vm7, %v3464_v54, %v1076_v55 }
  0x79   : > { %3447 = vmatmul.msk.bf16.gmra.mxu1 %vm679_vm4, %v3675_v12  ;;  %v1178_v51 = vunpack.c.l.b16 %v1077_v8  ;;  %v1183_v12 = vunpack.c.l.b16 %v1094_v2  ;;  %v1107_v2 = vrot.slane %v3988_v13, 5 }
  0x7b   : > { %v4235_v42 = vpack.c.b16 %v1179_v47, %v1178_v51  ;;  %v4283_v4 = vpack.c.b16 %v1183_v12, %v1182_v43  ;;  %v1099_v51 = vrot.slane %v1097_v56, 4  ;;  %v1100_v47 = vrot.slane %v3915_v27, 5 }
  0x7c   : > { %v1108_v12 = vsel %vm4171_vm7, %v1106_v29, %v1107_v2  ;;  %v1114_v29 = vrot.slane %v4076_v38, 5 }
  0x7d   : > { %v1101_v33 = vsel %vm4171_vm7, %v1099_v51, %v1100_v47  ;;  %v1187_v51 = vunpack.c.l.b16 %v1108_v12 }
  0x7e   : > { %3480 = vmatmul.msk.bf16.gmra.mxu2 %vm679_vm4, %v4209_v45  ;;  %v1185_v62 = vunpack.c.l.b16 %v1101_v33  ;;  %v1115_v12 = vsel %vm4171_vm7, %v1113_v19, %v1114_v29  ;;  %v1118_v19 = vrot.slane %v3735_v41, 5 }
  0x7f   : > { %v4349_v47 = vpack.c.b16 %v1187_v51, %v1186_v52  ;;  %v1188_v52 = vunpack.c.l.b16 %v1112_v34  ;;  %v1189_v38 = vunpack.c.l.b16 %v1115_v12  ;;  %v3736_v12 = vld [vmem:[%s3829_s22 + $0x68] sm:$0x1] }
  0x80   : > { %v4315_v22 = vpack.c.b16 %v1185_v62, %v1184_v21  ;;  %v4359_v62 = vld [vmem:[%s3829_s22 + $0x54] sm:$0xff] }
  0x81   : > { %5311 = vst [vmem:[#allocation23_spill] sm:$0xff] %v4349_v47 }
  0x82   : > { %5312 = vst [vmem:[#allocation24_spill] sm:$0xff] %v4359_v62 }
  0x83   : > { %3501 = vmatmul.msk.bf16.gmra.mxu3 %vm679_vm4, %v4221_v53 }
  0x88   : > { %3518 = vmatmul.msk.bf16.gmra.mxu0 %vm679_vm4, %v4112_v48 }
  0x89   : > { %3448 = vmatmul.msk.bf16.gmra.mxu1 %vm679_vm4, %v4221_v53 }
  0x8e   : > { %3481 = vmatmul.msk.bf16.gmra.mxu2 %vm679_vm4, %v4235_v42 }
  0x93   : > { %3502 = vmatmul.msk.bf16.gmra.mxu3 %vm679_vm4, %v4241_v49 }
  0x98   : > { %3519 = vmatmul.msk.bf16.gmra.mxu0 %vm679_vm4, %v4202_v3 }
  0x99   : > { %3449 = vmatmul.msk.bf16.gmra.mxu1 %vm679_vm4, %v4241_v49 }
  0x9d   : > { %v4258_v15 = vpop.f32.mrf.mxu1 }
  0x9e   : > { %3482 = vmatmul.msk.bf16.gmra.mxu2 %vm679_vm4, %v4255_v31 }
  0xa3   : > { %3503 = vmatmul.msk.bf16.gmra.mxu3 %vm679_vm4, %v4263_v17 }
  0xa5   : > { %v4273_v40 = vpop.f32.mrf.mxu1 }
  0xa6   : > { %v4275_v55 = vpop.f32.mrf.mxu2 }
  0xa8   : > { %3520 = vmatmul.msk.bf16.gmra.mxu0 %vm679_vm4, %v3876_v58 }
  0xa9   : > { %3450 = vmatmul.msk.bf16.gmra.mxu1 %vm679_vm4, %v4263_v17 }
  0xab   : > { %v4281_v1 = vpop.f32.mrf.mxu0  ;;  %v4285_v54 = vpop.f32.mrf.mxu3 }
  0xac   : > { %5306 = vst [vmem:[#allocation18_spill] sm:$0xff] %v4285_v54 }
  0xae   : > { %3483 = vmatmul.msk.bf16.gmra.mxu2 %vm679_vm4, %v4283_v4  ;;  %v4297_v59 = vpop.f32.mrf.mxu2 }
  0xb0   : > { %v4293_v8 = vpop.f32.mrf.mxu1 }
  0xb3   : > { %3504 = vmatmul.msk.bf16.gmra.mxu3 %vm679_vm4, %v4291_v57  ;;  %v4305_v6 = vpop.f32.mrf.mxu0  ;;  %v4307_v60 = vpop.f32.mrf.mxu3 }
  0xb4   : > { %5307 = vst [vmem:[#allocation19_spill] sm:$0xff] %v4307_v60 }
  0xb8   : > { %3521 = vmatmul.msk.bf16.gmra.mxu0 %vm679_vm4, %v3958_v36  ;;  %v4311_v27 = vpop.f32.mrf.mxu1 }
  0xb9   : > { %3451 = vmatmul.msk.bf16.gmra.mxu1 %vm679_vm4, %v4291_v57 }
  0xbb   : > { %v4317_v61 = vpop.f32.mrf.mxu2 }
  0xbe   : > { %3484 = vmatmul.msk.bf16.gmra.mxu2 %vm679_vm4, %v4315_v22 }
  0xbf   : > { %v4320_v9 = vpop.f32.mrf.mxu0 }
  0xc0   : > { %v4327_v18 = vpop.f32.mrf.mxu3 }
  0xc1   : > { %5309 = vst [vmem:[#allocation21_spill] sm:$0xff] %v4327_v18  ;;  %v4394_v18 = vld [vmem:[%s3829_s22 + $0x60] sm:$0xff] }
  0xc2   : > { %v4331_v43 = vpop.f32.mrf.mxu1  ;;  %5316 = vst [vmem:[#allocation28_spill] sm:$0xff] %v4394_v18 }
  0xc3   : > { %3505 = vmatmul.msk.bf16.gmra.mxu3 %vm679_vm4, %v4325_v35  ;;  %v4339_v56 = vpop.f32.mrf.mxu2 }
  0xc7   : > { %v4341_v63 = vpop.f32.mrf.mxu0 }
  0xc8   : > { %3522 = vmatmul.msk.bf16.gmra.mxu0 %vm679_vm4, %v4042_v37  ;;  %v4345_v13 = vpop.f32.mrf.mxu3 }
  0xc9   : > { %5310 = vst [vmem:[#allocation22_spill] sm:$0xff] %v4345_v13  ;;  %3452 = vmatmul.msk.bf16.gmra.mxu1 %vm679_vm4, %v4325_v35  ;;  %v1121_v13 = vrot.slane %v3736_v12, 5 }
  0xca   : > { %v4352_v33 = vpop.f32.mrf.mxu1 }
  0xce   : > { %3485 = vmatmul.msk.bf16.gmra.mxu2 %vm679_vm4, %v4349_v47  ;;  %v4356_v21 = vpop.f32.mrf.mxu2 }
  0xd1   : > { %v4363_v2 = vpop.f32.mrf.mxu0 }
  0xd2   : > { %v4365_v7 = vpop.f32.mrf.mxu3 }
  0xd3   : > { %5313 = vst [vmem:[#allocation25_spill] sm:$0xff] %v4365_v7  ;;  %3506 = vmatmul.msk.bf16.gmra.mxu3 %vm679_vm4, %v4359_v62  ;;  %v4381_v7 = vpack.c.b16 %v1189_v38, %v1188_v52 }
  0xd5   : > { %5314 = vst [vmem:[#allocation26_spill] sm:$0xff] %v4381_v7 }
  0xd6   : > { %v4373_v24 = vpop.f32.mrf.mxu1  ;;  %v4375_v51 = vpop.f32.mrf.mxu2 }
  0xd8   : > { %3523 = vmatmul.msk.bf16.gmra.mxu0 %vm679_vm4, %v4134_v28  ;;  %v3737_v28 = vld [vmem:[%s3829_s22 + $0x60] sm:$0xf] }
  0xd9   : > { %3453 = vmatmul.msk.bf16.gmra.mxu1 %vm679_vm4, %v4359_v62  ;;  %v4383_v25 = vpop.f32.mrf.mxu0  ;;  %v3470_v60 = vrot.slane %v3737_v28, 9  ;;  %v1120_v62 = vrot.slane %v1118_v19, 4 }
  0xda   : > { %v4386_v29 = vpop.f32.mrf.mxu3 }
  0xdb   : > { %5315 = vst [vmem:[#allocation27_spill] sm:$0xff] %v4386_v29  ;;  %v1119_v38 = vsel %vm4171_vm7, %v3470_v60, %v1118_v19  ;;  %v1122_v41 = vsel %vm4171_vm7, %v1120_v62, %v1121_v13  ;;  %v1125_v13 = vrot.slane %v3933_v44, 5 }
  0xdc   : > { %v1190_v47 = vunpack.c.l.b16 %v1119_v38  ;;  %v1191_v28 = vunpack.c.l.b16 %v1122_v41  ;;  %v4427_v38 = vld [vmem:[%s3829_s22 + $0x6c] sm:$0xff] }
  0xde   : > { %3486 = vmatmul.msk.bf16.gmra.mxu2 %vm679_vm4, %v4381_v7  ;;  %v4390_v34 = vpop.f32.mrf.mxu1  ;;  %v4416_v60 = vpack.c.b16 %v1191_v28, %v1190_v47  ;;  %v1127_v47 = vrot.slane %v1125_v13, 4 }
  0xe0   : > { %5319 = vst [vmem:[#allocation31_spill] sm:$0xff] %v4416_v60 }
  0xe1   : > { %v4397_v52 = vpop.f32.mrf.mxu2 }
  0xe3   : > { %3507 = vmatmul.msk.bf16.gmra.mxu3 %vm679_vm4, %v4394_v18 }
  0xe5   : > { %v4405_v29 = vpop.f32.mrf.mxu0 }
  0xe6   : > { %v4407_v12 = vpop.f32.mrf.mxu3  ;;  %v961_v7 = vpop.f32.mrf.mxu1 }
  0xe7   : > { %5317 = vst [vmem:[#allocation29_spill] sm:$0xff] %v4407_v12  ;;  %v962_v37 = vadd.f32 %v961_v7, %v4281_v1  ;;  %v1128_v7 = vrot.slane %v3939_v50, 5  ;;  %v3471_v12 = vrot.slane %v3920_v32, 9 }
  0xe8   : > { %3524 = vmatmul.msk.bf16.gmra.mxu0 %vm679_vm4, %v3889_v10 }
  0xe9   : > { %v4412_v54 = vpop.f32.mrf.mxu2  ;;  %3454 = vmatmul.msk.bf16.gmra.mxu1 %vm679_vm4, %v4394_v18  ;;  %v1126_v44 = vsel %vm4171_vm7, %v3471_v12, %v1125_v13 }
  0xea   : > { %5318 = vst [vmem:[#allocation30_spill] sm:$0xff] %v4412_v54  ;;  %v1192_v35 = vunpack.c.l.b16 %v1126_v44 }
  0xed   : > { %v4419_v62 = vpop.f32.mrf.mxu0 }
  0xee   : > { %v4421_v19 = vpop.f32.mrf.mxu3  ;;  %3487 = vmatmul.msk.bf16.gmra.mxu2 %vm679_vm4, %v4416_v60  ;;  %v963_v1 = vpop.f32.mrf.mxu1 }
  0xef   : > { %5320 = vst [vmem:[#allocation32_spill] sm:$0xff] %v4421_v19  ;;  %v964_v41 = vadd.f32 %v963_v1, %v4305_v6  ;;  %v1129_v19 = vsel %vm4171_vm7, %v1127_v47, %v1128_v7  ;;  %v1132_v7 = vrot.slane %v4005_v39, 5 }
  0xf0   : > { %v1193_v54 = vunpack.c.l.b16 %v1129_v19  ;;  %v1135_v19 = vrot.slane %v4010_v46, 5 }
  0xf1   : > { %v1282_v28 = vpop.f32.mrf.mxu2 }
  0xf2   : > { %v1362_v10 = vadd.f32 %v1282_v28, %v962_v37  ;;  %v4444_v1 = vpack.c.b16 %v1193_v54, %v1192_v35  ;;  %v4451_v28 = vld [vmem:[%s3829_s22 + $0x78] sm:$0xff] }
  0xf3   : > { %3508 = vmatmul.msk.bf16.gmra.mxu3 %vm679_vm4, %v4427_v38 }
  0xf5   : > { %v1572_v60 = vpop.f32.mrf.mxu0 }
  0xf6   : > { %v1416_v50 = vpop.f32.mrf.mxu3  ;;  %v966_v18 = vpop.f32.mrf.mxu1 }
  0xf7   : > { %v1496_v6 = vadd.f32 %v1416_v50, %v1362_v10  ;;  %v967_v32 = vadd.f32 %v966_v18, %v4320_v9 }
  0xf8   : > { %3525 = vmatmul.msk.bf16.gmra.mxu0 %vm679_vm4, %v3980_v0 }
  0xf9   : > { %v1284_v37 = vpop.f32.mrf.mxu2  ;;  %3455 = vmatmul.msk.bf16.gmra.mxu1 %vm679_vm4, %v4427_v38  ;;  %v4442_v12 = vadd.f32 %v1572_v60, %v1496_v6  ;;  %v3472_v60 = vrot.slane %v3999_v23, 9 }
  0xfa   : > { %v1363_v13 = vadd.f32 %v1284_v37, %v964_v41  ;;  %v1134_v41 = vrot.slane %v1132_v7, 4 }
  0xfb   : > { %v1133_v46 = vsel %vm4171_vm7, %v3472_v60, %v1132_v7 }
  0xfc   : > { %v1136_v50 = vsel %vm4171_vm7, %v1134_v41, %v1135_v19  ;;  %v1142_v41 = vrot.slane %v4098_v30, 5 }
  0xfd   : > { %v1574_v47 = vpop.f32.mrf.mxu0 }
  0xfe   : > { %v1418_v10 = vpop.f32.mrf.mxu3  ;;  %3488 = vmatmul.msk.bf16.gmra.mxu2 %vm679_vm4, %v4444_v1  ;;  %v968_v9 = vpop.f32.mrf.mxu1 }
  0xff   : > { %v1497_v18 = vadd.f32 %v1418_v10, %v1363_v13  ;;  %v969_v44 = vadd.f32 %v968_v9, %v4341_v63  ;;  %v1194_v63 = vunpack.c.l.b16 %v1133_v46  ;;  %v1195_v10 = vunpack.c.l.b16 %v1136_v50  ;;  %v4477_v46 = vld [vmem:[%s3829_s22 + $0x84] sm:$0xff] }
 0x101   : > { %v1287_v54 = vpop.f32.mrf.mxu2  ;;  %v4455_v35 = vadd.f32 %v1574_v47, %v1497_v18  ;;  %v4470_v19 = vpack.c.b16 %v1195_v10, %v1194_v63  ;;  %v1139_v18 = vrot.slane %v4093_v16, 5 }
 0x102   : > { %v1364_v39 = vadd.f32 %v1287_v54, %v967_v32 }
 0x103   : > { %3509 = vmatmul.msk.bf16.gmra.mxu3 %vm679_vm4, %v4451_v28 }
 0x105   : > { %v1577_v6 = vpop.f32.mrf.mxu0 }
 0x106   : > { %v1421_v37 = vpop.f32.mrf.mxu3  ;;  %v971_v13 = vpop.f32.mrf.mxu1 }
 0x107   : > { %v1498_v23 = vadd.f32 %v1421_v37, %v1364_v39  ;;  %v972_v47 = vadd.f32 %v971_v13, %v4363_v2 }
 0x108   : > { %3526 = vmatmul.msk.bf16.gmra.mxu0 %vm679_vm4, %v4068_v20 }
 0x109   : > { %v1289_v32 = vpop.f32.mrf.mxu2  ;;  %3456 = vmatmul.msk.bf16.gmra.mxu1 %vm679_vm4, %v4451_v28  ;;  %v4468_v7 = vadd.f32 %v1577_v6, %v1498_v23  ;;  %v3473_v6 = vrot.slane %v4088_v5, 9 }
 0x10a   : > { %v1365_v9 = vadd.f32 %v1289_v32, %v969_v44  ;;  %v1141_v44 = vrot.slane %v1139_v18, 4 }
 0x10b   : > { %v1140_v30 = vsel %vm4171_vm7, %v3473_v6, %v1139_v18 }
 0x10c   : > { %v1143_v63 = vsel %vm4171_vm7, %v1141_v44, %v1142_v41  ;;  %v1196_v5 = vunpack.c.l.b16 %v1140_v30 }
 0x10d   : > { %v1579_v60 = vpop.f32.mrf.mxu0  ;;  %v1197_v32 = vunpack.c.l.b16 %v1143_v63 }
 0x10e   : > { %v1423_v54 = vpop.f32.mrf.mxu3  ;;  %3489 = vmatmul.msk.bf16.gmra.mxu2 %vm679_vm4, %v4470_v19  ;;  %v973_v2 = vpop.f32.mrf.mxu1 }
 0x10f   : > { %v1499_v39 = vadd.f32 %v1423_v54, %v1365_v9  ;;  %v974_v50 = vadd.f32 %v973_v2, %v4383_v25  ;;  %v4496_v2 = vpack.c.b16 %v1197_v32, %v1196_v5 }
 0x111   : > { %v1292_v37 = vpop.f32.mrf.mxu2  ;;  %v4481_v13 = vadd.f32 %v1579_v60, %v1499_v39  ;;  %5323 = vst [vmem:[#allocation34_spill] sm:$0xff] %v4496_v2  ;;  %v3738_v39 = vld [vmem:[%s3829_s22 + $0x94] sm:$0xf] }
 0x112   : > { %v1366_v16 = vadd.f32 %v1292_v37, %v972_v47  ;;  %v5321_v47 = vld [vmem:[#allocation17_spill] sm:$0xff]  ;;  %v1146_v6 = vrot.slane %v3738_v39, 5  ;;  %v3739_v37 = vld [vmem:[%s3829_s22 + $0x98] sm:$0x1] }
 0x113   : > { %3510 = vmatmul.msk.bf16.gmra.mxu3 %vm679_vm4, %v4477_v46 }
 0x115   : > { %v1582_v10 = vpop.f32.mrf.mxu0 }
 0x116   : > { %v1426_v25 = vpop.f32.mrf.mxu3  ;;  %v976_v23 = vpop.f32.mrf.mxu1 }
 0x117   : > { %v1500_v9 = vadd.f32 %v1426_v25, %v1366_v16  ;;  %v977_v60 = vadd.f32 %v976_v23, %v4405_v29  ;;  %v1149_v16 = vrot.slane %v3739_v37, 5  ;;  %v4503_v25 = vld [vmem:[%s3829_s22 + $0x90] sm:$0xff] }
 0x118   : > { %3527 = vmatmul.msk.bf16.gmra.mxu0 %vm679_vm4, %v5321_v47  ;;  %5324 = vst [vmem:[#allocation35_spill] sm:$0xff] %v4503_v25 }
 0x119   : > { %v1294_v54 = vpop.f32.mrf.mxu2  ;;  %3457 = vmatmul.msk.bf16.gmra.mxu1 %vm679_vm4, %v4477_v46  ;;  %v4494_v18 = vadd.f32 %v1582_v10, %v1500_v9  ;;  %v3740_v10 = vld [vmem:[%s3829_s22 + $0x90] sm:$0xf] }
 0x11a   : > { %v1367_v41 = vadd.f32 %v1294_v54, %v974_v50  ;;  %v3474_v9 = vrot.slane %v3740_v10, 9  ;;  %v1148_v50 = vrot.slane %v1146_v6, 4 }
 0x11b   : > { %5322 = vst [vmem:[#allocation33_spill] sm:$0xff] %v4494_v18 }
 0x11c   : > { %v1147_v39 = vsel %vm4171_vm7, %v3474_v9, %v1146_v6  ;;  %v3741_v9 = vld [vmem:[%s3829_s22 + $0xa0] sm:$0xf] }
 0x11d   : > { %v1584_v44 = vpop.f32.mrf.mxu0 }
 0x11e   : > { %v1428_v29 = vpop.f32.mrf.mxu3  ;;  %3490 = vmatmul.msk.bf16.gmra.mxu2 %vm679_vm4, %v4496_v2  ;;  %v978_v30 = vpop.f32.mrf.mxu1  ;;  %v3743_v2 = vld [vmem:[%s3829_s22 + $0x9c] sm:$0xf] }
 0x11f   : > { %v1501_v63 = vadd.f32 %v1428_v29, %v1367_v41  ;;  %v979_v23 = vadd.f32 %v978_v30, %v4419_v62  ;;  %v1150_v41 = vsel %vm4171_vm7, %v1148_v50, %v1149_v16  ;;  %v1198_v30 = vunpack.c.l.b16 %v1147_v39 }
 0x120   : > { %v1199_v10 = vunpack.c.l.b16 %v1150_v41  ;;  %v1153_v50 = vrot.slane %v3741_v9, 5  ;;  %v3742_v41 = vld [vmem:[%s3829_s22 + $0xa4] sm:$0x1] }
 0x121   : > { %v1297_v5 = vpop.f32.mrf.mxu2  ;;  %v4507_v32 = vadd.f32 %v1584_v44, %v1501_v63  ;;  %v5326_v44 = vld [vmem:[#allocation6_spill] sm:$0xff] }
 0x122   : > { %v1368_v54 = vadd.f32 %v1297_v5, %v977_v60  ;;  %v4521_v16 = vpack.c.b16 %v1199_v10, %v1198_v30 }
 0x123   : > { %5325 = vst [vmem:[#allocation36_spill] sm:$0xff] %v4507_v32  ;;  %3511 = vmatmul.msk.bf16.gmra.mxu3 %vm679_vm4, %v4503_v25  ;;  %v4528_v32 = vld [vmem:[%s3829_s22 + $0x9c] sm:$0xff] }
 0x124   : > { %5328 = vst [vmem:[#allocation38_spill] sm:$0xff] %v4521_v16 }
 0x125   : > { %v1587_v37 = vpop.f32.mrf.mxu0  ;;  %5329 = vst [vmem:[#allocation39_spill] sm:$0xff] %v4528_v32 }
 0x126   : > { %v1431_v29 = vpop.f32.mrf.mxu3  ;;  %v981_v62 = vpop.f32.mrf.mxu1 }
 0x127   : > { %v1502_v18 = vadd.f32 %v1431_v29, %v1368_v54  ;;  %v1156_v29 = vrot.slane %v3742_v41, 5 }
 0x128   : > { %3528 = vmatmul.msk.bf16.gmra.mxu0 %vm679_vm4, %v5326_v44 }
 0x129   : > { %v1299_v60 = vpop.f32.mrf.mxu2  ;;  %3458 = vmatmul.msk.bf16.gmra.mxu1 %vm679_vm4, %v4503_v25  ;;  %v4519_v6 = vadd.f32 %v1587_v37, %v1502_v18  ;;  %v3475_v25 = vrot.slane %v3743_v2, 9  ;;  %v1155_v18 = vrot.slane %v1153_v50, 4 }
 0x12a   : > { %v1369_v63 = vadd.f32 %v1299_v60, %v979_v23  ;;  %v982_v23 = vadd.f32 %v981_v62, %v4258_v15  ;;  %v5331_v62 = vld [vmem:[#allocation7_spill] sm:$0xff] }
 0x12b   : > { %5327 = vst [vmem:[#allocation37_spill] sm:$0xff] %v4519_v6  ;;  %v1154_v60 = vsel %vm4171_vm7, %v3475_v25, %v1153_v50 }
 0x12c   : > { %v1200_v2 = vunpack.c.l.b16 %v1154_v60 }
 0x12d   : > { %v1589_v5 = vpop.f32.mrf.mxu0 }
 0x12e   : > { %v1433_v39 = vpop.f32.mrf.mxu3  ;;  %3491 = vmatmul.msk.bf16.gmra.mxu2 %vm679_vm4, %v4521_v16  ;;  %v983_v54 = vpop.f32.mrf.mxu1 }
 0x12f   : > { %v1503_v44 = vadd.f32 %v1433_v39, %v1369_v63  ;;  %v1157_v63 = vsel %vm4171_vm7, %v1155_v18, %v1156_v29  ;;  %v5334_v18 = vld [vmem:[#allocation9_spill] sm:$0xff] }
 0x130   : > { %v1201_v6 = vunpack.c.l.b16 %v1157_v63  ;;  %v5335_v63 = vld [vmem:[#allocation10_spill] sm:$0xff] }
 0x131   : > { %v1302_v37 = vpop.f32.mrf.mxu2  ;;  %v4532_v30 = vadd.f32 %v1589_v5, %v1503_v44  ;;  %v984_v44 = vadd.f32 %v983_v54, %v4273_v40  ;;  %v4554_v54 = vld [vmem:[%s3829_s22 + $0xa8] sm:$0xff] }
 0x132   : > { %v1370_v10 = vadd.f32 %v1302_v37, %v982_v23  ;;  %v4547_v29 = vpack.c.b16 %v1201_v6, %v1200_v2  ;;  %v1160_v23 = vrot.slane %v5334_v18, 5  ;;  %5336 = vst [vmem:[#allocation9_spill] sm:$0xff] %v4554_v54 }
 0x133   : > { %5330 = vst [vmem:[#allocation40_spill] sm:$0xff] %v4532_v30  ;;  %3512 = vmatmul.msk.bf16.gmra.mxu3 %vm679_vm4, %v4528_v32 }
 0x134   : > { %5333 = vst [vmem:[#allocation42_spill] sm:$0xff] %v4547_v29 }
 0x135   : > { %v1592_v9 = vpop.f32.mrf.mxu0 }
 0x136   : > { %v1436_v39 = vpop.f32.mrf.mxu3  ;;  %v986_v41 = vpop.f32.mrf.mxu1 }
 0x137   : > { %v1504_v15 = vadd.f32 %v1436_v39, %v1370_v10  ;;  %v1163_v39 = vrot.slane %v5335_v63, 5 }
 0x138   : > { %3529 = vmatmul.msk.bf16.gmra.mxu0 %vm679_vm4, %v5331_v62  ;;  %v5337_v62 = vld [vmem:[#allocation8_spill] sm:$0xff] }
 0x139   : > { %v1304_v5 = vpop.f32.mrf.mxu2  ;;  %3459 = vmatmul.msk.bf16.gmra.mxu1 %vm679_vm4, %v4528_v32  ;;  %v4545_v25 = vadd.f32 %v1592_v9, %v1504_v15  ;;  %v3476_v30 = vrot.slane %v5337_v62, 9  ;;  %v1162_v9 = vrot.slane %v1160_v23, 4  ;;  %v987_v15 = vadd.f32 %v986_v41, %v4293_v8 }
 0x13a   : > { %v1371_v50 = vadd.f32 %v1304_v5, %v984_v44 }
 0x13b   : > { %5332 = vst [vmem:[#allocation41_spill] sm:$0xff] %v4545_v25  ;;  %v1161_v5 = vsel %vm4171_vm7, %v3476_v30, %v1160_v23  ;;  %v5339_v25 = vld [vmem:[#allocation12_spill] sm:$0xff] }
 0x13c   : > { %v1202_v63 = vunpack.c.l.b16 %v1161_v5  ;;  %v4572_v30 = vld [vmem:[%s3829_s22 + $0xc0] sm:$0xf] }
 0x13d   : > { %v1594_v37 = vpop.f32.mrf.mxu0  ;;  %5340 = vst [vmem:[#allocation8_spill] sm:$0xff] %v4572_v30  ;;  %v1529_v5 = vshrl.u32 %v4572_v30, 16 }
 0x13e   : > { %v1438_v60 = vpop.f32.mrf.mxu3  ;;  %3492 = vmatmul.msk.bf16.gmra.mxu2 %vm679_vm4, %v4547_v29  ;;  %v988_v10 = vpop.f32.mrf.mxu1 }
 0x13f   : > { %v1505_v40 = vadd.f32 %v1438_v60, %v1371_v50  ;;  %v1164_v50 = vsel %vm4171_vm7, %v1162_v9, %v1163_v39 }
 0x140   : > { %v1203_v8 = vunpack.c.l.b16 %v1164_v50 }
 0x141   : > { %v1307_v6 = vpop.f32.mrf.mxu2  ;;  %v4558_v2 = vadd.f32 %v1594_v37, %v1505_v40  ;;  %v989_v37 = vadd.f32 %v988_v10, %v4311_v27  ;;  %v1532_v27 = vshll.u32 %v4572_v30, 16 }
 0x142   : > { %v1372_v44 = vadd.f32 %v1307_v6, %v987_v15  ;;  %v4576_v9 = vpack.c.b16 %v1203_v8, %v1202_v63  ;;  %v4579_v15 = vld [vmem:[%s3829_s22 + $0xc4] sm:$0xf]  ;;  %v5344_v6 = vld [vmem:[#allocation14_spill] sm:$0xff]  ;;  %v5345_v63 = vld [vmem:[#allocation15_spill] sm:$0xff] }
 0x143   : > { %5338 = vst [vmem:[#allocation10_spill] sm:$0xff] %v4558_v2  ;;  %3513 = vmatmul.msk.bf16.gmra.mxu3 %vm679_vm4, %v4554_v54  ;;  %v1538_v10 = vshll.u32 %v4579_v15, 16  ;;  %v1170_v8 = vrot.slane %v5345_v63, 5  ;;  %v1531_v2 = vrot.slane %v1529_v5, 4  ;;  %v1534_v29 = vrot.slane %v1532_v27, 5 }
 0x144   : > { %5342 = vst [vmem:[#allocation44_spill] sm:$0xff] %v4576_v9 }
 0x145   : > { %v1597_v18 = vpop.f32.mrf.mxu0  ;;  %5343 = vst [vmem:[#allocation45_spill] sm:$0xff] %v4579_v15 }
 0x146   : > { %v1441_v62 = vpop.f32.mrf.mxu3  ;;  %v991_v60 = vpop.f32.mrf.mxu1 }
 0x147   : > { %v1506_v41 = vadd.f32 %v1441_v62, %v1372_v44  ;;  %v1167_v44 = vrot.slane %v5344_v6, 5  ;;  %v1542_v62 = vshrl.u32 %v4579_v15, 16  ;;  %v992_v30 = vadd.f32 %v991_v60, %v4331_v43 }
 0x148   : > { %3530 = vmatmul.msk.bf16.gmra.mxu0 %vm679_vm4, %v5339_v25  ;;  %v1540_v15 = vrot.slane %v1538_v10, 5  ;;  %v1535_v60 = vor.u32 %v1534_v29, %v1531_v2 }
 0x149   : > { %v1309_v40 = vpop.f32.mrf.mxu2  ;;  %3460 = vmatmul.msk.bf16.gmra.mxu1 %vm679_vm4, %v4554_v54  ;;  %v4574_v23 = vadd.f32 %v1597_v18, %v1506_v41  ;;  %v1544_v32 = vrot.slane %v1542_v62, 4 }
 0x14a   : > { %v1373_v39 = vadd.f32 %v1309_v40, %v989_v37  ;;  %v4590_v37 = vld [vmem:[%s3829_s22 + $0xb4] sm:$0xff]  ;;  %v5346_v40 = vld [vmem:[#allocation13_spill] sm:$0xff] }
 0x14b   : > { %5341 = vst [vmem:[#allocation43_spill] sm:$0xff] %v4574_v23  ;;  %v3477_v6 = vrot.slane %v5346_v40, 9  ;;  %v1169_v23 = vrot.slane %v1167_v44, 4  ;;  %v1545_v5 = vor.u32 %v1544_v32, %v1540_v15 }
 0x14d   : > { %v1599_v50 = vpop.f32.mrf.mxu0  ;;  %v1546_v29 = vrot.slane %v1545_v5, 4 }
 0x14e   : > { %v1443_v25 = vpop.f32.mrf.mxu3  ;;  %3493 = vmatmul.msk.bf16.gmra.mxu2 %vm679_vm4, %v4576_v9  ;;  %v993_v18 = vpop.f32.mrf.mxu1  ;;  %v4597_v9 = vld [vmem:[%s3829_s22 + $0xc8] sm:$0x1] }
 0x14f   : > { %v1507_v41 = vadd.f32 %v1443_v25, %v1373_v39  ;;  %v1168_v25 = vsel %vm4171_vm7, %v3477_v6, %v1167_v44  ;;  %v1171_v39 = vsel %vm4171_vm7, %v1169_v23, %v1170_v8  ;;  %v1548_v27 = vshll.u32 %v4597_v9, 16 }
 0x150   : > { %v1204_v62 = vunpack.c.l.b16 %v1168_v25  ;;  %v994_v63 = vadd.f32 %v993_v18, %v4352_v33  ;;  %v1536_v23 = vrot.slane %v1535_v60, 4 }
 0x151   : > { %v1312_v54 = vpop.f32.mrf.mxu2  ;;  %v4594_v16 = vadd.f32 %v1599_v50, %v1507_v41  ;;  %v1550_v32 = vrot.slane %v1548_v27, 5 }
 0x152   : > { %v1374_v47 = vadd.f32 %v1312_v54, %v992_v30  ;;  %v1205_v54 = vunpack.c.l.b16 %v1171_v39  ;;  %v4622_v39 = vld [vmem:[%s3829_s22 + $0xc0] sm:$0xff] }
 0x153   : > { %3514 = vmatmul.msk.bf16.gmra.mxu3 %vm679_vm4, %v4590_v37  ;;  %v1551_v33 = vsel %vm3856_vm3, %v1546_v29, %v1550_v32 }
 0x154   : > { %v4613_v41 = vpack.c.b16 %v1205_v54, %v1204_v62  ;;  %v1555_v5 = vunpack.c.l.b16 %v1551_v33 }
 0x155   : > { %v1602_v43 = vpop.f32.mrf.mxu0 }
 0x156   : > { %v1446_v10 = vpop.f32.mrf.mxu3  ;;  %v996_v50 = vpop.f32.mrf.mxu1 }
 0x157   : > { %v1508_v30 = vadd.f32 %v1446_v10, %v1374_v47  ;;  %v1541_v47 = vsel %vm3856_vm3, %v1536_v23, %v1540_v15 }
 0x158   : > { %3531 = vmatmul.msk.bf16.gmra.mxu0 %vm679_vm4, %v4183_v11  ;;  %v1554_v60 = vunpack.c.l.b16 %v1541_v47 }
 0x159   : > { %v1314_v44 = vpop.f32.mrf.mxu2  ;;  %3461 = vmatmul.msk.bf16.gmra.mxu1 %vm679_vm4, %v4590_v37  ;;  %v4611_v2 = vadd.f32 %v1602_v43, %v1508_v30  ;;  %v997_v43 = vadd.f32 %v996_v50, %v4373_v24 }
 0x15a   : > { %v1375_v8 = vadd.f32 %v1314_v44, %v994_v63  ;;  %v4629_v15 = vpack.c.b16 %v1555_v5, %v1554_v60 }
 0x15d   : > { %v1604_v40 = vpop.f32.mrf.mxu0 }
 0x15e   : > { %v1448_v18 = vpop.f32.mrf.mxu3  ;;  %3494 = vmatmul.msk.bf16.gmra.mxu2 %vm679_vm4, %v4613_v41  ;;  %v998_v6 = vpop.f32.mrf.mxu1 }
 0x15f   : > { %v1509_v25 = vadd.f32 %v1448_v18, %v1375_v8  ;;  %v999_v24 = vadd.f32 %v998_v6, %v4390_v34 }
 0x161   : > { %v1317_v27 = vpop.f32.mrf.mxu2  ;;  %v4625_v10 = vadd.f32 %v1604_v40, %v1509_v25 }
 0x162   : > { %v1376_v62 = vadd.f32 %v1317_v27, %v997_v43 }
 0x163   : > { %3515 = vmatmul.msk.bf16.gmra.mxu3 %vm679_vm4, %v4622_v39 }
 0x165   : > { %v1607_v54 = vpop.f32.mrf.mxu0 }
 0x166   : > { %v1451_v30 = vpop.f32.mrf.mxu3  ;;  %v1001_v63 = vpop.f32.mrf.mxu1 }
 0x167   : > { %v1510_v44 = vadd.f32 %v1451_v30, %v1376_v62  ;;  %v1002_v33 = vadd.f32 %v1001_v63, %v4275_v55 }
 0x168   : > { %3532 = vmatmul.msk.bf16.gmra.mxu0 %vm679_vm4, %v4629_v15 }
 0x169   : > { %v1319_v50 = vpop.f32.mrf.mxu2  ;;  %3535 = vmatmul.msk.bf16.vlgmr.msra.gmra.mxu1 %vm679_vm4, %v4209_v45  ;;  %v4636_v23 = vadd.f32 %v1607_v54, %v1510_v44 }
 0x16a   : > { %v1377_v29 = vadd.f32 %v1319_v50, %v999_v24 }
 0x16d   : > { %v1609_v32 = vpop.f32.mrf.mxu0 }
 0x16e   : > { %v1453_v8 = vpop.f32.mrf.mxu3  ;;  %3556 = vmatmul.msk.bf16.vlgmr.msra.gmra.mxu2 %vm679_vm4, %v4221_v53  ;;  %v1003_v40 = vpop.f32.mrf.mxu1 }
 0x16f   : > { %v1511_v47 = vadd.f32 %v1453_v8, %v1377_v29  ;;  %v1004_v53 = vadd.f32 %v1003_v40, %v4297_v59 }
 0x171   : > { %v1322_v18 = vpop.f32.mrf.mxu2  ;;  %v4641_v25 = vadd.f32 %v1609_v32, %v1511_v47 }
 0x172   : > { %v1378_v34 = vadd.f32 %v1322_v18, %v1002_v33 }
 0x173   : > { %3573 = vmatmul.msk.bf16.vlgmr.msra.gmra.mxu3 %vm679_vm4, %v4112_v48 }
 0x175   : > { %v1612_v45 = vpop.f32.mrf.mxu0 }
 0x176   : > { %v1456_v6 = vpop.f32.mrf.mxu3  ;;  %v1006_v43 = vpop.f32.mrf.mxu1 }
 0x177   : > { %v1512_v60 = vadd.f32 %v1456_v6, %v1378_v34  ;;  %v1007_v63 = vadd.f32 %v1006_v43, %v4317_v61 }
 0x178   : > { %3591 = vmatmul.msk.bf16.vlgmr.msra.gmra.mxu0 %vm679_vm4, %v4235_v42 }
 0x179   : > { %v1324_v5 = vpop.f32.mrf.mxu2  ;;  %3536 = vmatmul.msk.bf16.gmra.mxu1 %vm679_vm4, %v4235_v42  ;;  %v4650_v55 = vadd.f32 %v1612_v45, %v1512_v60 }
 0x17a   : > { %v1379_v27 = vadd.f32 %v1324_v5, %v1004_v53 }
 0x17d   : > { %v1614_v62 = vpop.f32.mrf.mxu0 }
 0x17e   : > { %v1458_v54 = vpop.f32.mrf.mxu3  ;;  %3557 = vmatmul.msk.bf16.gmra.mxu2 %vm679_vm4, %v4241_v49  ;;  %v1008_v48 = vpop.f32.mrf.mxu1 }
 0x17f   : > { %v1513_v30 = vadd.f32 %v1458_v54, %v1379_v27  ;;  %v1009_v49 = vadd.f32 %v1008_v48, %v4339_v56 }
 0x181   : > { %v1327_v44 = vpop.f32.mrf.mxu2  ;;  %v4655_v24 = vadd.f32 %v1614_v62, %v1513_v30 }
 0x182   : > { %v1380_v59 = vadd.f32 %v1327_v44, %v1007_v63 }
 0x183   : > { %3574 = vmatmul.msk.bf16.gmra.mxu3 %vm679_vm4, %v4202_v3 }
 0x185   : > { %v1617_v42 = vpop.f32.mrf.mxu0 }
 0x186   : > { %v1461_v50 = vpop.f32.mrf.mxu3  ;;  %v1011_v29 = vpop.f32.mrf.mxu1 }
 0x187   : > { %v1514_v32 = vadd.f32 %v1461_v50, %v1380_v59  ;;  %v1012_v34 = vadd.f32 %v1011_v29, %v4356_v21  ;;  %v5347_v29 = vld [vmem:[#allocation30_spill] sm:$0xff] }
 0x188   : > { %3592 = vmatmul.msk.bf16.gmra.mxu0 %vm679_vm4, %v4255_v31 }
 0x189   : > { %v1329_v8 = vpop.f32.mrf.mxu2  ;;  %3537 = vmatmul.msk.bf16.gmra.mxu1 %vm679_vm4, %v4255_v31  ;;  %v4664_v61 = vadd.f32 %v1617_v42, %v1514_v32 }
 0x18a   : > { %v1381_v40 = vadd.f32 %v1329_v8, %v1009_v49 }
 0x18d   : > { %v1619_v47 = vpop.f32.mrf.mxu0 }
 0x18e   : > { %v1463_v33 = vpop.f32.mrf.mxu3  ;;  %3558 = vmatmul.msk.bf16.gmra.mxu2 %vm679_vm4, %v4263_v17  ;;  %v1013_v3 = vpop.f32.mrf.mxu1 }
 0x18f   : > { %v1515_v18 = vadd.f32 %v1463_v33, %v1381_v40  ;;  %v1014_v17 = vadd.f32 %v1013_v3, %v4375_v51  ;;  %v5349_v3 = vld [vmem:[#allocation18_spill] sm:$0xff] }
 0x191   : > { %v1332_v45 = vpop.f32.mrf.mxu2  ;;  %v4669_v6 = vadd.f32 %v1619_v47, %v1515_v18  ;;  %v5348_v47 = vld [vmem:[#allocation20_spill] sm:$0xff] }
 0x192   : > { %v1382_v56 = vadd.f32 %v1332_v45, %v1012_v34 }
 0x193   : > { %3575 = vmatmul.msk.bf16.gmra.mxu3 %vm679_vm4, %v3876_v58 }
 0x195   : > { %v1622_v31 = vpop.f32.mrf.mxu0 }
 0x196   : > { %v1466_v43 = vpop.f32.mrf.mxu3  ;;  %v1016_v60 = vpop.f32.mrf.mxu1 }
 0x197   : > { %v1516_v53 = vadd.f32 %v1466_v43, %v1382_v56  ;;  %v1017_v30 = vadd.f32 %v1016_v60, %v4397_v52 }
 0x198   : > { %3593 = vmatmul.msk.bf16.gmra.mxu0 %vm679_vm4, %v4283_v4 }
 0x199   : > { %v1334_v5 = vpop.f32.mrf.mxu2  ;;  %3538 = vmatmul.msk.bf16.gmra.mxu1 %vm679_vm4, %v4283_v4  ;;  %v4678_v21 = vadd.f32 %v1622_v31, %v1516_v53  ;;  %v5350_v31 = vld [vmem:[#allocation11_spill] sm:$0xff] }
 0x19a   : > { %v1383_v27 = vadd.f32 %v1334_v5, %v1014_v17  ;;  %v5351_v17 = vld [vmem:[#allocation23_spill] sm:$0xff] }
 0x19b   : > { %v5352_v5 = vld [vmem:[#allocation19_spill] sm:$0xff] }
 0x19d   : > { %v1624_v62 = vpop.f32.mrf.mxu0 }
 0x19e   : > { %v1468_v54 = vpop.f32.mrf.mxu3  ;;  %3559 = vmatmul.msk.bf16.gmra.mxu2 %vm679_vm4, %v4291_v57  ;;  %v1018_v58 = vpop.f32.mrf.mxu1 }
 0x19f   : > { %v1517_v48 = vadd.f32 %v1468_v54, %v1383_v27  ;;  %v1019_v57 = vadd.f32 %v1018_v58, %v5347_v29 }
 0x1a1   : > { %v1337_v63 = vpop.f32.mrf.mxu2  ;;  %v4683_v44 = vadd.f32 %v1624_v62, %v1517_v48 }
 0x1a2   : > { %v1384_v51 = vadd.f32 %v1337_v63, %v1017_v30  ;;  %v5353_v63 = vld [vmem:[#allocation24_spill] sm:$0xff] }
 0x1a3   : > { %3576 = vmatmul.msk.bf16.gmra.mxu3 %vm679_vm4, %v3958_v36 }
 0x1a5   : > { %v1627_v4 = vpop.f32.mrf.mxu0 }
 0x1a6   : > { %v1471_v59 = vpop.f32.mrf.mxu3  ;;  %v1021_v42 = vpop.f32.mrf.mxu1 }
 0x1a7   : > { %v1518_v50 = vadd.f32 %v1471_v59, %v1384_v51  ;;  %v1022_v18 = vadd.f32 %v1021_v42, %v5349_v3  ;;  %v5354_v59 = vld [vmem:[#allocation21_spill] sm:$0xff] }
 0x1a8   : > { %3594 = vmatmul.msk.bf16.gmra.mxu0 %vm679_vm4, %v4315_v22 }
 0x1a9   : > { %v1339_v32 = vpop.f32.mrf.mxu2  ;;  %3539 = vmatmul.msk.bf16.gmra.mxu1 %vm679_vm4, %v4315_v22  ;;  %v4692_v52 = vadd.f32 %v1627_v4, %v1518_v50 }
 0x1aa   : > { %v1385_v49 = vadd.f32 %v1339_v32, %v1019_v57  ;;  %v5355_v32 = vld [vmem:[#allocation16_spill] sm:$0xff] }
 0x1ad   : > { %v1629_v8 = vpop.f32.mrf.mxu0 }
 0x1ae   : > { %v1473_v40 = vpop.f32.mrf.mxu3  ;;  %3560 = vmatmul.msk.bf16.gmra.mxu2 %vm679_vm4, %v5348_v47  ;;  %v1023_v36 = vpop.f32.mrf.mxu1 }
 0x1af   : > { %v1519_v33 = vadd.f32 %v1473_v40, %v1385_v49  ;;  %v1024_v27 = vadd.f32 %v1023_v36, %v5352_v5  ;;  %v5356_v36 = vld [vmem:[#allocation26_spill] sm:$0xff] }
 0x1b1   : > { %v1342_v34 = vpop.f32.mrf.mxu2  ;;  %v4697_v45 = vadd.f32 %v1629_v8, %v1519_v33  ;;  %v5357_v33 = vld [vmem:[#allocation22_spill] sm:$0xff] }
 0x1b2   : > { %v1386_v56 = vadd.f32 %v1342_v34, %v1022_v18 }
 0x1b3   : > { %3577 = vmatmul.msk.bf16.gmra.mxu3 %vm679_vm4, %v5350_v31 }
 0x1b5   : > { %v1632_v22 = vpop.f32.mrf.mxu0 }
 0x1b6   : > { %v1476_v43 = vpop.f32.mrf.mxu3  ;;  %v1026_v60 = vpop.f32.mrf.mxu1 }
 0x1b7   : > { %v1520_v53 = vadd.f32 %v1476_v43, %v1386_v56  ;;  %v1027_v42 = vadd.f32 %v1026_v60, %v5354_v59  ;;  %v5358_v43 = vld [vmem:[#allocation28_spill] sm:$0xff]  ;;  %v5361_v59 = vld [vmem:[#allocation31_spill] sm:$0xff] }
 0x1b8   : > { %3595 = vmatmul.msk.bf16.gmra.mxu0 %vm679_vm4, %v5351_v17 }
 0x1b9   : > { %v1344_v62 = vpop.f32.mrf.mxu2  ;;  %3540 = vmatmul.msk.bf16.gmra.mxu1 %vm679_vm4, %v5351_v17  ;;  %v4706_v54 = vadd.f32 %v1632_v22, %v1520_v53  ;;  %v5359_v17 = vld [vmem:[#allocation25_spill] sm:$0xff] }
 0x1ba   : > { %v1387_v58 = vadd.f32 %v1344_v62, %v1024_v27 }
 0x1bd   : > { %v1634_v48 = vpop.f32.mrf.mxu0 }
 0x1be   : > { %v1478_v30 = vpop.f32.mrf.mxu3  ;;  %3561 = vmatmul.msk.bf16.gmra.mxu2 %vm679_vm4, %v5353_v63  ;;  %v1028_v51 = vpop.f32.mrf.mxu1 }
 0x1bf   : > { %v1521_v4 = vadd.f32 %v1478_v30, %v1387_v58  ;;  %v1029_v3 = vadd.f32 %v1028_v51, %v5357_v33  ;;  %v5363_v33 = vld [vmem:[#allocation29_spill] sm:$0xff] }
 0x1c1   : > { %v1347_v50 = vpop.f32.mrf.mxu2  ;;  %v4711_v29 = vadd.f32 %v1634_v48, %v1521_v4  ;;  %v5360_v48 = vld [vmem:[#allocation5_spill] sm:$0xff] }
 0x1c2   : > { %v1388_v57 = vadd.f32 %v1347_v50, %v1027_v42  ;;  %v5362_v42 = vld [vmem:[#allocation27_spill] sm:$0xff] }
 0x1c3   : > { %3578 = vmatmul.msk.bf16.gmra.mxu3 %vm679_vm4, %v5355_v32 }
 0x1c5   : > { %v1637_v49 = vpop.f32.mrf.mxu0 }
 0x1c6   : > { %v1481_v8 = vpop.f32.mrf.mxu3  ;;  %v1031_v40 = vpop.f32.mrf.mxu1 }
 0x1c7   : > { %v1522_v47 = vadd.f32 %v1481_v8, %v1388_v57  ;;  %v1032_v5 = vadd.f32 %v1031_v40, %v5359_v17  ;;  %v5365_v17 = vld [vmem:[#allocation32_spill] sm:$0xff] }
 0x1c8   : > { %3596 = vmatmul.msk.bf16.gmra.mxu0 %vm679_vm4, %v5356_v36 }
 0x1c9   : > { %v1349_v18 = vpop.f32.mrf.mxu2  ;;  %3541 = vmatmul.msk.bf16.gmra.mxu1 %vm679_vm4, %v5356_v36  ;;  %v4720_v34 = vadd.f32 %v1637_v49, %v1522_v47 }
 0x1ca   : > { %v1389_v56 = vadd.f32 %v1349_v18, %v1029_v3 }
 0x1cd   : > { %v1639_v31 = vpop.f32.mrf.mxu0 }
 0x1ce   : > { %v1483_v22 = vpop.f32.mrf.mxu3  ;;  %3562 = vmatmul.msk.bf16.gmra.mxu2 %vm679_vm4, %v5358_v43  ;;  %v1033_v60 = vpop.f32.mrf.mxu1 }
 0x1cf   : > { %v1523_v53 = vadd.f32 %v1483_v22, %v1389_v56  ;;  %v1034_v50 = vadd.f32 %v1033_v60, %v5362_v42 }
 0x1d1   : > { %v1352_v27 = vpop.f32.mrf.mxu2  ;;  %v4725_v62 = vadd.f32 %v1639_v31, %v1523_v53 }
 0x1d2   : > { %v1390_v58 = vadd.f32 %v1352_v27, %v1032_v5 }
 0x1d3   : > { %3579 = vmatmul.msk.bf16.gmra.mxu3 %vm679_vm4, %v5360_v48 }
 0x1d5   : > { %v1642_v30 = vpop.f32.mrf.mxu0 }
 0x1d6   : > { %v1486_v63 = vpop.f32.mrf.mxu3  ;;  %v1036_v51 = vpop.f32.mrf.mxu1 }
 0x1d7   : > { %v1524_v4 = vadd.f32 %v1486_v63, %v1390_v58  ;;  %v1037_v3 = vadd.f32 %v1036_v51, %v5363_v33 }
 0x1d8   : > { %3597 = vmatmul.msk.bf16.gmra.mxu0 %vm679_vm4, %v5361_v59 }
 0x1d9   : > { %v1354_v57 = vpop.f32.mrf.mxu2  ;;  %3542 = vmatmul.msk.bf16.gmra.mxu1 %vm679_vm4, %v5361_v59  ;;  %v4734_v32 = vadd.f32 %v1642_v30, %v1524_v4 }
 0x1da   : > { %v1391_v49 = vadd.f32 %v1354_v57, %v1034_v50 }
 0x1dd   : > { %v1644_v8 = vpop.f32.mrf.mxu0 }
 0x1de   : > { %v1488_v40 = vpop.f32.mrf.mxu3  ;;  %3563 = vmatmul.msk.bf16.gmra.mxu2 %vm679_vm4, %v4427_v38  ;;  %v1038_v47 = vpop.f32.mrf.mxu1 }
 0x1df   : > { %v1525_v36 = vadd.f32 %v1488_v40, %v1391_v49  ;;  %v1039_v38 = vadd.f32 %v1038_v47, %v5365_v17 }
 0x1e1   : > { %v1357_v18 = vpop.f32.mrf.mxu2  ;;  %v4739_v56 = vadd.f32 %v1644_v8, %v1525_v36 }
 0x1e2   : > { %v1392_v31 = vadd.f32 %v1357_v18, %v1037_v3 }
 0x1e3   : > { %5364 = vst [vmem:[#allocation14_spill] sm:$0xff] %v4739_v56  ;;  %3580 = vmatmul.msk.bf16.gmra.mxu3 %vm679_vm4, %v3980_v0 }
 0x1e5   : > { %v1647_v22 = vpop.f32.mrf.mxu0 }
 0x1e6   : > { %v1491_v43 = vpop.f32.mrf.mxu3  ;;  %v1712_v60 = vpop.f32.mrf.mxu1 }
 0x1e7   : > { %v1526_v53 = vadd.f32 %v1491_v43, %v1392_v31  ;;  %v1792_v49 = vadd.f32 %v1712_v60, %v4442_v12  ;;  %v4768_v43 = vld [vmem:[#allocation2] ss:$0 sm:$0xff] }
 0x1e8   : > { %3598 = vmatmul.msk.bf16.gmra.mxu0 %vm679_vm4, %v4444_v1 }
 0x1e9   : > { %v1359_v5 = vpop.f32.mrf.mxu2  ;;  %3543 = vmatmul.msk.bf16.gmra.mxu1 %vm679_vm4, %v4444_v1  ;;  %v4748_v27 = vadd.f32 %v1647_v22, %v1526_v53  ;;  %v5368_v22 = vld [vmem:[#allocation17_spill] sm:$0xff] }
 0x1ea   : > { %v1393_v58 = vadd.f32 %v1359_v5, %v1039_v38  ;;  %v5369_v38 = vld [vmem:[#allocation34_spill] sm:$0xff] }
 0x1eb   : > { %5366 = vst [vmem:[#allocation15_spill] sm:$0xff] %v4748_v27 }
 0x1ed   : > { %v1649_v48 = vpop.f32.mrf.mxu0 }
 0x1ee   : > { %v1493_v30 = vpop.f32.mrf.mxu3  ;;  %3564 = vmatmul.msk.bf16.gmra.mxu2 %vm679_vm4, %v4451_v28  ;;  %v1714_v0 = vpop.f32.mrf.mxu1 }
 0x1ef   : > { %v1527_v63 = vadd.f32 %v1493_v30, %v1393_v58  ;;  %v1793_v51 = vadd.f32 %v1714_v0, %v4455_v35 }
 0x1f1   : > { %v1846_v4 = vpop.f32.mrf.mxu2  ;;  %v4753_v59 = vadd.f32 %v1649_v48, %v1527_v63 }
 0x1f2   : > { %v1926_v35 = vadd.f32 %v1846_v4, %v1792_v49  ;;  %v5370_v4 = vld [vmem:[#allocation35_spill] sm:$0xff] }
 0x1f3   : > { %5367 = vst [vmem:[#allocation13_spill] sm:$0xff] %v4753_v59  ;;  %3581 = vmatmul.msk.bf16.gmra.mxu3 %vm679_vm4, %v4068_v20 }
 0x1f5   : > { %v2142_v42 = vpop.f32.mrf.mxu0 }
 0x1f6   : > { %v2002_v1 = vpop.f32.mrf.mxu3  ;;  %v1717_v50 = vpop.f32.mrf.mxu1 }
 0x1f7   : > { %v2082_v33 = vadd.f32 %v2002_v1, %v1926_v35  ;;  %v1794_v18 = vadd.f32 %v1717_v50, %v4468_v7 }
 0x1f8   : > { %3599 = vmatmul.msk.bf16.gmra.mxu0 %vm679_vm4, %v4470_v19 }
 0x1f9   : > { %v1848_v57 = vpop.f32.mrf.mxu2  ;;  %3544 = vmatmul.msk.bf16.gmra.mxu1 %vm679_vm4, %v4470_v19  ;;  %v2222_v12 = vadd.f32 %v2142_v42, %v2082_v33 }
 0x1fa   : > { %v1927_v28 = vadd.f32 %v1848_v57, %v1793_v51  ;;  %v5371_v57 = vld [vmem:[#allocation36_spill] sm:$0xff] }
 0x1fd   : > { %v2144_v8 = vpop.f32.mrf.mxu0 }
 0x1fe   : > { %v2004_v40 = vpop.f32.mrf.mxu3  ;;  %3565 = vmatmul.msk.bf16.gmra.mxu2 %vm679_vm4, %v4477_v46  ;;  %v1719_v20 = vpop.f32.mrf.mxu1 }
 0x1ff   : > { %v2083_v47 = vadd.f32 %v2004_v40, %v1927_v28  ;;  %v1795_v36 = vadd.f32 %v1719_v20, %v4481_v13  ;;  %v2258_v13 = vadd.f32 %v4768_v43, %v2222_v12  ;;  %v5372_v40 = vld [vmem:[#allocation6_spill] sm:$0xff] }
 0x201   : > { %v2223_v3 = vadd.f32 %v2144_v8, %v2083_v47  ;;  %v1851_v31 = vpop.f32.mrf.mxu2  ;;  %v2290_v30 = vmax.f32 %v2258_v13, 0.0 }
 0x202   : > { %v1928_v19 = vadd.f32 %v1851_v31, %v1794_v18 }
 0x203   : > { %3582 = vmatmul.msk.bf16.gmra.mxu3 %vm679_vm4, %v5368_v22  ;;  %v2259_v35 = vadd.f32 %v4768_v43, %v2223_v3 }
 0x205   : > { %v2147_v60 = vpop.f32.mrf.mxu0 }
 0x206   : > { %v2007_v53 = vpop.f32.mrf.mxu3  ;;  %v1722_v17 = vpop.f32.mrf.mxu1 }
 0x207   : > { %v2084_v46 = vadd.f32 %v2007_v53, %v1928_v19  ;;  %v5373_v19 = vld [vmem:[#allocation38_spill] sm:$0xff]  ;;  %v5374_v53 = vld [vmem:[#allocation33_spill] sm:$0xff] }
 0x208   : > { %3600 = vmatmul.msk.bf16.gmra.mxu0 %vm679_vm4, %v5369_v38 }
 0x209   : > { %v2224_v5 = vadd.f32 %v2147_v60, %v2084_v46  ;;  %v1853_v58 = vpop.f32.mrf.mxu2  ;;  %3545 = vmatmul.msk.bf16.gmra.mxu1 %vm679_vm4, %v5369_v38  ;;  %v1796_v46 = vadd.f32 %v1722_v17, %v5374_v53 }
 0x20a   : > { %v1929_v7 = vadd.f32 %v1853_v58, %v1795_v36  ;;  %v2291_v36 = vmax.f32 %v2259_v35, 0.0 }
 0x20b   : > { %v2260_v48 = vadd.f32 %v4768_v43, %v2224_v5 }
 0x20d   : > { %v2292_v0 = vmax.f32 %v2260_v48, 0.0  ;;  %v2149_v63 = vpop.f32.mrf.mxu0 }
 0x20e   : > { %v2009_v51 = vpop.f32.mrf.mxu3  ;;  %3566 = vmatmul.msk.bf16.gmra.mxu2 %vm679_vm4, %v5370_v4  ;;  %v1724_v42 = vpop.f32.mrf.mxu1  ;;  %v5376_v4 = vld [vmem:[#allocation40_spill] sm:$0xff] }
 0x20f   : > { %v2322_v1 = vmax.f32 %v2290_v30, %v2292_v0  ;;  %v2085_v50 = vadd.f32 %v2009_v51, %v1929_v7  ;;  %v1797_v28 = vadd.f32 %v1724_v42, %v5371_v57  ;;  %v5375_v30 = vld [vmem:[#allocation39_spill] sm:$0xff] }
 0x211   : > { %v1856_v49 = vpop.f32.mrf.mxu2  ;;  %v2225_v8 = vadd.f32 %v2149_v63, %v2085_v50  ;;  %v2354_v12 = vrot.slane %v2322_v1, 2  ;;  %v2356_v3 = vrot.slane %v2322_v1, 6  ;;  %v2355_v51 = vrot.slane %v2322_v1, 4 }
 0x212   : > { %v1930_v13 = vadd.f32 %v1856_v49, %v1796_v46  ;;  %v3607_v49 = vrot.slane %v2322_v1, 9 }
 0x213   : > { %3583 = vmatmul.msk.bf16.gmra.mxu3 %vm679_vm4, %v5372_v40  ;;  %v2261_v20 = vadd.f32 %v4768_v43, %v2225_v8  ;;  %v3608_v38 = vrot.slane %v2354_v12, 9  ;;  %v3610_v7 = vrot.slane %v2356_v3, 9  ;;  %v5377_v8 = vld [vmem:[#allocation37_spill] sm:$0xff] }
 0x215   : > { %v2152_v47 = vpop.f32.mrf.mxu0  ;;  %v2293_v33 = vmax.f32 %v2261_v20, 0.0  ;;  %v2643_v50 = vmax.f32 %v2354_v12, %v3608_v38  ;;  %v2645_v20 = vmax.f32 %v2356_v3, %v3610_v7  ;;  %v2642_v38 = vmax.f32 %v2322_v1, %v3607_v49 }
 0x216   : > { %v2012_v18 = vpop.f32.mrf.mxu3  ;;  %v1727_v31 = vpop.f32.mrf.mxu1 }
 0x217   : > { %v4783_v22 = vmax.f32 %v2291_v36, %v2293_v33  ;;  %v2086_v57 = vadd.f32 %v2012_v18, %v1930_v13  ;;  %v1798_v40 = vadd.f32 %v1727_v31, %v5377_v8  ;;  %v5378_v36 = vld [vmem:[#allocation7_spill] sm:$0xff]  ;;  %v3609_v33 = vrot.slane %v2355_v51, 9 }
 0x218   : > { %3601 = vmatmul.msk.bf16.gmra.mxu0 %vm679_vm4, %v5373_v19 }
 0x219   : > { %v1858_v60 = vpop.f32.mrf.mxu2  ;;  %3546 = vmatmul.msk.bf16.gmra.mxu1 %vm679_vm4, %v5373_v19  ;;  %v2774_v19 = vrot.slane %v2643_v50, 7  ;;  %v2226_v53 = vadd.f32 %v2152_v47, %v2086_v57  ;;  %v2644_v13 = vmax.f32 %v2355_v51, %v3609_v33  ;;  %v2359_v3 = vrot.slane %v4783_v22, 6  ;;  %v5380_v33 = vld [vmem:[#allocation9_spill] sm:$0xff] }
 0x21a   : > { %v1931_v58 = vadd.f32 %v1858_v60, %v1797_v28  ;;  %v2357_v60 = vrot.slane %v4783_v22, 2  ;;  %v2358_v49 = vrot.slane %v4783_v22, 4 }
 0x21b   : > { %v2776_v7 = vsel %vm2775_vm8, %v2774_v19, %v2642_v38  ;;  %v2262_v47 = vadd.f32 %v4768_v43, %v2226_v53  ;;  %v3614_v50 = vrot.slane %v2359_v3, 9 }
 0x21d   : > { %v2154_v5 = vpop.f32.mrf.mxu0 }
 0x21e   : > { %v2014_v48 = vpop.f32.mrf.mxu3  ;;  %3567 = vmatmul.msk.bf16.gmra.mxu2 %vm679_vm4, %v5375_v30  ;;  %v1729_v0 = vpop.f32.mrf.mxu1 }
 0x21f   : > { %v2087_v63 = vadd.f32 %v2014_v48, %v1931_v58  ;;  %v1799_v42 = vadd.f32 %v1729_v0, %v5376_v4  ;;  %v2785_v58 = vrot.slane %v2645_v20, 7  ;;  %v3612_v48 = vrot.slane %v2357_v60, 9 }
 0x220   : > { %v2778_v4 = vsel %vm2777_vm9, %v2774_v19, %v2776_v7 }
 0x221   : > { %v2227_v35 = vadd.f32 %v2154_v5, %v2087_v63  ;;  %v1861_v17 = vpop.f32.mrf.mxu2  ;;  %v5379_v5 = vld [vmem:[#allocation42_spill] sm:$0xff]  ;;  %v2786_v1 = vsel %vm2775_vm8, %v2785_v58, %v2644_v13  ;;  %v2647_v8 = vmax.f32 %v2357_v60, %v3612_v48  ;;  %v2780_v60 = vsel %vm2779_vm10, %v2774_v19, %v2778_v4  ;;  %v5382_v4 = vld [vmem:[#allocation12_spill] sm:$0xff] }
 0x222   : > { %v1932_v28 = vadd.f32 %v1861_v17, %v1798_v40  ;;  %v2787_v57 = vsel %vm2777_vm9, %v2785_v58, %v2786_v1  ;;  %v2294_v40 = vmax.f32 %v2262_v47, 0.0  ;;  %v2649_v13 = vmax.f32 %v2359_v3, %v3614_v50 }
 0x223   : > { %3584 = vmatmul.msk.bf16.gmra.mxu3 %vm679_vm4, %v5378_v36  ;;  %v3611_v36 = vrot.slane %v4783_v22, 9  ;;  %v2782_v3 = vsel %vm2781_vm11, %v2774_v19, %v2780_v60  ;;  %v3788_v50 = vmov 1934713408  }
 0x225   : > { %v2157_v46 = vpop.f32.mrf.mxu0  ;;  %v2646_v1 = vmax.f32 %v4783_v22, %v3611_v36  ;;  %v4829_v22 = vrot.slane %v2649_v13, 7 }
 0x226   : > { %v2017_v12 = vpop.f32.mrf.mxu3  ;;  %v4797_v18 = vpop.f32.mrf.mxu1 }
 0x227   : > { %v2088_v31 = vadd.f32 %v2017_v12, %v1932_v28  ;;  %v5381_v12 = vld [vmem:[#allocation10_spill] sm:$0xff] }
 0x228   : > { %3602 = vmatmul.msk.bf16.gmra.mxu0 %vm679_vm4, %v5379_v5 }
 0x229   : > { %v2228_v30 = vadd.f32 %v2157_v46, %v2088_v31  ;;  %v1863_v0 = vpop.f32.mrf.mxu2  ;;  %3547 = vmatmul.msk.bf16.gmra.mxu1 %vm679_vm4, %v5379_v5  ;;  %v2788_v31 = vsel %vm2779_vm10, %v2785_v58, %v2787_v57  ;;  %v4819_v5 = vrot.slane %v2647_v8, 7  ;;  %v3036_v57 = vunpack.c.l.s4 %v3788_v50 }
 0x22a   : > { %v1933_v63 = vadd.f32 %v1863_v0, %v1799_v42  ;;  %v3613_v0 = vrot.slane %v2358_v49, 9 }
 0x22b   : > { %v2264_v51 = vadd.f32 %v4768_v43, %v2228_v30  ;;  %v4836_v13 = vunpack.c.0.s8 %v3036_v57 }
 0x22d   : > { %v2296_v17 = vmax.f32 %v2264_v51, 0.0  ;;  %v2159_v20 = vpop.f32.mrf.mxu0  ;;  %v2263_v51 = vadd.f32 %v4768_v43, %v2227_v35 }
 0x22e   : > { %v2019_v28 = vpop.f32.mrf.mxu3  ;;  %3568 = vmatmul.msk.bf16.gmra.mxu2 %vm679_vm4, %v5380_v33  ;;  %v1734_v42 = vpop.f32.mrf.mxu1 }
 0x22f   : > { %v2324_v53 = vmax.f32 %v2294_v40, %v2296_v17  ;;  %v2089_v46 = vadd.f32 %v2019_v28, %v1933_v63  ;;  %v4815_v38 = vadd.f32 %v1734_v42, %v5381_v12  ;;  %v2793_v42 = vsel %vm2775_vm8, %v4819_v5, %v2646_v1 }
 0x230   : > { %v2648_v12 = vmax.f32 %v2358_v49, %v3613_v0  ;;  %v2295_v59 = vmax.f32 %v2263_v51, 0.0  ;;  %v2794_v1 = vsel %vm2777_vm9, %v4819_v5, %v2793_v42 }
 0x231   : > { %v2360_v7 = vrot.slane %v2324_v53, 2  ;;  %v2361_v48 = vrot.slane %v2324_v53, 4  ;;  %v2362_v47 = vrot.slane %v2324_v53, 6  ;;  %v1866_v30 = vpop.f32.mrf.mxu2  ;;  %v2229_v63 = vadd.f32 %v2159_v20, %v2089_v46 }
 0x232   : > { %v3615_v40 = vrot.slane %v2324_v53, 9  ;;  %v2789_v46 = vsel %vm2781_vm11, %v2785_v58, %v2788_v31  ;;  %v2800_v58 = vsel %vm2775_vm8, %v4829_v22, %v2648_v12  ;;  %v5384_v31 = vld [vmem:[#allocation41_spill] sm:$0xff] }
 0x233   : > { %v3616_v17 = vrot.slane %v2360_v7, 9  ;;  %v3617_v28 = vrot.slane %v2361_v48, 9  ;;  %v3618_v33 = vrot.slane %v2362_v47, 9  ;;  %3585 = vmatmul.msk.bf16.gmra.mxu3 %vm679_vm4, %v5382_v4  ;;  %v2265_v8 = vadd.f32 %v4768_v43, %v2229_v63 }
 0x234   : > { %v2650_v60 = vmax.f32 %v2324_v53, %v3615_v40 }
 0x235   : > { %v2651_v35 = vmax.f32 %v2360_v7, %v3616_v17  ;;  %v2653_v20 = vmax.f32 %v2362_v47, %v3618_v33  ;;  %v4831_v36 = vpop.f32.mrf.mxu0  ;;  %v2297_v4 = vmax.f32 %v2265_v8, 0.0  ;;  %v2652_v50 = vmax.f32 %v2361_v48, %v3617_v28  ;;  %v5383_v47 = vld [vmem:[#allocation44_spill] sm:$0xff] }
 0x236   : > { %v2022_v56 = vpop.f32.mrf.mxu3  ;;  %v1737_v19 = vpop.f32.mrf.mxu1  ;;  %v1800_v48 = vadd.f32 %v4797_v18, %v5384_v31 }
 0x237   : > { %v2806_v27 = vrot.slane %v2651_v35, 7  ;;  %v2813_v63 = vrot.slane %v2653_v20, 7  ;;  %v2325_v7 = vmax.f32 %v2295_v59, %v2297_v4 }
 0x238   : > { %3603 = vmatmul.msk.bf16.gmra.mxu0 %vm679_vm4, %v5383_v47  ;;  %v1934_v8 = vadd.f32 %v1866_v30, %v1800_v48 }
 0x239   : > { %v2807_v49 = vsel %vm2775_vm8, %v2806_v27, %v2650_v60  ;;  %v2814_v53 = vsel %vm2775_vm8, %v2813_v63, %v2652_v50  ;;  %v1868_v0 = vpop.f32.mrf.mxu2  ;;  %3548 = vmatmul.msk.bf16.gmra.mxu1 %vm679_vm4, %v5383_v47  ;;  %v2363_v40 = vrot.slane %v2325_v7, 2  ;;  %v2364_v17 = vrot.slane %v2325_v7, 4 }
 0x23a   : > { %v2808_v51 = vsel %vm2777_vm9, %v2806_v27, %v2807_v49  ;;  %v2815_v59 = vsel %vm2777_vm9, %v2813_v63, %v2814_v53  ;;  %v2365_v57 = vrot.slane %v2325_v7, 6  ;;  %v3619_v35 = vrot.slane %v2325_v7, 9 }
 0x23b   : > { %v2809_v28 = vsel %vm2779_vm10, %v2806_v27, %v2808_v51  ;;  %v2816_v33 = vsel %vm2779_vm10, %v2813_v63, %v2815_v59  ;;  %v3620_v20 = vrot.slane %v2363_v40, 9  ;;  %v3621_v60 = vrot.slane %v2364_v17, 9 }
 0x23c   : > { %v2810_v42 = vsel %vm2781_vm11, %v2806_v27, %v2809_v28  ;;  %v2817_v18 = vsel %vm2781_vm11, %v2813_v63, %v2816_v33  ;;  %v3622_v50 = vrot.slane %v2365_v57, 9  ;;  %v2795_v49 = vsel %vm2779_vm10, %v4819_v5, %v2794_v1 }
 0x23d   : > { %v3032_v12 = vrot.slane %v2810_v42, 4  ;;  %v3065_v4 = vrot.slane %v2817_v18, 4  ;;  %v2164_v47 = vpop.f32.mrf.mxu0  ;;  %v2801_v53 = vsel %vm2777_vm9, %v4829_v22, %v2800_v58  ;;  %v2655_v31 = vmax.f32 %v2363_v40, %v3620_v20 }
 0x23e   : > { %v1935_v30 = vadd.f32 %v1868_v0, %v4815_v38  ;;  %v2024_v48 = vpop.f32.mrf.mxu3  ;;  %3569 = vmatmul.msk.bf16.gmra.mxu2 %vm679_vm4, %v4590_v37  ;;  %v1739_v27 = vpop.f32.mrf.mxu1  ;;  %v2657_v59 = vmax.f32 %v2365_v57, %v3622_v50  ;;  %v2654_v58 = vmax.f32 %v2325_v7, %v3619_v35  ;;  %v2090_v33 = vadd.f32 %v2022_v56, %v1934_v8  ;;  %v5385_v37 = vld [vmem:[#allocation43_spill] sm:$0xff] }
 0x23f   : > { %v3034_v63 = vsel %vm3033_vm12, %v3032_v12, %v2782_v3  ;;  %v4863_v51 = vsel %vm3033_vm12, %v3065_v4, %v2789_v46  ;;  %v1803_v28 = vadd.f32 %v1739_v27, %v4594_v16  ;;  %v2820_v40 = vrot.slane %v2655_v31, 7  ;;  %v5386_v46 = vld [vmem:[#allocation45_spill] sm:$0xff]  ;;  %v5387_v27 = vld [vmem:[#allocation8_spill] sm:$0xff] }
 0x240   : > { %v4867_v1 = vperm.slane %v3034_v63, %v4836_v13  ;;  %v2656_v38 = vmax.f32 %v2364_v17, %v3621_v60  ;;  %v2827_v0 = vrot.slane %v2657_v59, 7  ;;  %v2091_v42 = vadd.f32 %v2024_v48, %v1935_v30  ;;  %v4884_v4 = vld [vmem:[%s3829_s22 + $0xcc] sm:$0xf]  ;;  %v4892_v31 = vld [vmem:[%s3829_s22 + $0xd0] sm:$0xf] }
 0x241   : > { %v1802_v18 = vadd.f32 %v1737_v19, %v5385_v37  ;;  %v1871_v20 = vpop.f32.mrf.mxu2  ;;  %v2802_v3 = vsel %vm2779_vm10, %v4829_v22, %v2801_v53  ;;  %v2821_v16 = vsel %vm2775_vm8, %v2820_v40, %v2654_v58  ;;  %v1687_v57 = vrot.slane %v5386_v46, 5 }
 0x242   : > { %3165 = vst [vmem:[#allocation1] ss:$4 sm:$0xff] %v4867_v1  ;;  %v2822_v7 = vsel %vm2777_vm9, %v2820_v40, %v2821_v16  ;;  %v2828_v56 = vsel %vm2775_vm8, %v2827_v0, %v2656_v38  ;;  %v2231_v17 = vadd.f32 %v2164_v47, %v2091_v42  ;;  %v2796_v8 = vsel %vm2781_vm11, %v4819_v5, %v2795_v49 }
 0x243   : > { %3586 = vmatmul.msk.bf16.gmra.mxu3 %vm679_vm4, %v4183_v11  ;;  %v1936_v19 = vadd.f32 %v1871_v20, %v1802_v18  ;;  %v2823_v35 = vsel %vm2779_vm10, %v2820_v40, %v2822_v7  ;;  %v2829_v12 = vsel %vm2777_vm9, %v2827_v0, %v2828_v56  ;;  %v2803_v60 = vsel %vm2781_vm11, %v4829_v22, %v2802_v3 }
 0x244   : > { %v2824_v50 = vsel %vm2781_vm11, %v2820_v40, %v2823_v35  ;;  %v2830_v47 = vsel %vm2779_vm10, %v2827_v0, %v2829_v12  ;;  %v2230_v53 = vadd.f32 %v4831_v36, %v2090_v33  ;;  %v3533_v63 = vrot.slane %v5387_v27, 9 }
 0x245   : > { %v2167_v11 = vpop.f32.mrf.mxu0  ;;  %v2831_v5 = vsel %vm2781_vm11, %v2827_v0, %v2830_v47  ;;  %v3097_v49 = vrot.slane %v2824_v50, 4  ;;  %v1689_v59 = vrot.slane %v1687_v57, 4  ;;  %v1690_v40 = vrot.slane %v4597_v9, 5  ;;  %v240_v47 = vld [vmem:[%s3829_s22 + $0xd4] sm:$0x1] }
 0x246   : > { %v2027_v30 = vpop.f32.mrf.mxu3  ;;  %v4895_v48 = vpop.f32.mrf.mxu1  ;;  %v3129_v58 = vrot.slane %v2831_v5, 4  ;;  %v1959_v38 = vshrl.u32 %v4884_v4, 16  ;;  %v1962_v33 = vshll.u32 %v4884_v4, 16  ;;  %v1968_v0 = vshll.u32 %v4892_v31, 16 }
 0x247   : > { %v2092_v22 = vadd.f32 %v2027_v30, %v1936_v19  ;;  %v4901_v36 = vsel %vm3033_vm12, %v3097_v49, %v2796_v8  ;;  %v1972_v42 = vshrl.u32 %v4892_v31, 16  ;;  %v2266_v9 = vadd.f32 %v4768_v43, %v2230_v53 }
 0x248   : > { %3604 = vmatmul.msk.bf16.gmra.mxu0 %vm679_vm4, %v4613_v41  ;;  %v4909_v37 = vsel %vm3033_vm12, %v3129_v58, %v2803_v60  ;;  %v1688_v46 = vsel %vm4171_vm7, %v3533_v63, %v1687_v57  ;;  %v1691_v7 = vsel %vm4171_vm7, %v1689_v59, %v1690_v40  ;;  %v1961_v56 = vrot.slane %v1959_v38, 4 }
 0x249   : > { %v2232_v18 = vadd.f32 %v2167_v11, %v2092_v22  ;;  %v1873_v20 = vpop.f32.mrf.mxu2  ;;  %3549 = vmatmul.msk.bf16.gmra.mxu1 %vm679_vm4, %v4613_v41  ;;  %v1964_v19 = vrot.slane %v1962_v33, 5  ;;  %v1970_v8 = vrot.slane %v1968_v0, 5  ;;  %v1974_v35 = vrot.slane %v1972_v42, 4 }
 0x24a   : > { %v1937_v3 = vadd.f32 %v1873_v20, %v1803_v28  ;;  %v2298_v12 = vmax.f32 %v2266_v9, 0.0  ;;  %v1694_v41 = vunpack.c.l.b16 %v1688_v46  ;;  %v1695_v5 = vunpack.c.l.b16 %v1691_v7 }
 0x24b   : > { %v2268_v16 = vadd.f32 %v4768_v43, %v2232_v18  ;;  %v1965_v30 = vor.u32 %v1964_v19, %v1961_v56  ;;  %v1975_v27 = vor.u32 %v1974_v35, %v1970_v8  ;;  %v1978_v63 = vshll.u32 %v240_v47, 16  ;;  %v3691_v19 = vld [vmem:[%s3829_s22 + $0xcc] sm:$0xff]  ;;  %s185_s22 = scalar_lea.vmem %s5249_s3, %s3673_s19 }
 0x24c   : > { %v2267_v58 = vadd.f32 %v4768_v43, %v2231_v17  ;;  %v1696_v40 = vpack.c.b16 %v1695_v5, %v1694_v41  ;;  %v3589_v46 = vrot.slane %v4884_v4, 9  ;;  %v2120_v56 = vrot.slane %v240_v47, 5 }
 0x24d   : > { %v2300_v60 = vmax.f32 %v2268_v16, 0.0  ;;  %v2169_v50 = vpop.f32.mrf.mxu0  ;;  %v1966_v38 = vrot.slane %v1965_v30, 4  ;;  %v1976_v33 = vrot.slane %v1975_v27, 4  ;;  %v1980_v0 = vrot.slane %v1978_v63, 5 }
 0x24e   : > { %v2029_v53 = vpop.f32.mrf.mxu3  ;;  %3570 = vmatmul.msk.bf16.gmra.mxu2 %vm679_vm4, %v4622_v39  ;;  %v1744_v28 = vpop.f32.mrf.mxu1  ;;  %v2299_v9 = vmax.f32 %v2267_v58, 0.0  ;;  %v1804_v35 = vadd.f32 %v4895_v48, %v4611_v2 }
 0x24f   : > { %v4922_v11 = vmax.f32 %v2298_v12, %v2300_v60  ;;  %v2093_v57 = vadd.f32 %v2029_v53, %v1937_v3  ;;  %v1805_v49 = vadd.f32 %v1744_v28, %v4625_v10  ;;  %v2117_v10 = vrot.slane %v4892_v31, 5 }
 0x250   : > { %v1981_v17 = vsel %vm3856_vm3, %v1976_v33, %v1980_v0 }
 0x251   : > { %v1876_v59 = vpop.f32.mrf.mxu2  ;;  %v2233_v22 = vadd.f32 %v2169_v50, %v2093_v57  ;;  %v2119_v31 = vrot.slane %v2117_v10, 4  ;;  %v1985_v60 = vunpack.c.l.b16 %v1981_v17  ;;  %v2366_v50 = vrot.slane %v4922_v11, 2 }
 0x252   : > { %v2368_v26 = vrot.slane %v4922_v11, 6  ;;  %v1938_v53 = vadd.f32 %v1876_v59, %v1804_v35  ;;  %v2367_v14 = vrot.slane %v4922_v11, 4 }
 0x253   : > { %3587 = vmatmul.msk.bf16.gmra.mxu3 %vm679_vm4, %v4629_v15  ;;  %v2269_v39 = vadd.f32 %v4768_v43, %v2233_v22  ;;  %v1971_v15 = vsel %vm3856_vm3, %v1966_v38, %v1970_v8  ;;  %v2118_v8 = vsel %vm4171_vm7, %v3589_v46, %v2117_v10  ;;  %v2121_v28 = vsel %vm4171_vm7, %v2119_v31, %v2120_v56 }
 0x254   : > { %v1984_v12 = vunpack.c.l.b16 %v1971_v15  ;;  %v3624_v30 = vrot.slane %v2366_v50, 9  ;;  %v2124_v27 = vunpack.c.l.b16 %v2118_v8  ;;  %v2125_v63 = vunpack.c.l.b16 %v2121_v28 }
 0x255   : > { %v2172_v42 = vpop.f32.mrf.mxu0  ;;  %v2301_v18 = vmax.f32 %v2269_v39, 0.0  ;;  %v3626_v58 = vrot.slane %v2368_v26, 9 }
 0x256   : > { %v2032_v20 = vpop.f32.mrf.mxu3  ;;  %v1747_v3 = vpop.f32.mrf.mxu1  ;;  %v1986_v48 = vpack.c.b16 %v1985_v60, %v1984_v12  ;;  %v2659_v38 = vmax.f32 %v2366_v50, %v3624_v30  ;;  %v2126_v33 = vpack.c.b16 %v2125_v63, %v2124_v27 }
 0x257   : > { %v4930_v16 = vmax.f32 %v2299_v9, %v2301_v18  ;;  %v2094_v22 = vadd.f32 %v2032_v20, %v1938_v53  ;;  %v1806_v59 = vadd.f32 %v1747_v3, %v4636_v23  ;;  %v2661_v0 = vmax.f32 %v2368_v26, %v3626_v58 }
 0x258   : > { %3605 = vmatmul.msk.bf16.gmra.mxu0 %vm679_vm4, %v1696_v40  ;;  %v3625_v20 = vrot.slane %v2367_v14, 9  ;;  %v2834_v46 = vrot.slane %v2659_v38, 7 }
 0x259   : > { %v1878_v7 = vpop.f32.mrf.mxu2  ;;  %3550 = vmatmul.msk.bf16.gmra.mxu1 %vm679_vm4, %v1696_v40  ;;  %v2234_v10 = vadd.f32 %v2172_v42, %v2094_v22  ;;  %v2841_v23 = vrot.slane %v2661_v0, 7  ;;  %v2369_v3 = vrot.slane %v4930_v16, 2  ;;  %v2371_v50 = vrot.slane %v4930_v16, 6 }
 0x25a   : > { %v1939_v41 = vadd.f32 %v1878_v7, %v1805_v49  ;;  %v2660_v35 = vmax.f32 %v2367_v14, %v3625_v20  ;;  %v2370_v30 = vrot.slane %v4930_v16, 4 }
 0x25b   : > { %v2270_v7 = vadd.f32 %v4768_v43, %v2234_v10  ;;  %v3628_v26 = vrot.slane %v2369_v3, 9  ;;  %v3630_v27 = vrot.slane %v2371_v50, 9 }
 0x25c   : > { %v2842_v8 = vsel %vm2775_vm8, %v2841_v23, %v2660_v35 }
 0x25d   : > { %v2174_v4 = vpop.f32.mrf.mxu0  ;;  %v2302_v53 = vmax.f32 %v2270_v7, 0.0  ;;  %v2663_v63 = vmax.f32 %v2369_v3, %v3628_v26 }
 0x25e   : > { %v2034_v47 = vpop.f32.mrf.mxu3  ;;  %3571 = vmatmul.msk.bf16.gmra.mxu2 %vm679_vm4, %v3691_v19  ;;  %v1749_v57 = vpop.f32.mrf.mxu1 }
 0x25f   : > { %v2095_v2 = vadd.f32 %v2034_v47, %v1939_v41  ;;  %v1807_v5 = vadd.f32 %v1749_v57, %v4641_v25  ;;  %v3623_v25 = vrot.slane %v4922_v11, 9  ;;  %v4975_v3 = vrot.slane %v2663_v63, 7 }
 0x261   : > { %v2235_v40 = vadd.f32 %v2174_v4, %v2095_v2  ;;  %v1881_v49 = vpop.f32.mrf.mxu2  ;;  %v2658_v42 = vmax.f32 %v4922_v11, %v3623_v25  ;;  %v3629_v25 = vrot.slane %v2370_v30, 9 }
 0x262   : > { %v1940_v39 = vadd.f32 %v1881_v49, %v1806_v59 }
 0x263   : > { %3588 = vmatmul.msk.bf16.gmra.mxu3 %vm679_vm4, %v1986_v48  ;;  %v2835_v60 = vsel %vm2775_vm8, %v2834_v46, %v2658_v42  ;;  %v2271_v38 = vadd.f32 %v4768_v43, %v2235_v40 }
 0x264   : > { %v2836_v57 = vsel %vm2777_vm9, %v2834_v46, %v2835_v60 }
 0x265   : > { %v2177_v9 = vpop.f32.mrf.mxu0  ;;  %v2837_v14 = vsel %vm2779_vm10, %v2834_v46, %v2836_v57 }
 0x266   : > { %v2037_v18 = vpop.f32.mrf.mxu3  ;;  %v4954_v15 = vpop.f32.mrf.mxu1  ;;  %v2838_v42 = vsel %vm2781_vm11, %v2834_v46, %v2837_v14 }
 0x267   : > { %v2096_v17 = vadd.f32 %v2037_v18, %v1940_v39  ;;  %v3627_v39 = vrot.slane %v4930_v16, 9  ;;  %v2665_v18 = vmax.f32 %v2371_v50, %v3630_v27 }
 0x268   : > { %3606 = vmatmul.msk.bf16.gmra.mxu0 %vm679_vm4, %v2126_v33 }
 0x269   : > { %v2236_v31 = vadd.f32 %v2177_v9, %v2096_v17  ;;  %v1883_v56 = vpop.f32.mrf.mxu2  ;;  %v2662_v40 = vmax.f32 %v4930_v16, %v3627_v39 }
 0x26a   : > { %v1941_v19 = vadd.f32 %v1883_v56, %v1807_v5  ;;  %v2843_v5 = vsel %vm2777_vm9, %v2841_v23, %v2842_v8 }
 0x26b   : > { %v2272_v12 = vadd.f32 %v4768_v43, %v2236_v31  ;;  %v2844_v17 = vsel %vm2779_vm10, %v2841_v23, %v2843_v5  ;;  %v2849_v57 = vsel %vm2775_vm8, %v4975_v3, %v2662_v40 }
 0x26d   : > { %v2304_v4 = vmax.f32 %v2272_v12, 0.0  ;;  %v2179_v41 = vpop.f32.mrf.mxu0 }
 0x26e   : > { %v2039_v28 = vpop.f32.mrf.mxu3  ;;  %v1754_v47 = vpop.f32.mrf.mxu1 }
 0x26f   : > { %v2328_v2 = vmax.f32 %v2302_v53, %v2304_v4  ;;  %v2097_v11 = vadd.f32 %v2039_v28, %v1941_v19  ;;  %v4966_v48 = vadd.f32 %v1754_v47, %v4655_v24  ;;  %v2303_v19 = vmax.f32 %v2271_v38, 0.0 }
 0x270   : > { %v2845_v4 = vsel %vm2781_vm11, %v2841_v23, %v2844_v17  ;;  %v4982_v28 = vrot.slane %v2665_v18, 7 }
 0x271   : > { %v2372_v58 = vrot.slane %v2328_v2, 2  ;;  %v2373_v22 = vrot.slane %v2328_v2, 4  ;;  %v2374_v59 = vrot.slane %v2328_v2, 6  ;;  %v1886_v49 = vpop.f32.mrf.mxu2  ;;  %v2237_v33 = vadd.f32 %v2179_v41, %v2097_v11 }
 0x272   : > { %v3631_v0 = vrot.slane %v2328_v2, 9  ;;  %v2664_v41 = vmax.f32 %v2370_v30, %v3629_v25  ;;  %v1808_v11 = vadd.f32 %v4954_v15, %v4650_v55 }
 0x273   : > { %v3632_v24 = vrot.slane %v2372_v58, 9  ;;  %v3633_v10 = vrot.slane %v2373_v22, 9  ;;  %v3634_v9 = vrot.slane %v2374_v59, 9  ;;  %v2273_v20 = vadd.f32 %v4768_v43, %v2237_v33 }
 0x274   : > { %v2666_v8 = vmax.f32 %v2328_v2, %v3631_v0  ;;  %v2856_v25 = vsel %vm2775_vm8, %v4982_v28, %v2664_v41 }
 0x275   : > { %v2667_v7 = vmax.f32 %v2372_v58, %v3632_v24  ;;  %v2669_v31 = vmax.f32 %v2374_v59, %v3634_v9  ;;  %v4977_v56 = vpop.f32.mrf.mxu0  ;;  %v2305_v35 = vmax.f32 %v2273_v20, 0.0  ;;  %v2668_v50 = vmax.f32 %v2373_v22, %v3633_v10 }
 0x276   : > { %v2042_v12 = vpop.f32.mrf.mxu3  ;;  %v1757_v60 = vpop.f32.mrf.mxu1  ;;  %v1942_v59 = vadd.f32 %v1886_v49, %v1808_v11  ;;  %v2850_v9 = vsel %vm2777_vm9, %v4975_v3, %v2849_v57 }
 0x277   : > { %v2862_v26 = vrot.slane %v2667_v7, 7  ;;  %v2869_v53 = vrot.slane %v2669_v31, 7  ;;  %v2329_v47 = vmax.f32 %v2303_v19, %v2305_v35 }
 0x279   : > { %v2863_v46 = vsel %vm2775_vm8, %v2862_v26, %v2666_v8  ;;  %v2870_v16 = vsel %vm2775_vm8, %v2869_v53, %v2668_v50  ;;  %v1888_v2 = vpop.f32.mrf.mxu2  ;;  %v2375_v23 = vrot.slane %v2329_v47, 2  ;;  %v2376_v30 = vrot.slane %v2329_v47, 4 }
 0x27a   : > { %v2864_v5 = vsel %vm2777_vm9, %v2862_v26, %v2863_v46  ;;  %v2871_v27 = vsel %vm2777_vm9, %v2869_v53, %v2870_v16  ;;  %v2377_v22 = vrot.slane %v2329_v47, 6  ;;  %v3635_v38 = vrot.slane %v2329_v47, 9 }
 0x27b   : > { %v2865_v63 = vsel %vm2779_vm10, %v2862_v26, %v2864_v5  ;;  %v2872_v58 = vsel %vm2779_vm10, %v2869_v53, %v2871_v27  ;;  %v3636_v33 = vrot.slane %v2375_v23, 9  ;;  %v3637_v0 = vrot.slane %v2376_v30, 9 }
 0x27c   : > { %v2866_v14 = vsel %vm2781_vm11, %v2862_v26, %v2865_v63  ;;  %v2873_v39 = vsel %vm2781_vm11, %v2869_v53, %v2872_v58  ;;  %v3638_v24 = vrot.slane %v2377_v22, 9  ;;  %v1943_v49 = vadd.f32 %v1888_v2, %v4966_v48 }
 0x27d   : > { %v3041_v55 = vrot.slane %v2866_v14, 4  ;;  %v3073_v15 = vrot.slane %v2873_v39, 4  ;;  %v2184_v10 = vpop.f32.mrf.mxu0  ;;  %v2671_v18 = vmax.f32 %v2375_v23, %v3636_v33  ;;  %v2670_v8 = vmax.f32 %v2329_v47, %v3635_v38 }
 0x27e   : > { %v2044_v20 = vpop.f32.mrf.mxu3  ;;  %v1759_v17 = vpop.f32.mrf.mxu1  ;;  %v2673_v40 = vmax.f32 %v2377_v22, %v3638_v24  ;;  %v2098_v26 = vadd.f32 %v2042_v12, %v1942_v59  ;;  %v2672_v53 = vmax.f32 %v2376_v30, %v3637_v0  ;;  %v1810_v48 = vadd.f32 %v1757_v60, %v4664_v61 }
 0x27f   : > { %v3042_v7 = vsel %vm3033_vm12, %v3041_v55, %v2838_v42  ;;  %v5003_v31 = vsel %vm3033_vm12, %v3073_v15, %v2845_v4  ;;  %v1811_v19 = vadd.f32 %v1759_v17, %v4669_v6  ;;  %v2876_v50 = vrot.slane %v2671_v18, 7 }
 0x280   : > { %v5007_v35 = vperm.slane %v3042_v7, %v4836_v13  ;;  %v2883_v41 = vrot.slane %v2673_v40, 7  ;;  %v2099_v57 = vadd.f32 %v2044_v20, %v1943_v49  ;;  %v2857_v42 = vsel %vm2777_vm9, %v4982_v28, %v2856_v25 }
 0x281   : > { %v1891_v46 = vpop.f32.mrf.mxu2  ;;  %v2877_v4 = vsel %vm2775_vm8, %v2876_v50, %v2670_v8  ;;  %v2851_v12 = vsel %vm2779_vm10, %v4975_v3, %v2850_v9  ;;  %v2858_v60 = vsel %vm2779_vm10, %v4982_v28, %v2857_v42  ;;  %v2238_v23 = vadd.f32 %v4977_v56, %v2098_v26 }
 0x282   : > { %3167 = vst [vmem:[#allocation1 + $0x1] ss:$4 sm:$0xff] %v5007_v35  ;;  %v2878_v6 = vsel %vm2777_vm9, %v2876_v50, %v2877_v4  ;;  %v2884_v16 = vsel %vm2775_vm8, %v2883_v41, %v2672_v53  ;;  %v2239_v47 = vadd.f32 %v2184_v10, %v2099_v57  ;;  %v1944_v11 = vadd.f32 %v1891_v46, %v1810_v48 }
 0x283   : > { %v2879_v2 = vsel %vm2779_vm10, %v2876_v50, %v2878_v6  ;;  %v2885_v61 = vsel %vm2777_vm9, %v2883_v41, %v2884_v16  ;;  %v2852_v14 = vsel %vm2781_vm11, %v4975_v3, %v2851_v12  ;;  %v2859_v33 = vsel %vm2781_vm11, %v4982_v28, %v2858_v60 }
 0x284   : > { %v2880_v5 = vsel %vm2781_vm11, %v2876_v50, %v2879_v2  ;;  %v2886_v27 = vsel %vm2779_vm10, %v2883_v41, %v2885_v61  ;;  %v2274_v56 = vadd.f32 %v4768_v43, %v2238_v23  ;;  %v2275_v8 = vadd.f32 %v4768_v43, %v2239_v47 }
 0x285   : > { %v2187_v30 = vpop.f32.mrf.mxu0  ;;  %v2887_v63 = vsel %vm2781_vm11, %v2883_v41, %v2886_v27  ;;  %v3105_v58 = vrot.slane %v2880_v5, 4 }
 0x286   : > { %v2047_v22 = vpop.f32.mrf.mxu3  ;;  %v1762_v59 = vpop.f32.mrf.mxu1  ;;  %v3137_v39 = vrot.slane %v2887_v63, 4  ;;  %v2306_v25 = vmax.f32 %v2274_v56, 0.0  ;;  %v2307_v41 = vmax.f32 %v2275_v8, 0.0 }
 0x287   : > { %v2100_v38 = vadd.f32 %v2047_v22, %v1944_v11  ;;  %v5031_v55 = vsel %vm3033_vm12, %v3105_v58, %v2852_v14  ;;  %v1812_v4 = vadd.f32 %v1762_v59, %v4678_v21 }
 0x288   : > { %v5034_v15 = vsel %vm3033_vm12, %v3137_v39, %v2859_v33 }
 0x289   : > { %v2240_v0 = vadd.f32 %v2187_v30, %v2100_v38  ;;  %v1893_v24 = vpop.f32.mrf.mxu2 }
 0x28a   : > { %v1945_v10 = vadd.f32 %v1893_v24, %v1811_v19 }
 0x28b   : > { %v2276_v9 = vadd.f32 %v4768_v43, %v2240_v0 }
 0x28d   : > { %v2308_v3 = vmax.f32 %v2276_v9, 0.0  ;;  %v2189_v18 = vpop.f32.mrf.mxu0 }
 0x28e   : > { %v2049_v49 = vpop.f32.mrf.mxu3  ;;  %v1764_v20 = vpop.f32.mrf.mxu1 }
 0x28f   : > { %v2330_v17 = vmax.f32 %v2306_v25, %v2308_v3  ;;  %v2101_v28 = vadd.f32 %v2049_v49, %v1945_v10  ;;  %v1813_v7 = vadd.f32 %v1764_v20, %v4683_v44 }
 0x291   : > { %v1896_v40 = vpop.f32.mrf.mxu2  ;;  %v2241_v50 = vadd.f32 %v2189_v18, %v2101_v28  ;;  %v2378_v6 = vrot.slane %v2330_v17, 2  ;;  %v2380_v16 = vrot.slane %v2330_v17, 6  ;;  %v2379_v22 = vrot.slane %v2330_v17, 4 }
 0x292   : > { %v1946_v11 = vadd.f32 %v1896_v40, %v1812_v4  ;;  %v3639_v33 = vrot.slane %v2330_v17, 9 }
 0x293   : > { %v2277_v26 = vadd.f32 %v4768_v43, %v2241_v50  ;;  %v3640_v5 = vrot.slane %v2378_v6, 9  ;;  %v3642_v27 = vrot.slane %v2380_v16, 9  ;;  %v3641_v24 = vrot.slane %v2379_v22, 9 }
 0x294   : > { %v2674_v49 = vmax.f32 %v2330_v17, %v3639_v33 }
 0x295   : > { %v2192_v53 = vpop.f32.mrf.mxu0  ;;  %v2309_v19 = vmax.f32 %v2277_v26, 0.0  ;;  %v2675_v21 = vmax.f32 %v2378_v6, %v3640_v5  ;;  %v2677_v59 = vmax.f32 %v2380_v16, %v3642_v27  ;;  %v2676_v28 = vmax.f32 %v2379_v22, %v3641_v24  ;;  %v5062_v27 = vld [vmem:[#allocation2] ss:$0 sm:$0xff] }
 0x296   : > { %v2052_v57 = vpop.f32.mrf.mxu3  ;;  %v1767_v48 = vpop.f32.mrf.mxu1 }
 0x297   : > { %v5041_v46 = vmax.f32 %v2307_v41, %v2309_v19  ;;  %v2102_v23 = vadd.f32 %v2052_v57, %v1946_v11  ;;  %v1814_v63 = vadd.f32 %v1767_v48, %v4692_v52  ;;  %v2897_v9 = vrot.slane %v2677_v59, 7 }
 0x299   : > { %v1898_v42 = vpop.f32.mrf.mxu2  ;;  %v2242_v39 = vadd.f32 %v2192_v53, %v2102_v23  ;;  %v2381_v25 = vrot.slane %v5041_v46, 2  ;;  %v2383_v8 = vrot.slane %v5041_v46, 6  ;;  %v2898_v50 = vsel %vm2775_vm8, %v2897_v9, %v2676_v28 }
 0x29a   : > { %v1947_v12 = vadd.f32 %v1898_v42, %v1813_v7  ;;  %v2382_v16 = vrot.slane %v5041_v46, 4  ;;  %v3643_v5 = vrot.slane %v5041_v46, 9 }
 0x29b   : > { %v2278_v3 = vadd.f32 %v4768_v43, %v2242_v39  ;;  %v3644_v26 = vrot.slane %v2381_v25, 9  ;;  %v3646_v11 = vrot.slane %v2383_v8, 9 }
 0x29d   : > { %v2194_v44 = vpop.f32.mrf.mxu0  ;;  %v2310_v53 = vmax.f32 %v2278_v3, 0.0  ;;  %v2681_v59 = vmax.f32 %v2383_v8, %v3646_v11 }
 0x29e   : > { %v2054_v2 = vpop.f32.mrf.mxu3  ;;  %v1769_v47 = vpop.f32.mrf.mxu1 }
 0x29f   : > { %v2103_v61 = vadd.f32 %v2054_v2, %v1947_v12  ;;  %v1815_v60 = vadd.f32 %v1769_v47, %v4697_v45  ;;  %v2890_v45 = vrot.slane %v2675_v21, 7  ;;  %v3645_v21 = vrot.slane %v2382_v16, 9 }
 0x2a1   : > { %v2243_v30 = vadd.f32 %v2194_v44, %v2103_v61  ;;  %v1901_v58 = vpop.f32.mrf.mxu2  ;;  %v2891_v40 = vsel %vm2775_vm8, %v2890_v45, %v2674_v49  ;;  %v2679_v44 = vmax.f32 %v2381_v25, %v3644_v26  ;;  %v5074_v26 = vrot.slane %v2681_v59, 7 }
 0x2a2   : > { %v1948_v14 = vadd.f32 %v1901_v58, %v1814_v63  ;;  %v2892_v42 = vsel %vm2777_vm9, %v2890_v45, %v2891_v40 }
 0x2a3   : > { %v2279_v23 = vadd.f32 %v5062_v27, %v2243_v30  ;;  %v5067_v33 = vrot.slane %v2679_v44, 7  ;;  %v2678_v30 = vmax.f32 %v5041_v46, %v3643_v5 }
 0x2a5   : > { %v2197_v38 = vpop.f32.mrf.mxu0  ;;  %v2311_v3 = vmax.f32 %v2279_v23, 0.0 }
 0x2a6   : > { %v2057_v56 = vpop.f32.mrf.mxu3  ;;  %v5046_v0 = vpop.f32.mrf.mxu1 }
 0x2a7   : > { %v2104_v10 = vadd.f32 %v2057_v56, %v1948_v14 }
 0x2a9   : > { %v2244_v52 = vadd.f32 %v2197_v38, %v2104_v10  ;;  %v1903_v18 = vpop.f32.mrf.mxu2 }
 0x2aa   : > { %v1949_v20 = vadd.f32 %v1903_v18, %v1815_v60  ;;  %v2893_v60 = vsel %vm2779_vm10, %v2890_v45, %v2892_v42 }
 0x2ab   : > { %v2280_v7 = vadd.f32 %v4768_v43, %v2244_v52  ;;  %v2899_v43 = vsel %vm2777_vm9, %v2897_v9, %v2898_v50  ;;  %v2894_v25 = vsel %vm2781_vm11, %v2890_v45, %v2893_v60  ;;  %v2680_v50 = vmax.f32 %v2382_v16, %v3645_v21 }
 0x2ac   : > { %v2900_v38 = vsel %vm2779_vm10, %v2897_v9, %v2899_v43 }
 0x2ad   : > { %v2312_v41 = vmax.f32 %v2280_v7, 0.0  ;;  %v2199_v19 = vpop.f32.mrf.mxu0  ;;  %v2901_v8 = vsel %vm2781_vm11, %v2897_v9, %v2900_v38 }
 0x2ae   : > { %v2059_v57 = vpop.f32.mrf.mxu3  ;;  %v1774_v48 = vpop.f32.mrf.mxu1 }
 0x2af   : > { %v2332_v4 = vmax.f32 %v2310_v53, %v2312_v41  ;;  %v2105_v17 = vadd.f32 %v2059_v57, %v1949_v20  ;;  %v5056_v6 = vadd.f32 %v1774_v48, %v4711_v29  ;;  %v2905_v41 = vsel %vm2775_vm8, %v5067_v33, %v2678_v30 }
 0x2b1   : > { %v2384_v12 = vrot.slane %v2332_v4, 2  ;;  %v2385_v2 = vrot.slane %v2332_v4, 4  ;;  %v2386_v47 = vrot.slane %v2332_v4, 6  ;;  %v1906_v61 = vpop.f32.mrf.mxu2  ;;  %v2245_v29 = vadd.f32 %v2199_v19, %v2105_v17 }
 0x2b2   : > { %v3647_v63 = vrot.slane %v2332_v4, 9  ;;  %v1816_v19 = vadd.f32 %v5046_v0, %v4706_v54 }
 0x2b3   : > { %v3648_v58 = vrot.slane %v2384_v12, 9  ;;  %v3649_v22 = vrot.slane %v2385_v2, 9  ;;  %v3650_v14 = vrot.slane %v2386_v47, 9  ;;  %v2281_v39 = vadd.f32 %v5062_v27, %v2245_v29 }
 0x2b4   : > { %v2682_v20 = vmax.f32 %v2332_v4, %v3647_v63  ;;  %v1950_v11 = vadd.f32 %v1906_v61, %v1816_v19  ;;  %v2906_v29 = vsel %vm2777_vm9, %v5067_v33, %v2905_v41  ;;  %v2912_v63 = vsel %vm2775_vm8, %v5074_v26, %v2680_v50 }
 0x2b5   : > { %v2683_v56 = vmax.f32 %v2384_v12, %v3648_v58  ;;  %v2685_v24 = vmax.f32 %v2386_v47, %v3650_v14  ;;  %v5069_v10 = vpop.f32.mrf.mxu0  ;;  %v2313_v52 = vmax.f32 %v2281_v39, 0.0  ;;  %v2684_v28 = vmax.f32 %v2385_v2, %v3649_v22 }
 0x2b6   : > { %v2062_v18 = vpop.f32.mrf.mxu3  ;;  %v1777_v49 = vpop.f32.mrf.mxu1 }
 0x2b7   : > { %v2918_v7 = vrot.slane %v2683_v56, 7  ;;  %v2925_v40 = vrot.slane %v2685_v24, 7  ;;  %v2333_v53 = vmax.f32 %v2311_v3, %v2313_v52  ;;  %v2106_v3 = vadd.f32 %v2062_v18, %v1950_v11 }
 0x2b8   : > { %v2907_v18 = vsel %vm2779_vm10, %v5067_v33, %v2906_v29 }
 0x2b9   : > { %v2919_v45 = vsel %vm2775_vm8, %v2918_v7, %v2682_v20  ;;  %v2926_v46 = vsel %vm2775_vm8, %v2925_v40, %v2684_v28  ;;  %v1908_v57 = vpop.f32.mrf.mxu2  ;;  %v2387_v9 = vrot.slane %v2333_v53, 2  ;;  %v2388_v4 = vrot.slane %v2333_v53, 4 }
 0x2ba   : > { %v2920_v48 = vsel %vm2777_vm9, %v2918_v7, %v2919_v45  ;;  %v2927_v42 = vsel %vm2777_vm9, %v2925_v40, %v2926_v46  ;;  %v2389_v16 = vrot.slane %v2333_v53, 6  ;;  %v3651_v2 = vrot.slane %v2333_v53, 9 }
 0x2bb   : > { %v2921_v17 = vsel %vm2779_vm10, %v2918_v7, %v2920_v48  ;;  %v2928_v43 = vsel %vm2779_vm10, %v2925_v40, %v2927_v42  ;;  %v3652_v47 = vrot.slane %v2387_v9, 9  ;;  %v3653_v60 = vrot.slane %v2388_v4, 9 }
 0x2bc   : > { %v2922_v44 = vsel %vm2781_vm11, %v2918_v7, %v2921_v17  ;;  %v2929_v12 = vsel %vm2781_vm11, %v2925_v40, %v2928_v43  ;;  %v3654_v5 = vrot.slane %v2389_v16, 9  ;;  %v1951_v61 = vadd.f32 %v1908_v57, %v5056_v6 }
 0x2bd   : > { %v3049_v54 = vrot.slane %v2922_v44, 4  ;;  %v3081_v0 = vrot.slane %v2929_v12, 4  ;;  %v2204_v23 = vpop.f32.mrf.mxu0  ;;  %v2687_v58 = vmax.f32 %v2387_v9, %v3652_v47  ;;  %v2686_v24 = vmax.f32 %v2333_v53, %v3651_v2 }
 0x2be   : > { %v2064_v22 = vpop.f32.mrf.mxu3  ;;  %v1779_v14 = vpop.f32.mrf.mxu1  ;;  %v2689_v39 = vmax.f32 %v2389_v16, %v3654_v5  ;;  %v2688_v52 = vmax.f32 %v2388_v4, %v3653_v60  ;;  %v1818_v6 = vadd.f32 %v1777_v49, %v4720_v34  ;;  %v2246_v19 = vadd.f32 %v5069_v10, %v2106_v3 }
 0x2bf   : > { %v3050_v21 = vsel %vm3033_vm12, %v3049_v54, %v2894_v25  ;;  %v5095_v59 = vsel %vm3033_vm12, %v3081_v0, %v2901_v8  ;;  %v1819_v38 = vadd.f32 %v1779_v14, %v4725_v62  ;;  %v2932_v30 = vrot.slane %v2687_v58, 7 }
 0x2c0   : > { %v5099_v56 = vperm.slane %v3050_v21, %v4836_v13  ;;  %v2939_v20 = vrot.slane %v2689_v39, 7  ;;  %v2107_v28 = vadd.f32 %v2064_v22, %v1951_v61  ;;  %v2913_v25 = vsel %vm2777_vm9, %v5074_v26, %v2912_v63 }
 0x2c1   : > { %v1911_v7 = vpop.f32.mrf.mxu2  ;;  %v2933_v40 = vsel %vm2775_vm8, %v2932_v30, %v2686_v24  ;;  %v2914_v49 = vsel %vm2779_vm10, %v5074_v26, %v2913_v25  ;;  %v2908_v4 = vsel %vm2781_vm11, %v5067_v33, %v2907_v18  ;;  %v2282_v10 = vadd.f32 %v5062_v27, %v2246_v19 }
 0x2c2   : > { %3169 = vst [vmem:[#allocation1 + $0x2] ss:$4 sm:$0xff] %v5099_v56  ;;  %v2934_v62 = vsel %vm2777_vm9, %v2932_v30, %v2933_v40  ;;  %v2940_v8 = vsel %vm2775_vm8, %v2939_v20, %v2688_v52  ;;  %v2247_v50 = vadd.f32 %v2204_v23, %v2107_v28  ;;  %v1952_v53 = vadd.f32 %v1911_v7, %v1818_v6 }
 0x2c3   : > { %v2935_v41 = vsel %vm2779_vm10, %v2932_v30, %v2934_v62  ;;  %v2941_v34 = vsel %vm2777_vm9, %v2939_v20, %v2940_v8  ;;  %v2915_v16 = vsel %vm2781_vm11, %v5074_v26, %v2914_v49  ;;  %v2314_v33 = vmax.f32 %v2282_v10, 0.0  ;;  %v5388_v8 = vld [vmem:[#allocation15_spill] sm:$0xff]  ;;  %v5389_v49 = vld [vmem:[#allocation14_spill] sm:$0xff] }
 0x2c4   : > { %v2936_v45 = vsel %vm2781_vm11, %v2932_v30, %v2935_v41  ;;  %v2942_v46 = vsel %vm2779_vm10, %v2939_v20, %v2941_v34  ;;  %v2283_v58 = vadd.f32 %v5062_v27, %v2247_v50 }
 0x2c5   : > { %v2207_v57 = vpop.f32.mrf.mxu0  ;;  %v2943_v48 = vsel %vm2781_vm11, %v2939_v20, %v2942_v46  ;;  %v3113_v42 = vrot.slane %v2936_v45, 4 }
 0x2c6   : > { %v2067_v9 = vpop.f32.mrf.mxu3  ;;  %v3145_v17 = vrot.slane %v2943_v48, 4  ;;  %v1782_v44 = vpop.f32.mrf.mxu1  ;;  %v2315_v39 = vmax.f32 %v2283_v58, 0.0 }
 0x2c7   : > { %v2108_v43 = vadd.f32 %v2067_v9, %v1952_v53  ;;  %v5123_v11 = vsel %vm3033_vm12, %v3113_v42, %v2908_v4  ;;  %v1820_v52 = vadd.f32 %v1782_v44, %v4734_v32  ;;  %v5390_v44 = vld [vmem:[#allocation13_spill] sm:$0xff] }
 0x2c8   : > { %v5126_v12 = vsel %vm3033_vm12, %v3145_v17, %v2915_v16 }
 0x2c9   : > { %v2248_v2 = vadd.f32 %v2207_v57, %v2108_v43  ;;  %v1913_v47 = vpop.f32.mrf.mxu2 }
 0x2ca   : > { %v1953_v54 = vadd.f32 %v1913_v47, %v1819_v38 }
 0x2cb   : > { %v2284_v0 = vadd.f32 %v5062_v27, %v2248_v2 }
 0x2cd   : > { %v2316_v60 = vmax.f32 %v2284_v0, 0.0  ;;  %v2209_v5 = vpop.f32.mrf.mxu0 }
 0x2ce   : > { %v2069_v23 = vpop.f32.mrf.mxu3  ;;  %v1784_v22 = vpop.f32.mrf.mxu1 }
 0x2cf   : > { %v2334_v29 = vmax.f32 %v2314_v33, %v2316_v60  ;;  %v2109_v26 = vadd.f32 %v2069_v23, %v1953_v54  ;;  %v1821_v45 = vadd.f32 %v1784_v22, %v5389_v49 }
 0x2d1   : > { %v1916_v63 = vpop.f32.mrf.mxu2  ;;  %v2249_v61 = vadd.f32 %v2209_v5, %v2109_v26  ;;  %v2390_v25 = vrot.slane %v2334_v29, 2  ;;  %v2392_v40 = vrot.slane %v2334_v29, 6  ;;  %v2391_v19 = vrot.slane %v2334_v29, 4 }
 0x2d2   : > { %v1954_v28 = vadd.f32 %v1916_v63, %v1820_v52  ;;  %v3655_v47 = vrot.slane %v2334_v29, 9 }
 0x2d3   : > { %v2285_v14 = vadd.f32 %v5062_v27, %v2249_v61  ;;  %v3656_v41 = vrot.slane %v2390_v25, 9  ;;  %v3658_v34 = vrot.slane %v2392_v40, 9  ;;  %v3657_v54 = vrot.slane %v2391_v19, 9 }
 0x2d4   : > { %v2690_v61 = vmax.f32 %v2334_v29, %v3655_v47 }
 0x2d5   : > { %v2212_v21 = vpop.f32.mrf.mxu0  ;;  %v2317_v24 = vmax.f32 %v2285_v14, 0.0  ;;  %v2691_v4 = vmax.f32 %v2390_v25, %v3656_v41  ;;  %v2693_v17 = vmax.f32 %v2392_v40, %v3658_v34  ;;  %v2692_v22 = vmax.f32 %v2391_v19, %v3657_v54 }
 0x2d6   : > { %v2072_v30 = vpop.f32.mrf.mxu3  ;;  %v1787_v20 = vpop.f32.mrf.mxu1 }
 0x2d7   : > { %v5132_v38 = vmax.f32 %v2315_v39, %v2317_v24  ;;  %v2110_v62 = vadd.f32 %v2072_v30, %v1954_v28  ;;  %v1822_v50 = vadd.f32 %v1787_v20, %v5388_v8  ;;  %v5140_v5 = vrot.slane %v2691_v4, 7 }
 0x2d8   : > { %v5142_v23 = vrot.slane %v2693_v17, 7 }
 0x2d9   : > { %v1918_v3 = vpop.f32.mrf.mxu2  ;;  %v2250_v46 = vadd.f32 %v2212_v21, %v2110_v62  ;;  %v2393_v26 = vrot.slane %v5132_v38, 2  ;;  %v2395_v14 = vrot.slane %v5132_v38, 6  ;;  %v2394_v20 = vrot.slane %v5132_v38, 4 }
 0x2da   : > { %v1955_v57 = vadd.f32 %v1918_v3, %v1821_v45  ;;  %v2947_v3 = vsel %vm2775_vm8, %v5140_v5, %v2690_v61  ;;  %v2954_v52 = vsel %vm2775_vm8, %v5142_v23, %v2692_v22  ;;  %v3659_v45 = vrot.slane %v5132_v38, 9 }
 0x2db   : > { %v2286_v43 = vadd.f32 %v5062_v27, %v2250_v46  ;;  %v3660_v28 = vrot.slane %v2393_v26, 9  ;;  %v3662_v62 = vrot.slane %v2395_v14, 9  ;;  %v2948_v34 = vsel %vm2777_vm9, %v5140_v5, %v2947_v3 }
 0x2dc   : > { %v2955_v49 = vsel %vm2777_vm9, %v5142_v23, %v2954_v52  ;;  %v3661_v19 = vrot.slane %v2394_v20, 9  ;;  %v2694_v47 = vmax.f32 %v5132_v38, %v3659_v45 }
 0x2dd   : > { %v2214_v6 = vpop.f32.mrf.mxu0  ;;  %v2318_v63 = vmax.f32 %v2286_v43, 0.0 }
 0x2de   : > { %v2074_v7 = vpop.f32.mrf.mxu3  ;;  %v1789_v32 = vpop.f32.mrf.mxu1  ;;  %v2696_v54 = vmax.f32 %v2394_v20, %v3661_v19 }
 0x2df   : > { %v1823_v10 = vadd.f32 %v1789_v32, %v5390_v44  ;;  %v2111_v0 = vadd.f32 %v2074_v7, %v1955_v57  ;;  %v2695_v57 = vmax.f32 %v2393_v26, %v3660_v28 }
 0x2e1   : > { %v1921_v53 = vpop.f32.mrf.mxu2  ;;  %v2251_v21 = vadd.f32 %v2214_v6, %v2111_v0  ;;  %v2960_v0 = vrot.slane %v2695_v57, 7 }
 0x2e2   : > { %v1956_v18 = vadd.f32 %v1921_v53, %v1822_v50 }
 0x2e3   : > { %v2287_v8 = vadd.f32 %v5062_v27, %v2251_v21 }
 0x2e5   : > { %v2217_v42 = vpop.f32.mrf.mxu0 }
 0x2e6   : > { %v2077_v48 = vpop.f32.mrf.mxu3 }
 0x2e7   : > { %v2112_v9 = vadd.f32 %v2077_v48, %v1956_v18 }
 0x2e9   : > { %v2252_v16 = vadd.f32 %v2217_v42, %v2112_v9  ;;  %v1923_v2 = vpop.f32.mrf.mxu2  ;;  %v2697_v42 = vmax.f32 %v2395_v14, %v3662_v62  ;;  %v2319_v9 = vmax.f32 %v2287_v8, 0.0 }
 0x2ea   : > { %v1957_v60 = vadd.f32 %v1923_v2, %v1823_v10  ;;  %v2949_v10 = vsel %vm2779_vm10, %v5140_v5, %v2948_v34  ;;  %v2956_v2 = vsel %vm2779_vm10, %v5142_v23, %v2955_v49 }
 0x2eb   : > { %v2288_v33 = vadd.f32 %v5062_v27, %v2252_v16  ;;  %v2967_v22 = vrot.slane %v2697_v42, 7 }
 0x2ed   : > { %v2320_v58 = vmax.f32 %v2288_v33, 0.0  ;;  %v2219_v29 = vpop.f32.mrf.mxu0  ;;  %v2968_v8 = vsel %vm2775_vm8, %v2967_v22, %v2696_v54 }
 0x2ee   : > { %v2079_v39 = vpop.f32.mrf.mxu3 }
 0x2ef   : > { %v2336_v24 = vmax.f32 %v2318_v63, %v2320_v58  ;;  %v2113_v30 = vadd.f32 %v2079_v39, %v1957_v60 }
 0x2f1   : > { %v2396_v7 = vrot.slane %v2336_v24, 2  ;;  %v2397_v25 = vrot.slane %v2336_v24, 4  ;;  %v2398_v40 = vrot.slane %v2336_v24, 6  ;;  %v2253_v6 = vadd.f32 %v2219_v29, %v2113_v30 }
 0x2f2   : > { %v3663_v50 = vrot.slane %v2336_v24, 9  ;;  %v2961_v29 = vsel %vm2775_vm8, %v2960_v0, %v2694_v47 }
 0x2f3   : > { %v3664_v53 = vrot.slane %v2396_v7, 9  ;;  %v3665_v18 = vrot.slane %v2397_v25, 9  ;;  %v3666_v41 = vrot.slane %v2398_v40, 9  ;;  %v2289_v46 = vadd.f32 %v5062_v27, %v2253_v6 }
 0x2f4   : > { %v2698_v17 = vmax.f32 %v2336_v24, %v3663_v50  ;;  %v2962_v49 = vsel %vm2777_vm9, %v2960_v0, %v2961_v29 }
 0x2f5   : > { %v2699_v48 = vmax.f32 %v2396_v7, %v3664_v53  ;;  %v2701_v32 = vmax.f32 %v2398_v40, %v3666_v41  ;;  %v2321_v4 = vmax.f32 %v2289_v46, 0.0  ;;  %v2700_v43 = vmax.f32 %v2397_v25, %v3665_v18 }
 0x2f6   : > { %v2950_v25 = vsel %vm2781_vm11, %v5140_v5, %v2949_v10  ;;  %v2957_v40 = vsel %vm2781_vm11, %v5142_v23, %v2956_v2  ;;  %v2969_v23 = vsel %vm2777_vm9, %v2967_v22, %v2968_v8  ;;  %v3055_v2 = vrot.slane %v5099_v56, 4 }
 0x2f7   : > { %v2974_v16 = vrot.slane %v2699_v48, 7  ;;  %v2981_v44 = vrot.slane %v2701_v32, 7  ;;  %v2337_v27 = vmax.f32 %v2319_v9, %v2321_v4  ;;  %v2963_v48 = vsel %vm2779_vm10, %v2960_v0, %v2962_v49 }
 0x2f8   : > { %v3039_v9 = vrot.slane %v4867_v1, 4  ;;  %v2970_v4 = vsel %vm2779_vm10, %v2967_v22, %v2969_v23  ;;  %v2964_v47 = vsel %vm2781_vm11, %v2960_v0, %v2963_v48  ;;  %v3070_v0 = vperm.slane %v4863_v51, %v4836_v13 }
 0x2f9   : > { %v2975_v33 = vsel %vm2775_vm8, %v2974_v16, %v2698_v17  ;;  %v2982_v60 = vsel %vm2775_vm8, %v2981_v44, %v2700_v43  ;;  %v2399_v58 = vrot.slane %v2337_v27, 2  ;;  %v2400_v61 = vrot.slane %v2337_v27, 4 }
 0x2fa   : > { %v2976_v26 = vsel %vm2777_vm9, %v2974_v16, %v2975_v33  ;;  %v2983_v63 = vsel %vm2777_vm9, %v2981_v44, %v2982_v60  ;;  %v2401_v39 = vrot.slane %v2337_v27, 6  ;;  %v3667_v30 = vrot.slane %v2337_v27, 9 }
 0x2fb   : > { %v2977_v14 = vsel %vm2779_vm10, %v2974_v16, %v2976_v26  ;;  %v2984_v21 = vsel %vm2779_vm10, %v2981_v44, %v2983_v63  ;;  %v3668_v3 = vrot.slane %v2399_v58, 9  ;;  %v3669_v28 = vrot.slane %v2400_v61, 9 }
 0x2fc   : > { %v2978_v38 = vsel %vm2781_vm11, %v2974_v16, %v2977_v14  ;;  %v2985_v24 = vsel %vm2781_vm11, %v2981_v44, %v2984_v21  ;;  %v3670_v7 = vrot.slane %v2401_v39, 9  ;;  %v2702_v41 = vmax.f32 %v2337_v27, %v3667_v30 }
 0x2fd   : > { %v3057_v52 = vrot.slane %v2978_v38, 4  ;;  %v3089_v20 = vrot.slane %v2985_v24, 4  ;;  %v2703_v62 = vmax.f32 %v2399_v58, %v3668_v3  ;;  %v2704_v5 = vmax.f32 %v2400_v61, %v3669_v28 }
 0x2fe   : > { %v2705_v53 = vmax.f32 %v2401_v39, %v3670_v7  ;;  %v3047_v16 = vrot.slane %v5007_v35, 4  ;;  %v2971_v54 = vsel %vm2781_vm11, %v2967_v22, %v2970_v4  ;;  %v3040_v60 = vsel %vm3033_vm12, 0.0, %v3039_v9 }
 0x2ff   : > { %v3058_v6 = vsel %vm3033_vm12, %v3057_v52, %v2950_v25  ;;  %v3090_v50 = vsel %vm3033_vm12, %v3089_v20, %v2957_v40  ;;  %v2988_v34 = vrot.slane %v2703_v62, 7  ;;  %v3056_v58 = vsel %vm3033_vm12, 0.0, %v3055_v2 }
 0x300   : > { %v3062_v18 = vperm.slane %v3058_v6, %v4836_v13  ;;  %v2995_v45 = vrot.slane %v2705_v53, 7  ;;  %v3048_v35 = vsel %vm3033_vm12, 0.0, %v3047_v16  ;;  %v3078_v61 = vperm.slane %v5003_v31, %v4836_v13 }
 0x301   : > { %v2989_v46 = vsel %vm2775_vm8, %v2988_v34, %v2702_v41  ;;  %v3086_v14 = vperm.slane %v5095_v59, %v4836_v13  ;;  %v3094_v21 = vperm.slane %v3090_v50, %v4836_v13  ;;  %v3071_v39 = vrot.slane %v3070_v0, 4 }
 0x302   : > { %3171 = vst [vmem:[#allocation1 + $0x3] ss:$4 sm:$0xff] %v3062_v18  ;;  %v2990_v19 = vsel %vm2777_vm9, %v2988_v34, %v2989_v46  ;;  %v2996_v57 = vsel %vm2775_vm8, %v2995_v45, %v2704_v5  ;;  %v3063_v33 = vrot.slane %v3062_v18, 4  ;;  %v3079_v38 = vrot.slane %v3078_v61, 4 }
 0x303   : > { %v2991_v32 = vsel %vm2779_vm10, %v2988_v34, %v2990_v19  ;;  %v2997_v42 = vsel %vm2777_vm9, %v2995_v45, %v2996_v57  ;;  %v3087_v24 = vrot.slane %v3086_v14, 4  ;;  %v3095_v30 = vrot.slane %v3094_v21, 4 }
 0x304   : > { %v2992_v17 = vsel %vm2781_vm11, %v2988_v34, %v2991_v32  ;;  %v2998_v43 = vsel %vm2779_vm10, %v2995_v45, %v2997_v42  ;;  %v3064_v56 = vsel %vm3033_vm12, 0.0, %v3063_v33  ;;  %v3072_v3 = vsel %vm3033_vm12, 0.0, %v3071_v39 }
 0x305   : > { %v2999_v44 = vsel %vm2781_vm11, %v2995_v45, %v2998_v43  ;;  %v3121_v10 = vrot.slane %v2992_v17, 4  ;;  %v3080_v52 = vsel %vm3033_vm12, 0.0, %v3079_v38  ;;  %v3088_v31 = vsel %vm3033_vm12, 0.0, %v3087_v24 }
 0x306   : > { %v3153_v27 = vrot.slane %v2999_v44, 4  ;;  %v3096_v59 = vsel %vm3033_vm12, 0.0, %v3095_v30  ;;  %v3102_v20 = vperm.slane %v4901_v36, %v4836_v13  ;;  %v3110_v28 = vperm.slane %v5031_v55, %v4836_v13 }
 0x307   : > { %v3122_v1 = vsel %vm3033_vm12, %v3121_v10, %v2964_v47  ;;  %v3118_v25 = vperm.slane %v5123_v11, %v4836_v13  ;;  %v3134_v18 = vperm.slane %v4909_v37, %v4836_v13  ;;  %v3142_v41 = vperm.slane %v5034_v15, %v4836_v13 }
 0x308   : > { %v3154_v63 = vsel %vm3033_vm12, %v3153_v27, %v2971_v54  ;;  %v3126_v40 = vperm.slane %v3122_v1, %v4836_v13  ;;  %v3103_v29 = vrot.slane %v3102_v20, 4  ;;  %v3111_v62 = vrot.slane %v3110_v28, 4 }
 0x309   : > { %v5199_v26 = vld.sshfl [vmem:[#allocation1] sm:$0xff pattern:$0x73625140]  ;;  %v3119_v8 = vrot.slane %v3118_v25, 4  ;;  %v3150_v49 = vperm.slane %v5126_v12, %v4836_v13  ;;  %v3158_v45 = vperm.slane %v3154_v63, %v4836_v13  ;;  %v3135_v23 = vrot.slane %v3134_v18, 4 }
 0x30a   : > { %3178 = vst [vmem:[#allocation1] ss:$4 sm:$0xff] %v3040_v60  ;;  %v3127_v6 = vrot.slane %v3126_v40, 4  ;;  %v3104_v50 = vsel %vm3033_vm12, 0.0, %v3103_v29  ;;  %v3112_v53 = vsel %vm3033_vm12, 0.0, %v3111_v62  ;;  %v3143_v46 = vrot.slane %v3142_v41, 4 }
 0x30b   : > { %3180 = vst [vmem:[#allocation1 + $0x1] ss:$4 sm:$0xff] %v3048_v35  ;;  %v3120_v55 = vsel %vm3033_vm12, 0.0, %v3119_v8  ;;  %v3151_v19 = vrot.slane %v3150_v49, 4  ;;  %v3159_v37 = vrot.slane %v3158_v45, 4  ;;  %v3136_v57 = vsel %vm3033_vm12, 0.0, %v3135_v23 }
 0x30c   : > { %3182 = vst [vmem:[#allocation1 + $0x2] ss:$4 sm:$0xff] %v3056_v58  ;;  %v3128_v11 = vsel %vm3033_vm12, 0.0, %v3127_v6  ;;  %v3144_v48 = vsel %vm3033_vm12, 0.0, %v3143_v46 }
 0x30d   : > { %3184 = vst [vmem:[#allocation1 + $0x3] ss:$4 sm:$0xff] %v3064_v56  ;;  %v3152_v12 = vsel %vm3033_vm12, 0.0, %v3151_v19  ;;  %v3160_v13 = vsel %vm3033_vm12, 0.0, %v3159_v37 }
 0x314   : > { %v3185_v22 = vld.sshfl [vmem:[#allocation1] sm:$0xff pattern:$0x73625140] }
 0x315   : > { %3193 = vst [vmem:[#allocation1] ss:$4 sm:$0xff] %v3070_v0 }
 0x316   : > { %3195 = vst [vmem:[#allocation1 + $0x1] ss:$4 sm:$0xff] %v3078_v61 }
 0x317   : > { %3197 = vst [vmem:[#allocation1 + $0x2] ss:$4 sm:$0xff] %v3086_v14 }
 0x318   : > { %3199 = vst [vmem:[#allocation1 + $0x3] ss:$4 sm:$0xff] %v3094_v21 }
 0x31f   : > { %v3200_v51 = vld.sshfl [vmem:[#allocation1] sm:$0xff pattern:$0x73625140] }
 0x320   : > { %3208 = vst [vmem:[#allocation1] ss:$4 sm:$0xff] %v3072_v3 }
 0x321   : > { %3210 = vst [vmem:[#allocation1 + $0x1] ss:$4 sm:$0xff] %v3080_v52 }
 0x322   : > { %3212 = vst [vmem:[#allocation1 + $0x2] ss:$4 sm:$0xff] %v3088_v31 }
 0x323   : > { %3214 = vst [vmem:[#allocation1 + $0x3] ss:$4 sm:$0xff] %v3096_v59 }
 0x32a   : > { %v3215_v7 = vld.sshfl [vmem:[#allocation1] sm:$0xff pattern:$0x73625140] }
 0x32b   : > { %3223 = vst [vmem:[#allocation1] ss:$4 sm:$0xff] %v3102_v20 }
 0x32c   : > { %3225 = vst [vmem:[#allocation1 + $0x1] ss:$4 sm:$0xff] %v3110_v28 }
 0x32d   : > { %3227 = vst [vmem:[#allocation1 + $0x2] ss:$4 sm:$0xff] %v3118_v25 }
 0x32e   : > { %3229 = vst [vmem:[#allocation1 + $0x3] ss:$4 sm:$0xff] %v3126_v40 }
 0x335   : > { %v3230_v36 = vld.sshfl [vmem:[#allocation1] sm:$0xff pattern:$0x73625140] }
 0x336   : > { %3236 = vst [vmem:[#allocation1] ss:$4 sm:$0xff] %v3104_v50 }
 0x337   : > { %3238 = vst [vmem:[#allocation1 + $0x1] ss:$4 sm:$0xff] %v3112_v53 }
 0x338   : > { %3240 = vst [vmem:[#allocation1 + $0x2] ss:$4 sm:$0xff] %v3120_v55 }
 0x339   : > { %3242 = vst [vmem:[#allocation1 + $0x3] ss:$4 sm:$0xff] %v3128_v11 }
 0x340   : > { %v3243_v34 = vld.sshfl [vmem:[#allocation1] sm:$0xff pattern:$0x73625140] }
 0x341   : > { %v3719_v5 = vpack.i.bf16 %v3243_v34, %v3185_v22  ;;  %3251 = vst [vmem:[#allocation1] ss:$4 sm:$0xff] %v3134_v18 }
 0x342   : > { %3253 = vst [vmem:[#allocation1 + $0x1] ss:$4 sm:$0xff] %v3142_v41 }
 0x343   : > { %3720 = vrot.lane.b32.xlu0 %v3719_v5, %s3789_s16  ;;  %3255 = vst [vmem:[#allocation1 + $0x2] ss:$4 sm:$0xff] %v3150_v49 }
 0x344   : > { %3257 = vst [vmem:[#allocation1 + $0x3] ss:$4 sm:$0xff] %v3158_v45 }
 0x34b   : > { %v3258_v15 = vld.sshfl [vmem:[#allocation1] sm:$0xff pattern:$0x73625140] }
 0x34c   : > { %v3724_v32 = vpack.i.bf16 %v3258_v15, %v3200_v51  ;;  %3266 = vst [vmem:[#allocation1] ss:$4 sm:$0xff] %v3136_v57 }
 0x34d   : > { %3268 = vst [vmem:[#allocation1 + $0x1] ss:$4 sm:$0xff] %v3144_v48 }
 0x34e   : > { %3725 = vrot.lane.b32.xlu0 %v3724_v32, %s3790_s17  ;;  %3270 = vst [vmem:[#allocation1 + $0x2] ss:$4 sm:$0xff] %v3152_v12 }
 0x34f   : > { %3272 = vst [vmem:[#allocation1 + $0x3] ss:$4 sm:$0xff] %v3160_v13 }
 0x356   : > { %v3273_v42 = vld.sshfl [vmem:[#allocation1] sm:$0xff pattern:$0x73625140] }
 0x357   : > { %v3729_v9 = vpack.i.bf16 %v3273_v42, %v3215_v7 }
 0x359   : > { %3730 = vrot.lane.b32.xlu1 %v3729_v9, %s3791_s18 }
 0x3b5   : > { %v3721_v4 = vpop.permute.xlu0 %3720 }
 0x3b6   : > { %v3723_v43 = vunpack.i.h.bf16 %v3721_v4  ;;  %v3722_v16 = vunpack.i.l.bf16 %v3721_v4 }
 0x3b8   : > { %v3283_v47 = vsel %vm3277_vm13, %v3230_v36, %v3723_v43  ;;  %v3278_v27 = vsel %vm3277_vm13, %v5199_v26, %v3722_v16 }
 0x3c0   : > { %v3726_v17 = vpop.permute.xlu0 %3725 }
 0x3c1   : > { %v3728_v44 = vunpack.i.h.bf16 %v3726_v17  ;;  %v3727_v10 = vunpack.i.l.bf16 %v3726_v17 }
 0x3c3   : > { %v3284_v1 = vsel %vm3279_vm14, %v3283_v47, %v3728_v44  ;;  %v3280_v60 = vsel %vm3279_vm14, %v3278_v27, %v3727_v10 }
 0x3cb   : > { %v3731_v2 = vpop.permute.xlu1 %3730 }
 0x3cc   : > { %v3733_v54 = vunpack.i.h.bf16 %v3731_v2  ;;  %v3732_v33 = vunpack.i.l.bf16 %v3731_v2 }
 0x3ce   : > { %v3285_v63 = vsel %vm3281_vm15, %v3284_v1, %v3733_v54  ;;  %v3282_v35 = vsel %vm3281_vm15, %v3280_v60, %v3732_v33 }
 0x3cf   : > { %v3286_v58 = vpack.c.bf16 %v3285_v63, %v3282_v35 }
 0x3d1   : > { %3287 = vst [vmem:[%s185_s22] sm:$0xff] %v3286_v58 }
 0x3d2 PF: > { %s14_s12 = sadd.s32 1, %s3785_s12  }
 0x3d3   : > { %p11_p7 = scmp.ge.s32.totalorder %s14_s12, 4  }
 0x3d5   :  { %13 = sbr.rel (!%p11_p7) target bundleno = 1 (0x1), region = 99 }
 0x3da   :  { %3309 = vsyncpa [#allocation3], 1 }
 0x3db   :  { %3311 = vsyncpa [#allocation3 + $0x1], 1 }

</bundles_post_ra>
